<compile_context>
chip_gen: v7x
topology: tpu7x:2x2x1
jax: 0.10.0
libtpu: 0.0.40
codegen_flags: <defaults>
</compile_context>

<pallas_src>
import functools

import jax
import jax.numpy as jnp
from jax.experimental import pallas as pl
from jax.experimental.pallas import tpu as pltpu

IN_FEATURES = 1600   # 1 * 40 * 40
N1_PAD = 512         # 400 -> 512
N2 = 128
N3_PAD = 128         # 64  -> 128
N4_PAD = 128         # 2   -> 128 (lane-dense output; real columns are [:2])


def expertise_mlp_kernel(x_ref, w1_ref, b1_ref, w2_ref, b2_ref,
                         w3_ref, b3_ref, w4_ref, b4_ref,
                         scale_ref, off_ref, o_ref):
    """One batch tile: 4 MXU matmuls + ReLU + tanh head scaling.

    Weights arrive pre-transposed as (in, out) and lane-padded; padded rows /
    columns are zero so they contribute nothing to the live outputs.
    """
    x = x_ref[...]                                                  # (TB, 1600)
    h1 = jnp.maximum(
        jnp.dot(x, w1_ref[...], preferred_element_type=jnp.float32) + b1_ref[...], 0.0)
    h2 = jnp.maximum(
        jnp.dot(h1, w2_ref[...], preferred_element_type=jnp.float32) + b2_ref[...], 0.0)
    h3 = jnp.maximum(
        jnp.dot(h2, w3_ref[...], preferred_element_type=jnp.float32) + b3_ref[...], 0.0)
    z4 = jnp.dot(h3, w4_ref[...], preferred_element_type=jnp.float32) + b4_ref[...]
    # col0: tanh*150+50, col1: tanh*30, padded cols: tanh(0)*0+0 = 0.
    o_ref[...] = jnp.tanh(z4) * scale_ref[...] + off_ref[...]


def prepare_params(params, weights_dtype=jnp.float32):
    """One-time param prep: transpose to (in, out), zero-pad to lane multiples.

    `weights_dtype=jnp.bfloat16` is a valid option on v6e/v7x (halves weight
    DMA, ~2x MXU rate) but loosens the 1e-4 comparison tolerance; f32 default
    keeps bit-for-bit MLP semantics.
    """
    w1, b1, w2, b2, w3, b3, w4, b4 = params

    def pad_wt(w, b, in_pad, out_pad):
        wt = w.T.astype(weights_dtype)                              # (in, out)
        wt = jnp.pad(wt, ((0, in_pad - wt.shape[0]), (0, out_pad - wt.shape[1])))
        bp = jnp.pad(b.astype(jnp.float32), (0, out_pad - b.shape[0])).reshape(1, -1)
        return wt, bp

    w1p, b1p = pad_wt(w1, b1, IN_FEATURES, N1_PAD)
    w2p, b2p = pad_wt(w2, b2, N1_PAD, N2)
    w3p, b3p = pad_wt(w3, b3, N2, N3_PAD)
    w4p, b4p = pad_wt(w4, b4, N3_PAD, N4_PAD)

    scale = jnp.zeros((1, N4_PAD), jnp.float32).at[0, 0].set(150.0).at[0, 1].set(30.0)
    offset = jnp.zeros((1, N4_PAD), jnp.float32).at[0, 0].set(50.0)
    return (w1p, b1p, w2p, b2p, w3p, b3p, w4p, b4p, scale, offset)


def expertise_nn_forward(x_nchw, prepared, *, tile_b=256):
    """x_nchw: (B, 1, 40, 40) float32 -> (B, 2) float32."""
    B = x_nchw.shape[0]
    x_flat = x_nchw.reshape(B, -1)                                   # (B, 1600)
    assert x_flat.shape[1] == IN_FEATURES, x_flat.shape

    # Batch tile: multiple of 8 (f32 sublane), capped at 256, no larger than
    # needed for small batches.  Pad B up to a multiple of the tile.
    tb = min(tile_b, ((B + 7) // 8) * 8)
    tb = max(8, ((tb + 7) // 8) * 8)
    b_pad = ((B + tb - 1) // tb) * tb
    if b_pad != B:
        x_flat = jnp.pad(x_flat, ((0, b_pad - B), (0, 0)))

    # Weights/biases/scale/offset: whole-array blocks, constant index_map ->
    # VMEM-resident across all grid steps; only the x / out tiles stream.
    param_specs = [pl.BlockSpec(p.shape, lambda i: (0, 0)) for p in prepared]
    in_specs = [pl.BlockSpec((tb, IN_FEATURES), lambda i: (i, 0))] + param_specs

    out_padded = pl.pallas_call(
        expertise_mlp_kernel,
        grid=(b_pad // tb,),
        in_specs=in_specs,
        out_specs=pl.BlockSpec((tb, N4_PAD), lambda i: (i, 0)),
        out_shape=jax.ShapeDtypeStruct((b_pad, N4_PAD), jnp.float32),
        compiler_params=pltpu.CompilerParams(
            dimension_semantics=("parallel",)),   # megacore on v7x, no-op v5e/v6e
    )(x_flat, *prepared)

    return out_padded[:B, :2]


def _reference_forward(x_nchw, params):
    """Pure-JAX reference of the live path (matches PyTorch semantics)."""
    w1, b1, w2, b2, w3, b3, w4, b4 = params
    x = x_nchw.reshape(x_nchw.shape[0], -1)
    x = jax.nn.relu(x @ w1.T + b1)
    x = jax.nn.relu(x @ w2.T + b2)
    x = jax.nn.relu(x @ w3.T + b3)
    x = x @ w4.T + b4
    out0 = jnp.tanh(x[:, 0]) * 150.0 + 50.0
    out1 = jnp.tanh(x[:, 1]) * 30.0
    return jnp.stack([out0, out1], axis=1)


def _linear_init(key, out_features, in_features):
    """Deterministic PyTorch-style Linear init: U(-1/sqrt(fan_in), 1/sqrt(fan_in))."""
    kw, kb = jax.random.split(key)
    bound = 1.0 / jnp.sqrt(jnp.float32(in_features))
    w = jax.random.uniform(kw, (out_features, in_features), jnp.float32, -bound, bound)
    b = jax.random.uniform(kb, (out_features,), jnp.float32, -bound, bound)
    return w, b


if __name__ == "__main__":
    key = jax.random.PRNGKey(0)
    k1, k2, k3, k4, kx = jax.random.split(key, 5)

    w1, b1 = _linear_init(k1, 400, 1600)
    w2, b2 = _linear_init(k2, 128, 400)
    w3, b3 = _linear_init(k3, 64, 128)
    w4, b4 = _linear_init(k4, 2, 64)
    params = (w1, b1, w2, b2, w3, b3, w4, b4)

    # One-time param prep (transpose + pad); reused across every forward call.
    prepared = prepare_params(params)

    # Small batch; spatial must be 40x40 so that flatten yields 1600 features.
    x = jax.random.normal(kx, (4, 1, 40, 40), dtype=jnp.float32)

    out = jax.block_until_ready(expertise_nn_forward(x, prepared))
    ref = jax.block_until_ready(_reference_forward(x, params))

    assert out.shape == (4, 2), out.shape
    assert jnp.allclose(out, ref, atol=1e-4, rtol=1e-4), (out, ref)
    print("KERNEL_OK")
</pallas_src>

<mosaic_0001>
module attributes {stable_mosaic.version = 11 : i64} {
  func.func @expertise_mlp_kernel(%arg0: i32, %arg1: memref<8x1600xf32, #tpu.memory_space<vmem>>, %arg2: memref<1600x512xf32, #tpu.memory_space<vmem>>, %arg3: memref<1x512xf32, #tpu.memory_space<vmem>>, %arg4: memref<512x128xf32, #tpu.memory_space<vmem>>, %arg5: memref<1x128xf32, #tpu.memory_space<vmem>>, %arg6: memref<128x128xf32, #tpu.memory_space<vmem>>, %arg7: memref<1x128xf32, #tpu.memory_space<vmem>>, %arg8: memref<128x128xf32, #tpu.memory_space<vmem>>, %arg9: memref<1x128xf32, #tpu.memory_space<vmem>>, %arg10: memref<1x128xf32, #tpu.memory_space<vmem>>, %arg11: memref<1x128xf32, #tpu.memory_space<vmem>>, %arg12: memref<8x128xf32, #tpu.memory_space<vmem>>) attributes {dimension_semantics = [#tpu.dimension_semantics<parallel>], iteration_bounds = array<i64: 1>, scalar_prefetch = 0 : i64, scratch_operands = 0 : i64, tpu.core_type = #tpu.core_type<tc>, window_params = [{transform_indices = @transform_0, window_bounds = array<i64: 8, 1600>}, {pipeline_mode = #tpu.pipeline_mode<synchronous>, transform_indices = @transform_1, window_bounds = array<i64: 1600, 512>}, {pipeline_mode = #tpu.pipeline_mode<synchronous>, transform_indices = @transform_2, window_bounds = array<i64: 1, 512>}, {pipeline_mode = #tpu.pipeline_mode<synchronous>, transform_indices = @transform_3, window_bounds = array<i64: 512, 128>}, {pipeline_mode = #tpu.pipeline_mode<synchronous>, transform_indices = @transform_4, window_bounds = array<i64: 1, 128>}, {pipeline_mode = #tpu.pipeline_mode<synchronous>, transform_indices = @transform_5, window_bounds = array<i64: 128, 128>}, {pipeline_mode = #tpu.pipeline_mode<synchronous>, transform_indices = @transform_6, window_bounds = array<i64: 1, 128>}, {pipeline_mode = #tpu.pipeline_mode<synchronous>, transform_indices = @transform_7, window_bounds = array<i64: 128, 128>}, {pipeline_mode = #tpu.pipeline_mode<synchronous>, transform_indices = @transform_8, window_bounds = array<i64: 1, 128>}, {pipeline_mode = #tpu.pipeline_mode<synchronous>, transform_indices = @transform_9, window_bounds = array<i64: 1, 128>}, {pipeline_mode = #tpu.pipeline_mode<synchronous>, transform_indices = @transform_10, window_bounds = array<i64: 1, 128>}, {transform_indices = @transform_11, window_bounds = array<i64: 8, 128>}]} {
    %c0 = arith.constant 0 : index
    %c0_0 = arith.constant 0 : index
    %0 = vector.load %arg1[%c0, %c0_0] : memref<8x1600xf32, #tpu.memory_space<vmem>>, vector<8x1600xf32>
    %c0_1 = arith.constant 0 : index
    %c0_2 = arith.constant 0 : index
    %1 = vector.load %arg2[%c0_1, %c0_2] : memref<1600x512xf32, #tpu.memory_space<vmem>>, vector<1600x512xf32>
    %cst = arith.constant dense<0.000000e+00> : vector<8x512xf32>
    %2 = tpu.matmul %0, %1, %cst {dimension_numbers = #tpu.dot_dimension_numbers<[1], [0], [0], [1], [0, 0, 1, 1], [], []>} : vector<8x1600xf32>, vector<1600x512xf32>, vector<8x512xf32> -> vector<8x512xf32>
    %c0_3 = arith.constant 0 : index
    %c0_4 = arith.constant 0 : index
    %3 = vector.load %arg3[%c0_3, %c0_4] : memref<1x512xf32, #tpu.memory_space<vmem>>, vector<1x512xf32>
    %4 = vector.broadcast %3 : vector<1x512xf32> to vector<8x512xf32>
    %5 = arith.addf %2, %4 : vector<8x512xf32>
    %cst_5 = arith.constant 0.000000e+00 : f32
    %6 = vector.broadcast %cst_5 : f32 to vector<8x512xf32>
    %7 = arith.maximumf %5, %6 : vector<8x512xf32>
    %c0_6 = arith.constant 0 : index
    %c0_7 = arith.constant 0 : index
    %8 = vector.load %arg4[%c0_6, %c0_7] : memref<512x128xf32, #tpu.memory_space<vmem>>, vector<512x128xf32>
    %cst_8 = arith.constant dense<0.000000e+00> : vector<8x128xf32>
    %9 = tpu.matmul %7, %8, %cst_8 {dimension_numbers = #tpu.dot_dimension_numbers<[1], [0], [0], [1], [0, 0, 1, 1], [], []>} : vector<8x512xf32>, vector<512x128xf32>, vector<8x128xf32> -> vector<8x128xf32>
    %c0_9 = arith.constant 0 : index
    %c0_10 = arith.constant 0 : index
    %10 = vector.load %arg5[%c0_9, %c0_10] : memref<1x128xf32, #tpu.memory_space<vmem>>, vector<1x128xf32>
    %11 = vector.broadcast %10 : vector<1x128xf32> to vector<8x128xf32>
    %12 = arith.addf %9, %11 : vector<8x128xf32>
    %cst_11 = arith.constant 0.000000e+00 : f32
    %13 = vector.broadcast %cst_11 : f32 to vector<8x128xf32>
    %14 = arith.maximumf %12, %13 : vector<8x128xf32>
    %c0_12 = arith.constant 0 : index
    %c0_13 = arith.constant 0 : index
    %15 = vector.load %arg6[%c0_12, %c0_13] : memref<128x128xf32, #tpu.memory_space<vmem>>, vector<128x128xf32>
    %cst_14 = arith.constant dense<0.000000e+00> : vector<8x128xf32>
    %16 = tpu.matmul %14, %15, %cst_14 {dimension_numbers = #tpu.dot_dimension_numbers<[1], [0], [0], [1], [0, 0, 1, 1], [], []>} : vector<8x128xf32>, vector<128x128xf32>, vector<8x128xf32> -> vector<8x128xf32>
    %c0_15 = arith.constant 0 : index
    %c0_16 = arith.constant 0 : index
    %17 = vector.load %arg7[%c0_15, %c0_16] : memref<1x128xf32, #tpu.memory_space<vmem>>, vector<1x128xf32>
    %18 = vector.broadcast %17 : vector<1x128xf32> to vector<8x128xf32>
    %19 = arith.addf %16, %18 : vector<8x128xf32>
    %cst_17 = arith.constant 0.000000e+00 : f32
    %20 = vector.broadcast %cst_17 : f32 to vector<8x128xf32>
    %21 = arith.maximumf %19, %20 : vector<8x128xf32>
    %c0_18 = arith.constant 0 : index
    %c0_19 = arith.constant 0 : index
    %22 = vector.load %arg8[%c0_18, %c0_19] : memref<128x128xf32, #tpu.memory_space<vmem>>, vector<128x128xf32>
    %cst_20 = arith.constant dense<0.000000e+00> : vector<8x128xf32>
    %23 = tpu.matmul %21, %22, %cst_20 {dimension_numbers = #tpu.dot_dimension_numbers<[1], [0], [0], [1], [0, 0, 1, 1], [], []>} : vector<8x128xf32>, vector<128x128xf32>, vector<8x128xf32> -> vector<8x128xf32>
    %c0_21 = arith.constant 0 : index
    %c0_22 = arith.constant 0 : index
    %24 = vector.load %arg9[%c0_21, %c0_22] : memref<1x128xf32, #tpu.memory_space<vmem>>, vector<1x128xf32>
    %25 = vector.broadcast %24 : vector<1x128xf32> to vector<8x128xf32>
    %26 = arith.addf %23, %25 : vector<8x128xf32>
    %27 = math.tanh %26 : vector<8x128xf32>
    %c0_23 = arith.constant 0 : index
    %c0_24 = arith.constant 0 : index
    %28 = vector.load %arg10[%c0_23, %c0_24] : memref<1x128xf32, #tpu.memory_space<vmem>>, vector<1x128xf32>
    %29 = vector.broadcast %28 : vector<1x128xf32> to vector<8x128xf32>
    %30 = arith.mulf %27, %29 : vector<8x128xf32>
    %c0_25 = arith.constant 0 : index
    %c0_26 = arith.constant 0 : index
    %31 = vector.load %arg11[%c0_25, %c0_26] : memref<1x128xf32, #tpu.memory_space<vmem>>, vector<1x128xf32>
    %32 = vector.broadcast %31 : vector<1x128xf32> to vector<8x128xf32>
    %33 = arith.addf %30, %32 : vector<8x128xf32>
    %c0_27 = arith.constant 0 : index
    %c0_28 = arith.constant 0 : index
    %34 = vector.load %arg12[%c0_27, %c0_28] : memref<8x128xf32, #tpu.memory_space<vmem>>, vector<8x128xf32>
    tpu.vector_store %arg12[%c0_27, %c0_28], %33 {strides = array<i32>} : memref<8x128xf32, #tpu.memory_space<vmem>>, vector<8x128xf32>,
    return
  }
  func.func @transform_0(%arg0: i32) -> (i32, i32) {
    %c0_i32 = arith.constant 0 : i32
    %c0_i32_0 = arith.constant 0 : i32
    return %arg0, %c0_i32 : i32, i32
  }
  func.func @transform_1(%arg0: i32) -> (i32, i32) {
    %c0_i32 = arith.constant 0 : i32
    %c0_i32_0 = arith.constant 0 : i32
    %c0_i32_1 = arith.constant 0 : i32
    return %c0_i32, %c0_i32_0 : i32, i32
  }
  func.func @transform_2(%arg0: i32) -> (i32, i32) {
    %c0_i32 = arith.constant 0 : i32
    %c0_i32_0 = arith.constant 0 : i32
    %c0_i32_1 = arith.constant 0 : i32
    return %c0_i32, %c0_i32_0 : i32, i32
  }
  func.func @transform_3(%arg0: i32) -> (i32, i32) {
    %c0_i32 = arith.constant 0 : i32
    %c0_i32_0 = arith.constant 0 : i32
    %c0_i32_1 = arith.constant 0 : i32
    return %c0_i32, %c0_i32_0 : i32, i32
  }
  func.func @transform_4(%arg0: i32) -> (i32, i32) {
    %c0_i32 = arith.constant 0 : i32
    %c0_i32_0 = arith.constant 0 : i32
    %c0_i32_1 = arith.constant 0 : i32
    return %c0_i32, %c0_i32_0 : i32, i32
  }
  func.func @transform_5(%arg0: i32) -> (i32, i32) {
    %c0_i32 = arith.constant 0 : i32
    %c0_i32_0 = arith.constant 0 : i32
    %c0_i32_1 = arith.constant 0 : i32
    return %c0_i32, %c0_i32_0 : i32, i32
  }
  func.func @transform_6(%arg0: i32) -> (i32, i32) {
    %c0_i32 = arith.constant 0 : i32
    %c0_i32_0 = arith.constant 0 : i32
    %c0_i32_1 = arith.constant 0 : i32
    return %c0_i32, %c0_i32_0 : i32, i32
  }
  func.func @transform_7(%arg0: i32) -> (i32, i32) {
    %c0_i32 = arith.constant 0 : i32
    %c0_i32_0 = arith.constant 0 : i32
    %c0_i32_1 = arith.constant 0 : i32
    return %c0_i32, %c0_i32_0 : i32, i32
  }
  func.func @transform_8(%arg0: i32) -> (i32, i32) {
    %c0_i32 = arith.constant 0 : i32
    %c0_i32_0 = arith.constant 0 : i32
    %c0_i32_1 = arith.constant 0 : i32
    return %c0_i32, %c0_i32_0 : i32, i32
  }
  func.func @transform_9(%arg0: i32) -> (i32, i32) {
    %c0_i32 = arith.constant 0 : i32
    %c0_i32_0 = arith.constant 0 : i32
    %c0_i32_1 = arith.constant 0 : i32
    return %c0_i32, %c0_i32_0 : i32, i32
  }
  func.func @transform_10(%arg0: i32) -> (i32, i32) {
    %c0_i32 = arith.constant 0 : i32
    %c0_i32_0 = arith.constant 0 : i32
    %c0_i32_1 = arith.constant 0 : i32
    return %c0_i32, %c0_i32_0 : i32, i32
  }
  func.func @transform_11(%arg0: i32) -> (i32, i32) {
    %c0_i32 = arith.constant 0 : i32
    %c0_i32_0 = arith.constant 0 : i32
    return %arg0, %c0_i32 : i32, i32
  }
}

</mosaic_0001>

<bundles_post_ra>
// kernel: tpu_custom_call.1
= control target key start
LH: loop header
LB: loop body
LE: loop exit
PB: predicated region body
PF: predicated region fallthrough
CT: control target
= control target key end

     0   :  { %16 = vsyncpa [#allocation3], 0  ;;  %s4129_s0 = inlined_call_operand.hbm [shape: f32[8,1600], index: 0, kind: input, shape index: {}]   ;;  %s4130_s1 = inlined_call_operand.hbm [shape: f32[1600,512], index: 1, kind: input, shape index: {}]   ;;  %s4131_s2 = inlined_call_operand.hbm [shape: f32[1,512], index: 2, kind: input, shape index: {}]   ;;  %s4132_s3 = inlined_call_operand.hbm [shape: f32[512,128], index: 3, kind: input, shape index: {}]   ;;  %s4133_s4 = inlined_call_operand.hbm [shape: f32[1,128], index: 4, kind: input, shape index: {}]   ;;  %s4134_s5 = inlined_call_operand.hbm [shape: f32[128,128], index: 5, kind: input, shape index: {}]   ;;  %s4135_s6 = inlined_call_operand.hbm [shape: f32[1,128], index: 6, kind: input, shape index: {}]   ;;  %s4136_s7 = inlined_call_operand.hbm [shape: f32[128,128], index: 7, kind: input, shape index: {}]   ;;  %s4137_s8 = inlined_call_operand.hbm [shape: f32[1,128], index: 8, kind: input, shape index: {}]   ;;  %s4138_s9 = inlined_call_operand.hbm [shape: f32[1,128], index: 9, kind: input, shape index: {}]   ;;  %s4139_s10 = inlined_call_operand.hbm [shape: f32[1,128], index: 10, kind: input, shape index: {}]   ;;  %s4140_s11 = inlined_call_operand.hbm [shape: f32[8,128], index: 11, kind: output, shape index: {}]  }
   0x1   :  { %17 = vsyncpa [#allocation6], 0 }
   0x2   :  { %18 = vsyncpa [#allocation9], 0 }
   0x3   :  { %19 = vsyncpa [#allocation12], 0 }
   0x4   :  { %20 = vsyncpa [#allocation15], 0 }
   0x5   :  { %21 = vsyncpa [#allocation18], 0 }
   0x6   :  { %22 = vsyncpa [#allocation4], 0  ;;  %s3868_s17 = smov [#allocation5]   ;;  %s3590_s21 = scalar_lea.hbm %s4130_s1, 102400 }
   0x7   :  { %s38_s18 = sshll.u32 %s3868_s17, 4  ;;  %p3591_p0 = scmp.ne.s32.totalorder %s4130_s1, %s3590_s21  ;;  %s39_s18 = int_to_ptr.vmem [resolvable:$true] %s38_s18 }
   0x8   :  { %p3594_p1 = scmp.lt.u32.totalorder %s3590_s21, %s4130_s1 }
   0xa   :  { %p3596_p2 = pnand %p3594_p1, %p3591_p0 }
   0xc   :  { %3599 = shalt.err (!%p3596_p2)
}
   0xd   :  { %s3600_s26 = scalar_lea.vmem %s39_s18, 102400  ;;  %p3605_p4 = scmp.lt.s32.totalorder %s39_s18, %s39_s18 }
   0xe   :  { %p3601_p3 = scmp.ne.s32.totalorder %s39_s18, %s3600_s26  ;;  %p3606_p5 = scmp.lt.s32.totalorder %s3600_s26, %s3600_s26 }
  0x10   :  { %p3607_p6 = por %p3606_p5, %p3605_p4 }
  0x12   :  { %p3608_p7 = pnand %p3607_p6, %p3601_p3 }
  0x14   :  { %3611 = shalt.err (!%p3608_p7)
}
  0x15   :  { %s3869_s27 = smov 512   ;;  %s3870_s28 = smov 32  }
  0x16   :  { %44 = dma.hbm_to_vmem [thread:$0]  %s4130_s1, 102400, %s39_s18, [#allocation6], %s3869_s27, %s3869_s27, %s3870_s28  }
  0x17   :  { %s3871_s12 = smov [#allocation8]   ;;  %s3612_s16 = scalar_lea.hbm %s4132_s3, 8192 }
  0x18   :  { %s60_s13 = sshll.u32 %s3871_s12, 4  ;;  %p3613_p8 = scmp.ne.s32.totalorder %s4132_s3, %s3612_s16  ;;  %s61_s13 = int_to_ptr.vmem [resolvable:$true] %s60_s13 }
  0x19   :  { %p3616_p9 = scmp.lt.u32.totalorder %s3612_s16, %s4132_s3 }
  0x1b   :  { %p3618_p10 = pnand %p3616_p9, %p3613_p8 }
  0x1d   :  { %3621 = shalt.err (!%p3618_p10)
}
  0x1e   :  { %s3622_s22 = scalar_lea.vmem %s61_s13, 8192  ;;  %p3627_p12 = scmp.lt.s32.totalorder %s61_s13, %s61_s13 }
  0x1f   :  { %p3623_p11 = scmp.ne.s32.totalorder %s61_s13, %s3622_s22  ;;  %p3628_p13 = scmp.lt.s32.totalorder %s3622_s22, %s3622_s22 }
  0x21   :  { %p3629_p0 = por %p3628_p13, %p3627_p12 }
  0x23   :  { %p3630_p1 = pnand %p3629_p0, %p3623_p11 }
  0x25   :  { %3633 = shalt.err (!%p3630_p1)
}
  0x26   :  { %s3872_s1 = smov 128   ;;  %s3873_s18 = smov 8  }
  0x27   :  { %66 = dma.hbm_to_vmem [thread:$0]  %s4132_s3, 8192, %s61_s13, [#allocation9], %s3872_s1, %s3872_s1, %s3873_s18  }
  0x28   :  { %s3874_s25 = smov [#allocation11]   ;;  %s3875_s27 = smov [#allocation14]  }
  0x29   :  { %s82_s26 = sshll.u32 %s3874_s25, 4  ;;  %s104_s28 = sshll.u32 %s3875_s27, 4  ;;  %s83_s26 = int_to_ptr.vmem [resolvable:$true] %s82_s26  ;;  %s3974_s28 = int_to_ptr.vmem [resolvable:$true] %s104_s28 }
  0x2a   :  { %s3634_s12 = scalar_lea.hbm %s4134_s5, 2048 }
  0x2b   :  { %p3635_p2 = scmp.ne.s32.totalorder %s4134_s5, %s3634_s12  ;;  %p3638_p3 = scmp.lt.u32.totalorder %s3634_s12, %s4134_s5 }
  0x2d   :  { %p3640_p4 = pnand %p3638_p3, %p3635_p2 }
  0x2f   :  { %3643 = shalt.err (!%p3640_p4)
}
  0x30   :  { %s3644_s3 = scalar_lea.vmem %s83_s26, 2048  ;;  %p3649_p6 = scmp.lt.s32.totalorder %s83_s26, %s83_s26 }
  0x31   :  { %p3645_p5 = scmp.ne.s32.totalorder %s83_s26, %s3644_s3  ;;  %p3650_p7 = scmp.lt.s32.totalorder %s3644_s3, %s3644_s3 }
  0x33   :  { %p3651_p8 = por %p3650_p7, %p3649_p6 }
  0x35   :  { %p3652_p9 = pnand %p3651_p8, %p3645_p5 }
  0x37   :  { %3655 = shalt.err (!%p3652_p9)
}
  0x38   :  { %88 = dma.hbm_to_vmem [thread:$0]  %s4134_s5, 2048, %s83_s26, [#allocation12], %s3872_s1, %s3872_s1, %s3873_s18  }
  0x39   :  { %s3656_s22 = scalar_lea.hbm %s4136_s7, 2048 }
  0x3a   :  { %p3657_p10 = scmp.ne.s32.totalorder %s4136_s7, %s3656_s22  ;;  %p3660_p11 = scmp.lt.u32.totalorder %s3656_s22, %s4136_s7 }
  0x3c   :  { %p3662_p12 = pnand %p3660_p11, %p3657_p10 }
  0x3e   :  { %3665 = shalt.err (!%p3662_p12)
}
  0x3f   :  { %s3666_s29 = scalar_lea.vmem %s3974_s28, 2048  ;;  %p3671_p0 = scmp.lt.s32.totalorder %s3974_s28, %s3974_s28 }
  0x40   :  { %p3667_p13 = scmp.ne.s32.totalorder %s3974_s28, %s3666_s29  ;;  %p3672_p1 = scmp.lt.s32.totalorder %s3666_s29, %s3666_s29 }
  0x42   :  { %p3673_p2 = por %p3672_p1, %p3671_p0 }
  0x44   :  { %p3674_p3 = pnand %p3673_p2, %p3667_p13 }
  0x46   :  { %3677 = shalt.err (!%p3674_p3)
}
  0x47   :  { %110 = dma.hbm_to_vmem [thread:$0]  %s4136_s7, 2048, %s3974_s28, [#allocation15], %s3872_s1, %s3872_s1, %s3873_s18  }
  0x48   :  { %s3876_s30 = smov [#allocation17]   ;;  %s3877_s14 = smov [#allocation2]  }
  0x49   :  { %s127_s12 = sshll.u32 %s3876_s30, 4  ;;  %s29_s15 = sshll.u32 %s3877_s14, 4  ;;  %s128_s12 = int_to_ptr.vmem [resolvable:$true] %s127_s12  ;;  %s30_s15 = int_to_ptr.vmem [resolvable:$true] %s29_s15 }
  0x4a   :  { %s3678_s3 = scalar_lea.hbm %s4138_s9, 16 }
  0x4b   :  { %p3679_p4 = scmp.ne.s32.totalorder %s4138_s9, %s3678_s3  ;;  %p3682_p5 = scmp.lt.u32.totalorder %s3678_s3, %s4138_s9 }
  0x4d   :  { %p3684_p6 = pnand %p3682_p5, %p3679_p4 }
  0x4f   :  { %3687 = shalt.err (!%p3684_p6)
}
  0x50   :  { %s3688_s7 = scalar_lea.vmem %s128_s12, 16  ;;  %s3692_s1 = scalar_lea.vmem %s128_s12, 32 }
  0x51   :  { %p3689_p7 = scmp.ne.s32.totalorder %s128_s12, %s3688_s7  ;;  %p3693_p8 = scmp.lt.s32.totalorder %s128_s12, %s128_s12 }
  0x52   :  { %p3694_p9 = scmp.lt.s32.totalorder %s3692_s1, %s3688_s7 }
  0x54   :  { %p3695_p10 = por %p3694_p9, %p3693_p8 }
  0x56   :  { %p3696_p11 = pnand %p3695_p10, %p3689_p7 }
  0x58   :  { %3699 = shalt.err (!%p3696_p11)
}
  0x59   :  { %130 = dma.hbm_to_vmem [thread:$0]  %s4138_s9, 16, %s128_s12, [#allocation18]  }
  0x5a   :  { %s3700_s24 = scalar_lea.hbm %s4129_s0, 1664 }
  0x5b   :  { %p3701_p12 = scmp.ne.s32.totalorder %s4129_s0, %s3700_s24  ;;  %p3704_p13 = scmp.lt.u32.totalorder %s3700_s24, %s4129_s0 }
  0x5d   :  { %p3706_p0 = pnand %p3704_p13, %p3701_p12 }
  0x5f   :  { %3709 = shalt.err (!%p3706_p0)
}
  0x60   :  { %s3710_s26 = scalar_lea.vmem %s30_s15, 1664  ;;  %p3715_p2 = scmp.lt.s32.totalorder %s30_s15, %s30_s15 }
  0x61   :  { %p3711_p1 = scmp.ne.s32.totalorder %s30_s15, %s3710_s26  ;;  %p3716_p3 = scmp.lt.s32.totalorder %s3710_s26, %s3710_s26 }
  0x63   :  { %p3717_p4 = por %p3716_p3, %p3715_p2 }
  0x65   :  { %p3718_p5 = pnand %p3717_p4, %p3711_p1 }
  0x67   :  { %3721 = shalt.err (!%p3718_p5)
}
  0x68   :  { %32 = dma.hbm_to_vmem [thread:$0]  %s4129_s0, 1664, %s30_s15, [#allocation3]  }
  0x69   :  { %s3878_s12 = smov [#allocation7]   ;;  %s3879_s16 = smov [#allocation10]  }
  0x6a   :  { %s51_s14 = sshll.u32 %s3878_s12, 4  ;;  %s73_s17 = sshll.u32 %s3879_s16, 4  ;;  %s52_s14 = int_to_ptr.vmem [resolvable:$true] %s51_s14  ;;  %s74_s17 = int_to_ptr.vmem [resolvable:$true] %s73_s17 }
  0x6b   :  { %s3722_s19 = scalar_lea.hbm %s4131_s2, 64 }
  0x6c   :  { %p3723_p6 = scmp.ne.s32.totalorder %s4131_s2, %s3722_s19  ;;  %p3726_p7 = scmp.lt.u32.totalorder %s3722_s19, %s4131_s2 }
  0x6e   :  { %p3728_p8 = pnand %p3726_p7, %p3723_p6 }
  0x70   :  { %3731 = shalt.err (!%p3728_p8)
}
  0x71   :  { %s3732_s0 = scalar_lea.vmem %s52_s14, 64  ;;  %p3737_p10 = scmp.lt.s32.totalorder %s52_s14, %s52_s14 }
  0x72   :  { %p3733_p9 = scmp.ne.s32.totalorder %s52_s14, %s3732_s0  ;;  %p3738_p11 = scmp.lt.s32.totalorder %s3732_s0, %s3732_s0 }
  0x74   :  { %p3739_p12 = por %p3738_p11, %p3737_p10 }
  0x76   :  { %p3740_p13 = pnand %p3739_p12, %p3733_p9 }
  0x78   :  { %3743 = shalt.err (!%p3740_p13)
}
  0x79   :  { %54 = dma.hbm_to_vmem [thread:$0]  %s4131_s2, 64, %s52_s14, [#allocation6]  }
  0x7a   :  { %s3744_s23 = scalar_lea.hbm %s4133_s4, 16 }
  0x7b   :  { %p3745_p0 = scmp.ne.s32.totalorder %s4133_s4, %s3744_s23  ;;  %p3748_p1 = scmp.lt.u32.totalorder %s3744_s23, %s4133_s4 }
  0x7d   :  { %p3750_p2 = pnand %p3748_p1, %p3745_p0 }
  0x7f   :  { %3753 = shalt.err (!%p3750_p2)
}
  0x80   :  { %s3754_s5 = scalar_lea.vmem %s74_s17, 16  ;;  %s3758_s26 = scalar_lea.vmem %s74_s17, 32 }
  0x81   :  { %p3755_p3 = scmp.ne.s32.totalorder %s74_s17, %s3754_s5  ;;  %p3759_p4 = scmp.lt.s32.totalorder %s74_s17, %s74_s17 }
  0x82   :  { %p3760_p5 = scmp.lt.s32.totalorder %s3758_s26, %s3754_s5 }
  0x84   :  { %p3761_p6 = por %p3760_p5, %p3759_p4 }
  0x86   :  { %p3762_p7 = pnand %p3761_p6, %p3755_p3 }
  0x88   :  { %3765 = shalt.err (!%p3762_p7)
}
  0x89   :  { %76 = dma.hbm_to_vmem [thread:$0]  %s4133_s4, 16, %s74_s17, [#allocation9]  }
  0x8a   :  { %s3880_s30 = smov [#allocation13]   ;;  %s3881_s14 = smov [#allocation16]  }
  0x8b   :  { %s95_s12 = sshll.u32 %s3880_s30, 4  ;;  %s117_s16 = sshll.u32 %s3881_s14, 4  ;;  %s96_s12 = int_to_ptr.vmem [resolvable:$true] %s95_s12  ;;  %s118_s16 = int_to_ptr.vmem [resolvable:$true] %s117_s16 }
  0x8c   :  { %s3766_s19 = scalar_lea.hbm %s4135_s6, 16 }
  0x8d   :  { %p3767_p8 = scmp.ne.s32.totalorder %s4135_s6, %s3766_s19  ;;  %p3770_p9 = scmp.lt.u32.totalorder %s3766_s19, %s4135_s6 }
  0x8f   :  { %p3772_p10 = pnand %p3770_p9, %p3767_p8 }
  0x91   :  { %3775 = shalt.err (!%p3772_p10)
}
  0x92   :  { %s3776_s4 = scalar_lea.vmem %s96_s12, 16  ;;  %s3780_s17 = scalar_lea.vmem %s96_s12, 32 }
  0x93   :  { %p3777_p11 = scmp.ne.s32.totalorder %s96_s12, %s3776_s4  ;;  %p3781_p12 = scmp.lt.s32.totalorder %s96_s12, %s96_s12 }
  0x94   :  { %p3782_p13 = scmp.lt.s32.totalorder %s3780_s17, %s3776_s4 }
  0x96   :  { %p3783_p0 = por %p3782_p13, %p3781_p12 }
  0x98   :  { %p3784_p1 = pnand %p3783_p0, %p3777_p11 }
  0x9a   :  { %3787 = shalt.err (!%p3784_p1)
}
  0x9b   :  { %98 = dma.hbm_to_vmem [thread:$0]  %s4135_s6, 16, %s96_s12, [#allocation12]  }
  0x9c   :  { %s3788_s22 = scalar_lea.hbm %s4137_s8, 16 }
  0x9d   :  { %p3789_p2 = scmp.ne.s32.totalorder %s4137_s8, %s3788_s22  ;;  %p3792_p3 = scmp.lt.u32.totalorder %s3788_s22, %s4137_s8 }
  0x9f   :  { %p3794_p4 = pnand %p3792_p3, %p3789_p2 }
  0xa1   :  { %3797 = shalt.err (!%p3794_p4)
}
  0xa2   :  { %s3798_s29 = scalar_lea.vmem %s118_s16, 16  ;;  %s3802_s5 = scalar_lea.vmem %s118_s16, 32 }
  0xa3   :  { %p3799_p5 = scmp.ne.s32.totalorder %s118_s16, %s3798_s29  ;;  %p3803_p6 = scmp.lt.s32.totalorder %s118_s16, %s118_s16 }
  0xa4   :  { %p3804_p7 = scmp.lt.s32.totalorder %s3802_s5, %s3798_s29 }
  0xa6   :  { %p3805_p8 = por %p3804_p7, %p3803_p6 }
  0xa8   :  { %p3806_p9 = pnand %p3805_p8, %p3799_p5 }
  0xaa   :  { %3809 = shalt.err (!%p3806_p9)
}
  0xab   :  { %120 = dma.hbm_to_vmem [thread:$0]  %s4137_s8, 16, %s118_s16, [#allocation15]  }
  0xac   :  { %s3882_s2 = smov [#allocation19]   ;;  %s3810_s14 = scalar_lea.hbm %s4139_s10, 16 }
  0xad   :  { %s137_s9 = sshll.u32 %s3882_s2, 4  ;;  %p3811_p10 = scmp.ne.s32.totalorder %s4139_s10, %s3810_s14  ;;  %s138_s9 = int_to_ptr.vmem [resolvable:$true] %s137_s9 }
  0xae   :  { %p3814_p11 = scmp.lt.u32.totalorder %s3810_s14, %s4139_s10 }
  0xb0   :  { %p3816_p12 = pnand %p3814_p11, %p3811_p10 }
  0xb2   :  { %3819 = shalt.err (!%p3816_p12)
}
  0xb3   :  { %s3820_s21 = scalar_lea.vmem %s138_s9, 16  ;;  %s3824_s8 = scalar_lea.vmem %s138_s9, 32 }
  0xb4   :  { %p3821_p13 = scmp.ne.s32.totalorder %s138_s9, %s3820_s21  ;;  %p3825_p0 = scmp.lt.s32.totalorder %s138_s9, %s138_s9 }
  0xb5   :  { %p3826_p1 = scmp.lt.s32.totalorder %s3824_s8, %s3820_s21 }
  0xb7   :  { %p3827_p2 = por %p3826_p1, %p3825_p0 }
  0xb9   :  { %p3828_p3 = pnand %p3827_p2, %p3821_p13 }
  0xbb   :  { %3831 = shalt.err (!%p3828_p3)
}
  0xbc   :  { %140 = dma.hbm_to_vmem [thread:$0]  %s4139_s10, 16, %s138_s9, [#allocation18]  }
  0xbd   :  { %3854 = dma.done.wait [#allocation3], 1664  }
  0xbe   :  { %3855 = vsyncadd [#allocation3], 4294965632 }
  0xbf   :  { %3856 = dma.done.wait [#allocation6], 102464  }
  0xc0   :  { %3857 = vsyncadd [#allocation6], 4294864832 }
  0xc1   :  { %3858 = dma.done.wait [#allocation9], 8208  }
  0xc2   :  { %3859 = vsyncadd [#allocation9], 4294959088 }
  0xc3   :  { %3860 = dma.done.wait [#allocation12], 2064  }
  0xc4   :  { %3861 = vsyncadd [#allocation12], 4294965232 }
  0xc5   :  { %3862 = dma.done.wait [#allocation15], 2064  }
  0xc6   :  { %3863 = vsyncadd [#allocation15], 4294965232 }
  0xc7   :  { %3864 = dma.done.wait [#allocation18], 32  }
  0xc8   :  { %3865 = vsyncadd [#allocation18], 4294967264  ;;  %v188_v0 = vld [vmem:[#allocation5 + $0x8] sm:$0xff]  ;;  %v190_v2 = vld [vmem:[#allocation5 + $0x18] sm:$0xff]  ;;  %vm1009_vm0 = vcmask 523264   ;;  %vm3885_vm1 = vmmov 0  }
  0xc9   :  { %v192_v1 = vld [vmem:[#allocation5 + $0x28] sm:$0xff]  ;;  %v194_v4 = vld [vmem:[#allocation5 + $0x38] sm:$0xff]  ;;  %v187_v5 = vld [vmem:[#allocation5] sm:$0xff]  ;;  %s3886_s10 = smov [#allocation20]  }
  0xca   :  { %v2629_v3 = vpack.c.bf16 %v192_v1, %v188_v0  ;;  %v191_v6 = vld [vmem:[#allocation5 + $0x20] sm:$0xff]  ;;  %v3029_v7 = vpack.c.bf16 %v194_v4, %v190_v2  ;;  %v189_v9 = vld [vmem:[#allocation5 + $0x10] sm:$0xff]  ;;  %v196_v11 = vld [vmem:[#allocation5 + $0x48] sm:$0xff]  ;;  %s2434_s1 = sshll.u32 %s3886_s10, 4  ;;  %s2435_s1 = int_to_ptr.vmem [resolvable:$true] %s2434_s1 }
  0xcb   :  { %v2631_v8 = vpack.c.bf16 %v191_v6, %v187_v5  ;;  %v193_v10 = vld [vmem:[#allocation5 + $0x30] sm:$0xff]  ;;  %v200_v13 = vld [vmem:[#allocation5 + $0x68] sm:$0xff]  ;;  %v198_v14 = vld [vmem:[#allocation5 + $0x58] sm:$0xff]  ;;  %s3832_s4 = scalar_lea.vmem %s2435_s1, 128  ;;  %p3837_p5 = scmp.lt.s32.totalorder %s2435_s1, %s2435_s1 }
  0xcc   :  { %2630 = vmatprep.subr.bf16.mxu0 %v2629_v3  ;;  %v3031_v12 = vpack.c.bf16 %v193_v10, %v189_v9  ;;  %v202_v15 = vld [vmem:[#allocation5 + $0x78] sm:$0xff]  ;;  %3030 = vmatprep.subr.bf16.mxu1 %v3029_v7  ;;  %v2633_v16 = vpack.c.bf16 %v200_v13, %v196_v11  ;;  %v195_v18 = vld [vmem:[#allocation5 + $0x40] sm:$0xff]  ;;  %v197_v20 = vld [vmem:[#allocation5 + $0x50] sm:$0xff]  ;;  %p3833_p4 = scmp.ne.s32.totalorder %s2435_s1, %s3832_s4  ;;  %p3838_p6 = scmp.lt.s32.totalorder %s3832_s4, %s3832_s4 }
  0xcd   :  { %2632 = vmatpush1.bf16.msra.mxu0 %v2631_v8  ;;  %v3033_v17 = vpack.c.bf16 %v202_v15, %v198_v14  ;;  %v199_v19 = vld [vmem:[#allocation5 + $0x60] sm:$0xff]  ;;  %v201_v22 = vld [vmem:[#allocation5 + $0x70] sm:$0xff]  ;;  %v204_v23 = vld [vmem:[#allocation5 + $0x88] sm:$0xff] }
  0xce   :  { %3032 = vmatpush1.bf16.msra.mxu1 %v3031_v12  ;;  %v2635_v21 = vpack.c.bf16 %v199_v19, %v195_v18  ;;  %v208_v24 = vld [vmem:[#allocation5 + $0xa8] sm:$0xff]  ;;  %2634 = vmatprep.subr.bf16.mxu0 %v2633_v16  ;;  %v3035_v25 = vpack.c.bf16 %v201_v22, %v197_v20  ;;  %v206_v27 = vld [vmem:[#allocation5 + $0x98] sm:$0xff]  ;;  %v203_v29 = vld [vmem:[#allocation5 + $0x80] sm:$0xff]  ;;  %p3839_p7 = por %p3838_p6, %p3837_p5 }
  0xcf   :  { %3034 = vmatprep.subr.bf16.mxu1 %v3033_v17  ;;  %v2637_v26 = vpack.c.bf16 %v208_v24, %v204_v23  ;;  %v210_v28 = vld [vmem:[#allocation5 + $0xb8] sm:$0xff]  ;;  %v207_v31 = vld [vmem:[#allocation5 + $0xa0] sm:$0xff]  ;;  %v205_v32 = vld [vmem:[#allocation5 + $0x90] sm:$0xff] }
  0xd0   :  { %v3037_v30 = vpack.c.bf16 %v210_v28, %v206_v27  ;;  %v209_v33 = vld [vmem:[#allocation5 + $0xb0] sm:$0xff]  ;;  %v2639_v34 = vpack.c.bf16 %v207_v31, %v203_v29  ;;  %v212_v35 = vld [vmem:[#allocation5 + $0xc8] sm:$0xff]  ;;  %v214_v37 = vld [vmem:[#allocation5 + $0xd8] sm:$0xff]  ;;  %p3840_p8 = pnand %p3839_p7, %p3833_p4 }
  0xd1   :  { %2636 = vmatpush1.bf16.msra.mxu0 %v2635_v21  ;;  %v216_v36 = vld [vmem:[#allocation5 + $0xe8] sm:$0xff]  ;;  %v3039_v38 = vpack.c.bf16 %v209_v33, %v205_v32  ;;  %v218_v40 = vld [vmem:[#allocation5 + $0xf8] sm:$0xff]  ;;  %v211_v41 = vld [vmem:[#allocation5 + $0xc0] sm:$0xff] }
  0xd2   :  { %3036 = vmatpush1.bf16.msra.mxu1 %v3035_v25  ;;  %2638 = vmatprep.subr.bf16.mxu0 %v2637_v26  ;;  %v2641_v39 = vpack.c.bf16 %v216_v36, %v212_v35  ;;  %v215_v42 = vld [vmem:[#allocation5 + $0xe0] sm:$0xff]  ;;  %v3041_v43 = vpack.c.bf16 %v218_v40, %v214_v37  ;;  %v213_v44 = vld [vmem:[#allocation5 + $0xd0] sm:$0xff]  ;;  %v220_v46 = vld [vmem:[#allocation5 + $0x108] sm:$0xff] }
  0xd3   :  { %3038 = vmatprep.subr.bf16.mxu1 %v3037_v30  ;;  %v217_v45 = vld [vmem:[#allocation5 + $0xf0] sm:$0xff]  ;;  %v224_v47 = vld [vmem:[#allocation5 + $0x128] sm:$0xff]  ;;  %v222_v48 = vld [vmem:[#allocation5 + $0x118] sm:$0xff]  ;;  %v2643_v50 = vpack.c.bf16 %v215_v42, %v211_v41 }
  0xd4   :  { %v226_v49 = vld [vmem:[#allocation5 + $0x138] sm:$0xff]  ;;  %v3043_v51 = vpack.c.bf16 %v217_v45, %v213_v44  ;;  %v2645_v52 = vpack.c.bf16 %v224_v47, %v220_v46  ;;  %v219_v53 = vld [vmem:[#allocation5 + $0x100] sm:$0xff]  ;;  %v221_v55 = vld [vmem:[#allocation5 + $0x110] sm:$0xff] }
  0xd5   :  { %2640 = vmatpush1.bf16.msra.mxu0 %v2639_v34  ;;  %v223_v54 = vld [vmem:[#allocation5 + $0x120] sm:$0xff]  ;;  %v3045_v56 = vpack.c.bf16 %v226_v49, %v222_v48  ;;  %v225_v57 = vld [vmem:[#allocation5 + $0x130] sm:$0xff]  ;;  %v228_v58 = vld [vmem:[#allocation5 + $0x148] sm:$0xff] }
  0xd6   :  { %3040 = vmatpush1.bf16.msra.mxu1 %v3039_v38  ;;  %2642 = vmatprep.subr.bf16.mxu0 %v2641_v39  ;;  %v232_v59 = vld [vmem:[#allocation5 + $0x168] sm:$0xff]  ;;  %v230_v60 = vld [vmem:[#allocation5 + $0x158] sm:$0xff]  ;;  %v2647_v62 = vpack.c.bf16 %v223_v54, %v219_v53  ;;  %v3047_v63 = vpack.c.bf16 %v225_v57, %v221_v55  ;;  %v227_v1 = vld [vmem:[#allocation5 + $0x140] sm:$0xff] }
  0xd7   :  { %3042 = vmatprep.subr.bf16.mxu1 %v3041_v43  ;;  %v234_v61 = vld [vmem:[#allocation5 + $0x178] sm:$0xff]  ;;  %v2649_v0 = vpack.c.bf16 %v232_v59, %v228_v58  ;;  %v231_v2 = vld [vmem:[#allocation5 + $0x160] sm:$0xff]  ;;  %v229_v3 = vld [vmem:[#allocation5 + $0x150] sm:$0xff] }
  0xd8   :  { %v3049_v4 = vpack.c.bf16 %v234_v61, %v230_v60  ;;  %v233_v5 = vld [vmem:[#allocation5 + $0x170] sm:$0xff]  ;;  %v236_v6 = vld [vmem:[#allocation5 + $0x188] sm:$0xff]  ;;  %v238_v8 = vld [vmem:[#allocation5 + $0x198] sm:$0xff]  ;;  %v2651_v10 = vpack.c.bf16 %v231_v2, %v227_v1 }
  0xd9   :  { %2644 = vmatpush1.bf16.msra.mxu0 %v2643_v50  ;;  %v240_v7 = vld [vmem:[#allocation5 + $0x1a8] sm:$0xff]  ;;  %v242_v9 = vld [vmem:[#allocation5 + $0x1b8] sm:$0xff]  ;;  %v3051_v11 = vpack.c.bf16 %v233_v5, %v229_v3  ;;  %v235_v13 = vld [vmem:[#allocation5 + $0x180] sm:$0xff] }
  0xda   :  { %3044 = vmatpush1.bf16.msra.mxu1 %v3043_v51  ;;  %2646 = vmatprep.subr.bf16.mxu0 %v2645_v52  ;;  %v2653_v12 = vpack.c.bf16 %v240_v7, %v236_v6  ;;  %v239_v14 = vld [vmem:[#allocation5 + $0x1a0] sm:$0xff]  ;;  %v237_v15 = vld [vmem:[#allocation5 + $0x190] sm:$0xff]  ;;  %v3053_v16 = vpack.c.bf16 %v242_v9, %v238_v8  ;;  %v244_v18 = vld [vmem:[#allocation5 + $0x1c8] sm:$0xff] }
  0xdb   :  { %3046 = vmatprep.subr.bf16.mxu1 %v3045_v56  ;;  %v241_v17 = vld [vmem:[#allocation5 + $0x1b0] sm:$0xff]  ;;  %v248_v19 = vld [vmem:[#allocation5 + $0x1e8] sm:$0xff]  ;;  %v246_v20 = vld [vmem:[#allocation5 + $0x1d8] sm:$0xff]  ;;  %v2655_v22 = vpack.c.bf16 %v239_v14, %v235_v13 }
  0xdc   :  { %v250_v21 = vld [vmem:[#allocation5 + $0x1f8] sm:$0xff]  ;;  %v3055_v23 = vpack.c.bf16 %v241_v17, %v237_v15  ;;  %v2657_v24 = vpack.c.bf16 %v248_v19, %v244_v18  ;;  %v243_v25 = vld [vmem:[#allocation5 + $0x1c0] sm:$0xff]  ;;  %v245_v27 = vld [vmem:[#allocation5 + $0x1d0] sm:$0xff] }
  0xdd   :  { %2648 = vmatpush1.bf16.msra.mxu0 %v2647_v62  ;;  %v247_v26 = vld [vmem:[#allocation5 + $0x1e0] sm:$0xff]  ;;  %v3057_v28 = vpack.c.bf16 %v250_v21, %v246_v20  ;;  %v249_v29 = vld [vmem:[#allocation5 + $0x1f0] sm:$0xff]  ;;  %v252_v30 = vld [vmem:[#allocation5 + $0x208] sm:$0xff] }
  0xde   :  { %3048 = vmatpush1.bf16.msra.mxu1 %v3047_v63  ;;  %2650 = vmatprep.subr.bf16.mxu0 %v2649_v0  ;;  %v256_v31 = vld [vmem:[#allocation5 + $0x228] sm:$0xff]  ;;  %v254_v32 = vld [vmem:[#allocation5 + $0x218] sm:$0xff]  ;;  %v2659_v34 = vpack.c.bf16 %v247_v26, %v243_v25  ;;  %v3059_v35 = vpack.c.bf16 %v249_v29, %v245_v27  ;;  %v251_v37 = vld [vmem:[#allocation5 + $0x200] sm:$0xff] }
  0xdf   :  { %3050 = vmatprep.subr.bf16.mxu1 %v3049_v4  ;;  %v258_v33 = vld [vmem:[#allocation5 + $0x238] sm:$0xff]  ;;  %v2661_v36 = vpack.c.bf16 %v256_v31, %v252_v30  ;;  %v255_v38 = vld [vmem:[#allocation5 + $0x220] sm:$0xff]  ;;  %v253_v39 = vld [vmem:[#allocation5 + $0x210] sm:$0xff] }
  0xe0   :  { %v3061_v40 = vpack.c.bf16 %v258_v33, %v254_v32  ;;  %v257_v41 = vld [vmem:[#allocation5 + $0x230] sm:$0xff]  ;;  %v260_v42 = vld [vmem:[#allocation5 + $0x248] sm:$0xff]  ;;  %v262_v44 = vld [vmem:[#allocation5 + $0x258] sm:$0xff]  ;;  %v2663_v46 = vpack.c.bf16 %v255_v38, %v251_v37 }
  0xe1   :  { %2652 = vmatpush1.bf16.msra.mxu0 %v2651_v10  ;;  %v264_v43 = vld [vmem:[#allocation5 + $0x268] sm:$0xff]  ;;  %v266_v45 = vld [vmem:[#allocation5 + $0x278] sm:$0xff]  ;;  %v3063_v47 = vpack.c.bf16 %v257_v41, %v253_v39  ;;  %v259_v49 = vld [vmem:[#allocation5 + $0x240] sm:$0xff] }
  0xe2   :  { %3052 = vmatpush1.bf16.msra.mxu1 %v3051_v11  ;;  %2654 = vmatprep.subr.bf16.mxu0 %v2653_v12  ;;  %v2665_v48 = vpack.c.bf16 %v264_v43, %v260_v42  ;;  %v263_v50 = vld [vmem:[#allocation5 + $0x260] sm:$0xff]  ;;  %v261_v51 = vld [vmem:[#allocation5 + $0x250] sm:$0xff]  ;;  %v3065_v52 = vpack.c.bf16 %v266_v45, %v262_v44  ;;  %v268_v54 = vld [vmem:[#allocation5 + $0x288] sm:$0xff] }
  0xe3   :  { %3054 = vmatprep.subr.bf16.mxu1 %v3053_v16  ;;  %v265_v53 = vld [vmem:[#allocation5 + $0x270] sm:$0xff]  ;;  %v272_v55 = vld [vmem:[#allocation5 + $0x2a8] sm:$0xff]  ;;  %v270_v56 = vld [vmem:[#allocation5 + $0x298] sm:$0xff]  ;;  %v2667_v58 = vpack.c.bf16 %v263_v50, %v259_v49 }
  0xe4   :  { %v274_v57 = vld [vmem:[#allocation5 + $0x2b8] sm:$0xff]  ;;  %v3067_v59 = vpack.c.bf16 %v265_v53, %v261_v51  ;;  %v2669_v60 = vpack.c.bf16 %v272_v55, %v268_v54  ;;  %v267_v61 = vld [vmem:[#allocation5 + $0x280] sm:$0xff]  ;;  %v269_v63 = vld [vmem:[#allocation5 + $0x290] sm:$0xff] }
  0xe5   :  { %2656 = vmatpush1.bf16.msra.mxu0 %v2655_v22  ;;  %v271_v62 = vld [vmem:[#allocation5 + $0x2a0] sm:$0xff]  ;;  %v3069_v0 = vpack.c.bf16 %v274_v57, %v270_v56  ;;  %v273_v1 = vld [vmem:[#allocation5 + $0x2b0] sm:$0xff]  ;;  %v276_v2 = vld [vmem:[#allocation5 + $0x2c8] sm:$0xff] }
  0xe6   :  { %3056 = vmatpush1.bf16.msra.mxu1 %v3055_v23  ;;  %2658 = vmatprep.subr.bf16.mxu0 %v2657_v24  ;;  %v280_v3 = vld [vmem:[#allocation5 + $0x2e8] sm:$0xff]  ;;  %v278_v4 = vld [vmem:[#allocation5 + $0x2d8] sm:$0xff]  ;;  %v2671_v6 = vpack.c.bf16 %v271_v62, %v267_v61  ;;  %v275_v7 = vld [vmem:[#allocation5 + $0x2c0] sm:$0xff]  ;;  %v3071_v8 = vpack.c.bf16 %v273_v1, %v269_v63 }
  0xe7   :  { %3058 = vmatprep.subr.bf16.mxu1 %v3057_v28  ;;  %v282_v5 = vld [vmem:[#allocation5 + $0x2f8] sm:$0xff]  ;;  %v2673_v9 = vpack.c.bf16 %v280_v3, %v276_v2  ;;  %v279_v10 = vld [vmem:[#allocation5 + $0x2e0] sm:$0xff]  ;;  %v277_v11 = vld [vmem:[#allocation5 + $0x2d0] sm:$0xff] }
  0xe8   :  { %v281_v12 = vld [vmem:[#allocation5 + $0x2f0] sm:$0xff]  ;;  %v3073_v13 = vpack.c.bf16 %v282_v5, %v278_v4  ;;  %v284_v14 = vld [vmem:[#allocation5 + $0x308] sm:$0xff]  ;;  %v175_v16 = vld [vmem:[#allocation2 + $0x8] sm:$0xff]  ;;  %v2675_v19 = vpack.c.bf16 %v279_v10, %v275_v7 }
  0xe9   :  { %2660 = vmatpush1.bf16.msra.mxu0 %v2659_v34  ;;  %v288_v15 = vld [vmem:[#allocation5 + $0x328] sm:$0xff]  ;;  %v286_v17 = vld [vmem:[#allocation5 + $0x318] sm:$0xff]  ;;  %1077 = vmatprep.mubr.f32.mxu0 %v175_v16  ;;  %v3075_v20 = vpack.c.bf16 %v281_v12, %v277_v11  ;;  %v283_v22 = vld [vmem:[#allocation5 + $0x300] sm:$0xff] }
  0xea   :  { %3060 = vmatpush1.bf16.msra.mxu1 %v3059_v35  ;;  %2662 = vmatprep.subr.bf16.mxu0 %v2661_v36  ;;  %v290_v18 = vld [vmem:[#allocation5 + $0x338] sm:$0xff]  ;;  %v2677_v21 = vpack.c.bf16 %v288_v15, %v284_v14  ;;  %v287_v23 = vld [vmem:[#allocation5 + $0x320] sm:$0xff]  ;;  %v285_v24 = vld [vmem:[#allocation5 + $0x310] sm:$0xff] }
  0xeb   :  { %3062 = vmatprep.subr.bf16.mxu1 %v3061_v40  ;;  %1574 = vmatprep.mubr.f32.mxu1 %v175_v16  ;;  %v3077_v25 = vpack.c.bf16 %v290_v18, %v286_v17  ;;  %v289_v26 = vld [vmem:[#allocation5 + $0x330] sm:$0xff]  ;;  %v292_v27 = vld [vmem:[#allocation5 + $0x348] sm:$0xff]  ;;  %v294_v29 = vld [vmem:[#allocation5 + $0x358] sm:$0xff]  ;;  %v2679_v31 = vpack.c.bf16 %v287_v23, %v283_v22 }
  0xec   :  { %v296_v28 = vld [vmem:[#allocation5 + $0x368] sm:$0xff]  ;;  %v298_v30 = vld [vmem:[#allocation5 + $0x378] sm:$0xff]  ;;  %v3079_v32 = vpack.c.bf16 %v289_v26, %v285_v24  ;;  %v291_v34 = vld [vmem:[#allocation5 + $0x340] sm:$0xff] }
  0xed   :  { %2664 = vmatpush1.bf16.msra.mxu0 %v2663_v46  ;;  %v2681_v33 = vpack.c.bf16 %v296_v28, %v292_v27  ;;  %v295_v35 = vld [vmem:[#allocation5 + $0x360] sm:$0xff]  ;;  %v293_v36 = vld [vmem:[#allocation5 + $0x350] sm:$0xff]  ;;  %v3081_v37 = vpack.c.bf16 %v298_v30, %v294_v29  ;;  %v300_v39 = vld [vmem:[#allocation5 + $0x388] sm:$0xff] }
  0xee   :  { %3064 = vmatpush1.bf16.msra.mxu1 %v3063_v47  ;;  %2666 = vmatprep.subr.bf16.mxu0 %v2665_v48  ;;  %v297_v38 = vld [vmem:[#allocation5 + $0x370] sm:$0xff]  ;;  %v304_v40 = vld [vmem:[#allocation5 + $0x3a8] sm:$0xff]  ;;  %v302_v41 = vld [vmem:[#allocation5 + $0x398] sm:$0xff]  ;;  %v2683_v43 = vpack.c.bf16 %v295_v35, %v291_v34 }
  0xef   :  { %3066 = vmatprep.subr.bf16.mxu1 %v3065_v52  ;;  %v306_v42 = vld [vmem:[#allocation5 + $0x3b8] sm:$0xff]  ;;  %v3083_v44 = vpack.c.bf16 %v297_v38, %v293_v36  ;;  %v2685_v45 = vpack.c.bf16 %v304_v40, %v300_v39  ;;  %v299_v46 = vld [vmem:[#allocation5 + $0x380] sm:$0xff]  ;;  %v301_v48 = vld [vmem:[#allocation5 + $0x390] sm:$0xff] }
  0xf0   :  { %v303_v47 = vld [vmem:[#allocation5 + $0x3a0] sm:$0xff]  ;;  %v3085_v49 = vpack.c.bf16 %v306_v42, %v302_v41  ;;  %v305_v50 = vld [vmem:[#allocation5 + $0x3b0] sm:$0xff]  ;;  %v308_v51 = vld [vmem:[#allocation5 + $0x3c8] sm:$0xff] }
  0xf1   :  { %2668 = vmatpush1.bf16.msra.mxu0 %v2667_v58  ;;  %v312_v52 = vld [vmem:[#allocation5 + $0x3e8] sm:$0xff]  ;;  %v310_v53 = vld [vmem:[#allocation5 + $0x3d8] sm:$0xff]  ;;  %v2687_v55 = vpack.c.bf16 %v303_v47, %v299_v46  ;;  %v3087_v56 = vpack.c.bf16 %v305_v50, %v301_v48  ;;  %v307_v58 = vld [vmem:[#allocation5 + $0x3c0] sm:$0xff] }
  0xf2   :  { %3068 = vmatpush1.bf16.msra.mxu1 %v3067_v59  ;;  %2670 = vmatprep.subr.bf16.mxu0 %v2669_v60  ;;  %v314_v54 = vld [vmem:[#allocation5 + $0x3f8] sm:$0xff]  ;;  %v2689_v57 = vpack.c.bf16 %v312_v52, %v308_v51  ;;  %v311_v59 = vld [vmem:[#allocation5 + $0x3e0] sm:$0xff]  ;;  %v309_v60 = vld [vmem:[#allocation5 + $0x3d0] sm:$0xff] }
  0xf3   :  { %3070 = vmatprep.subr.bf16.mxu1 %v3069_v0  ;;  %v3089_v61 = vpack.c.bf16 %v314_v54, %v310_v53  ;;  %v313_v62 = vld [vmem:[#allocation5 + $0x3f0] sm:$0xff]  ;;  %v316_v63 = vld [vmem:[#allocation5 + $0x408] sm:$0xff]  ;;  %v318_v1 = vld [vmem:[#allocation5 + $0x418] sm:$0xff]  ;;  %v2691_v3 = vpack.c.bf16 %v311_v59, %v307_v58 }
  0xf4   :  { %v320_v0 = vld [vmem:[#allocation5 + $0x428] sm:$0xff]  ;;  %v322_v2 = vld [vmem:[#allocation5 + $0x438] sm:$0xff]  ;;  %v3091_v4 = vpack.c.bf16 %v313_v62, %v309_v60  ;;  %v319_v7 = vld [vmem:[#allocation5 + $0x420] sm:$0xff] }
  0xf5   :  { %2672 = vmatpush1.bf16.msra.mxu0 %v2671_v6  ;;  %v2693_v5 = vpack.c.bf16 %v320_v0, %v316_v63  ;;  %v315_v6 = vld [vmem:[#allocation5 + $0x400] sm:$0xff]  ;;  %v321_v10 = vld [vmem:[#allocation5 + $0x430] sm:$0xff]  ;;  %v324_v11 = vld [vmem:[#allocation5 + $0x448] sm:$0xff] }
  0xf6   :  { %3072 = vmatpush1.bf16.msra.mxu1 %v3071_v8  ;;  %2674 = vmatprep.subr.bf16.mxu0 %v2673_v9  ;;  %v317_v8 = vld [vmem:[#allocation5 + $0x410] sm:$0xff]  ;;  %v3093_v9 = vpack.c.bf16 %v322_v2, %v318_v1  ;;  %v328_v12 = vld [vmem:[#allocation5 + $0x468] sm:$0xff]  ;;  %v330_v14 = vld [vmem:[#allocation5 + $0x478] sm:$0xff]  ;;  %v2695_v16 = vpack.c.bf16 %v319_v7, %v315_v6 }
  0xf7   :  { %3074 = vmatprep.subr.bf16.mxu1 %v3073_v13  ;;  %v326_v13 = vld [vmem:[#allocation5 + $0x458] sm:$0xff]  ;;  %v3095_v17 = vpack.c.bf16 %v321_v10, %v317_v8  ;;  %v2697_v18 = vpack.c.bf16 %v328_v12, %v324_v11  ;;  %v329_v23 = vld [vmem:[#allocation5 + $0x470] sm:$0xff]  ;;  %v332_v24 = vld [vmem:[#allocation5 + $0x488] sm:$0xff] }
  0xf8   :  { %v174_v15 = vld [vmem:[#allocation2] sm:$0xff]  ;;  %v3097_v22 = vpack.c.bf16 %v330_v14, %v326_v13  ;;  %v337_v35 = vld [vmem:[#allocation5 + $0x4b0] sm:$0xff]  ;;  %v340_v36 = vld [vmem:[#allocation5 + $0x4c8] sm:$0xff] }
  0xf9   :  { %2676 = vmatpush1.bf16.msra.mxu0 %v2675_v19  ;;  %v323_v19 = vld [vmem:[#allocation5 + $0x440] sm:$0xff]  ;;  %v334_v26 = vld [vmem:[#allocation5 + $0x498] sm:$0xff]  ;;  %v345_v47 = vld [vmem:[#allocation5 + $0x4f0] sm:$0xff] }
  0xfa   :  { %3076 = vmatpush1.bf16.msra.mxu1 %v3075_v20  ;;  %2678 = vmatprep.subr.bf16.mxu0 %v2677_v21  ;;  %v327_v20 = vld [vmem:[#allocation5 + $0x460] sm:$0xff]  ;;  %v325_v21 = vld [vmem:[#allocation5 + $0x450] sm:$0xff]  ;;  %v338_v27 = vld [vmem:[#allocation5 + $0x4b8] sm:$0xff] }
  0xfb   :  { %3078 = vmatprep.subr.bf16.mxu1 %v3077_v25  ;;  %v336_v25 = vld [vmem:[#allocation5 + $0x4a8] sm:$0xff]  ;;  %v2699_v28 = vpack.c.bf16 %v327_v20, %v323_v19  ;;  %v3099_v29 = vpack.c.bf16 %v329_v23, %v325_v21  ;;  %v3101_v34 = vpack.c.bf16 %v338_v27, %v334_v26  ;;  %v342_v38 = vld [vmem:[#allocation5 + $0x4d8] sm:$0xff]  ;;  %v353_v59 = vld [vmem:[#allocation5 + $0x530] sm:$0xff] }
  0xfc   :  { %v2701_v30 = vpack.c.bf16 %v336_v25, %v332_v24  ;;  %v346_v39 = vld [vmem:[#allocation5 + $0x4f8] sm:$0xff]  ;;  %v348_v48 = vld [vmem:[#allocation5 + $0x508] sm:$0xff]  ;;  %v361_v7 = vld [vmem:[#allocation5 + $0x570] sm:$0xff] }
  0xfd   :  { %2680 = vmatpush1.bf16.msra.mxu0 %v2679_v31  ;;  %v331_v31 = vld [vmem:[#allocation5 + $0x480] sm:$0xff]  ;;  %v3105_v46 = vpack.c.bf16 %v346_v39, %v342_v38  ;;  %v350_v50 = vld [vmem:[#allocation5 + $0x518] sm:$0xff]  ;;  %v356_v60 = vld [vmem:[#allocation5 + $0x548] sm:$0xff] }
  0xfe   :  { %3080 = vmatpush1.bf16.msra.mxu1 %v3079_v32  ;;  %2682 = vmatprep.subr.bf16.mxu0 %v2681_v33  ;;  %v335_v32 = vld [vmem:[#allocation5 + $0x4a0] sm:$0xff]  ;;  %v333_v33 = vld [vmem:[#allocation5 + $0x490] sm:$0xff]  ;;  %v354_v51 = vld [vmem:[#allocation5 + $0x538] sm:$0xff] }
  0xff   :  { %3082 = vmatprep.subr.bf16.mxu1 %v3081_v37  ;;  %v344_v37 = vld [vmem:[#allocation5 + $0x4e8] sm:$0xff]  ;;  %v2703_v40 = vpack.c.bf16 %v335_v32, %v331_v31  ;;  %v3103_v41 = vpack.c.bf16 %v337_v35, %v333_v33  ;;  %v3109_v58 = vpack.c.bf16 %v354_v51, %v350_v50  ;;  %v358_v62 = vld [vmem:[#allocation5 + $0x558] sm:$0xff]  ;;  %v363_v13 = vld [vmem:[#allocation5 + $0x580] sm:$0xff] }
 0x100   :  { %v2705_v42 = vpack.c.bf16 %v344_v37, %v340_v36  ;;  %v362_v63 = vld [vmem:[#allocation5 + $0x578] sm:$0xff]  ;;  %v364_v8 = vld [vmem:[#allocation5 + $0x588] sm:$0xff]  ;;  %v377_v32 = vld [vmem:[#allocation5 + $0x5f0] sm:$0xff] }
 0x101   :  { %2684 = vmatpush1.bf16.msra.mxu0 %v2683_v43  ;;  %v339_v43 = vld [vmem:[#allocation5 + $0x4c0] sm:$0xff]  ;;  %v3113_v6 = vpack.c.bf16 %v362_v63, %v358_v62  ;;  %v366_v10 = vld [vmem:[#allocation5 + $0x598] sm:$0xff]  ;;  %v372_v20 = vld [vmem:[#allocation5 + $0x5c8] sm:$0xff] }
 0x102   :  { %3084 = vmatpush1.bf16.msra.mxu1 %v3083_v44  ;;  %2686 = vmatprep.subr.bf16.mxu0 %v2685_v45  ;;  %v343_v44 = vld [vmem:[#allocation5 + $0x4e0] sm:$0xff]  ;;  %v341_v45 = vld [vmem:[#allocation5 + $0x4d0] sm:$0xff]  ;;  %v370_v11 = vld [vmem:[#allocation5 + $0x5b8] sm:$0xff] }
 0x103   :  { %3086 = vmatprep.subr.bf16.mxu1 %v3085_v49  ;;  %v352_v49 = vld [vmem:[#allocation5 + $0x528] sm:$0xff]  ;;  %v2707_v52 = vpack.c.bf16 %v343_v44, %v339_v43  ;;  %v3107_v53 = vpack.c.bf16 %v345_v47, %v341_v45  ;;  %v3117_v19 = vpack.c.bf16 %v370_v11, %v366_v10  ;;  %v374_v23 = vld [vmem:[#allocation5 + $0x5d8] sm:$0xff]  ;;  %v385_v44 = vld [vmem:[#allocation5 + $0x630] sm:$0xff] }
 0x104   :  { %v2709_v54 = vpack.c.bf16 %v352_v49, %v348_v48  ;;  %v376_v21 = vld [vmem:[#allocation5 + $0x5e8] sm:$0xff]  ;;  %v378_v24 = vld [vmem:[#allocation5 + $0x5f8] sm:$0xff] }
 0x105   :  { %2688 = vmatpush1.bf16.msra.mxu0 %v2687_v55  ;;  %v347_v55 = vld [vmem:[#allocation5 + $0x500] sm:$0xff]  ;;  %v2721_v27 = vpack.c.bf16 %v376_v21, %v372_v20  ;;  %v3121_v31 = vpack.c.bf16 %v378_v24, %v374_v23  ;;  %v380_v33 = vld [vmem:[#allocation5 + $0x608] sm:$0xff]  ;;  %v382_v35 = vld [vmem:[#allocation5 + $0x618] sm:$0xff] }
 0x106   :  { %3088 = vmatpush1.bf16.msra.mxu1 %v3087_v56  ;;  %2690 = vmatprep.subr.bf16.mxu0 %v2689_v57  ;;  %v351_v56 = vld [vmem:[#allocation5 + $0x520] sm:$0xff]  ;;  %v349_v57 = vld [vmem:[#allocation5 + $0x510] sm:$0xff]  ;;  %v386_v36 = vld [vmem:[#allocation5 + $0x638] sm:$0xff] }
 0x107   :  { %3090 = vmatprep.subr.bf16.mxu1 %v3089_v61  ;;  %v360_v61 = vld [vmem:[#allocation5 + $0x568] sm:$0xff]  ;;  %v2711_v0 = vpack.c.bf16 %v351_v56, %v347_v55  ;;  %v3111_v1 = vpack.c.bf16 %v353_v59, %v349_v57  ;;  %v3125_v43 = vpack.c.bf16 %v386_v36, %v382_v35  ;;  %v390_v47 = vld [vmem:[#allocation5 + $0x658] sm:$0xff]  ;;  %v393_v56 = vld [vmem:[#allocation5 + $0x670] sm:$0xff] }
 0x108   :  { %v2713_v2 = vpack.c.bf16 %v360_v61, %v356_v60  ;;  %v388_v45 = vld [vmem:[#allocation5 + $0x648] sm:$0xff]  ;;  %v394_v48 = vld [vmem:[#allocation5 + $0x678] sm:$0xff]  ;;  %v411_v24 = vld [vmem:[#allocation5 + $0x700] sm:$0xff] }
 0x109   :  { %2692 = vmatpush1.bf16.msra.mxu0 %v2691_v3  ;;  %v355_v3 = vld [vmem:[#allocation5 + $0x540] sm:$0xff]  ;;  %v3129_v55 = vpack.c.bf16 %v394_v48, %v390_v47  ;;  %v396_v57 = vld [vmem:[#allocation5 + $0x688] sm:$0xff]  ;;  %v398_v59 = vld [vmem:[#allocation5 + $0x698] sm:$0xff] }
 0x10a   :  { %3092 = vmatpush1.bf16.msra.mxu1 %v3091_v4  ;;  %2694 = vmatprep.subr.bf16.mxu0 %v2693_v5  ;;  %v359_v4 = vld [vmem:[#allocation5 + $0x560] sm:$0xff]  ;;  %v357_v5 = vld [vmem:[#allocation5 + $0x550] sm:$0xff]  ;;  %v402_v60 = vld [vmem:[#allocation5 + $0x6b8] sm:$0xff] }
 0x10b   :  { %3094 = vmatprep.subr.bf16.mxu1 %v3093_v9  ;;  %v368_v9 = vld [vmem:[#allocation5 + $0x5a8] sm:$0xff]  ;;  %v2715_v12 = vpack.c.bf16 %v359_v4, %v355_v3  ;;  %v3115_v14 = vpack.c.bf16 %v361_v7, %v357_v5  ;;  %v3133_v3 = vpack.c.bf16 %v402_v60, %v398_v59  ;;  %v401_v4 = vld [vmem:[#allocation5 + $0x6b0] sm:$0xff]  ;;  %v406_v7 = vld [vmem:[#allocation5 + $0x6d8] sm:$0xff] }
 0x10c   :  { %1078 = vmatmul.mubr.f32.vlgmr.msra.gmra.mrb[0].mxu0 %v174_v15  ;;  %v404_v5 = vld [vmem:[#allocation5 + $0x6c8] sm:$0xff]  ;;  %v418_v20 = vld [vmem:[#allocation5 + $0x738] sm:$0xff]  ;;  %v419_v36 = vld [vmem:[#allocation5 + $0x740] sm:$0xff] }
 0x10d   :  { %2696 = vmatpush1.bf16.msra.mxu0 %v2695_v16  ;;  %1575 = vmatmul.mubr.f32.vlgmr.msra.gmra.mrb[0].mxu1 %v174_v15  ;;  %v2717_v15 = vpack.c.bf16 %v368_v9, %v364_v8  ;;  %v367_v16 = vld [vmem:[#allocation5 + $0x5a0] sm:$0xff]  ;;  %v410_v8 = vld [vmem:[#allocation5 + $0x6f8] sm:$0xff] }
 0x10e   :  { %3096 = vmatpush1.bf16.msra.mxu1 %v3095_v17  ;;  %2698 = vmatprep.subr.bf16.mxu0 %v2697_v18  ;;  %v365_v17 = vld [vmem:[#allocation5 + $0x590] sm:$0xff]  ;;  %v2719_v25 = vpack.c.bf16 %v367_v16, %v363_v13  ;;  %v407_v13 = vld [vmem:[#allocation5 + $0x6e0] sm:$0xff] }
 0x10f   :  { %3098 = vmatprep.subr.bf16.mxu1 %v3097_v22  ;;  %v369_v18 = vld [vmem:[#allocation5 + $0x5b0] sm:$0xff]  ;;  %v427_v48 = vld [vmem:[#allocation5 + $0x780] sm:$0xff] }
 0x110   :  { %v177_v22 = vld [vmem:[#allocation2 + $0x18] sm:$0xff]  ;;  %v3119_v26 = vpack.c.bf16 %v369_v18, %v365_v17  ;;  %v412_v17 = vld [vmem:[#allocation5 + $0x708] sm:$0xff]  ;;  %v435_v60 = vld [vmem:[#allocation5 + $0x7c0] sm:$0xff] }
 0x111   :  { %2700 = vmatpush1.bf16.msra.mxu0 %v2699_v28  ;;  %1148 = vmatprep.mubr.f32.mxu0 %v177_v22  ;;  %v371_v28 = vld [vmem:[#allocation5 + $0x5c0] sm:$0xff]  ;;  %v409_v16 = vld [vmem:[#allocation5 + $0x6f0] sm:$0xff]  ;;  %v416_v18 = vld [vmem:[#allocation5 + $0x728] sm:$0xff] }
 0x112   :  { %3100 = vmatpush1.bf16.msra.mxu1 %v3099_v29  ;;  %2702 = vmatprep.subr.bf16.mxu0 %v2701_v30  ;;  %v375_v29 = vld [vmem:[#allocation5 + $0x5e0] sm:$0xff]  ;;  %v373_v30 = vld [vmem:[#allocation5 + $0x5d0] sm:$0xff]  ;;  %v2741_v23 = vpack.c.bf16 %v416_v18, %v412_v17  ;;  %v176_v17 = vld [vmem:[#allocation2 + $0x10] sm:$0xff] }
 0x113   :  { %3102 = vmatprep.subr.bf16.mxu1 %v3101_v34  ;;  %1645 = vmatprep.mubr.f32.mxu1 %v177_v22  ;;  %v384_v34 = vld [vmem:[#allocation5 + $0x628] sm:$0xff]  ;;  %v2723_v37 = vpack.c.bf16 %v375_v29, %v371_v28  ;;  %v3123_v38 = vpack.c.bf16 %v377_v32, %v373_v30  ;;  %v417_v28 = vld [vmem:[#allocation5 + $0x730] sm:$0xff]  ;;  %v426_v32 = vld [vmem:[#allocation5 + $0x778] sm:$0xff] }
 0x114   :  { %v2725_v39 = vpack.c.bf16 %v384_v34, %v380_v33  ;;  %v420_v29 = vld [vmem:[#allocation5 + $0x748] sm:$0xff] }
 0x115   :  { %2704 = vmatpush1.bf16.msra.mxu0 %v2703_v40  ;;  %v379_v40 = vld [vmem:[#allocation5 + $0x600] sm:$0xff]  ;;  %v424_v30 = vld [vmem:[#allocation5 + $0x768] sm:$0xff] }
 0x116   :  { %3104 = vmatpush1.bf16.msra.mxu1 %v3103_v41  ;;  %2706 = vmatprep.subr.bf16.mxu0 %v2705_v42  ;;  %v383_v41 = vld [vmem:[#allocation5 + $0x620] sm:$0xff]  ;;  %v381_v42 = vld [vmem:[#allocation5 + $0x610] sm:$0xff]  ;;  %v2745_v35 = vpack.c.bf16 %v424_v30, %v420_v29  ;;  %v466_v29 = vld [vmem:[#allocation5 + $0x8b8] sm:$0xff] }
 0x117   :  { %3106 = vmatprep.subr.bf16.mxu1 %v3105_v46  ;;  %v392_v46 = vld [vmem:[#allocation5 + $0x668] sm:$0xff]  ;;  %v2727_v49 = vpack.c.bf16 %v383_v41, %v379_v40  ;;  %v3127_v50 = vpack.c.bf16 %v385_v44, %v381_v42  ;;  %v425_v40 = vld [vmem:[#allocation5 + $0x770] sm:$0xff]  ;;  %v434_v44 = vld [vmem:[#allocation5 + $0x7b8] sm:$0xff] }
 0x118   :  { %v2729_v51 = vpack.c.bf16 %v392_v46, %v388_v45  ;;  %v428_v41 = vld [vmem:[#allocation5 + $0x788] sm:$0xff]  ;;  %v179_v30 = vld [vmem:[#allocation2 + $0x28] sm:$0xff] }
 0x119   :  { %2708 = vmatpush1.bf16.msra.mxu0 %v2707_v52  ;;  %v387_v52 = vld [vmem:[#allocation5 + $0x640] sm:$0xff]  ;;  %v432_v42 = vld [vmem:[#allocation5 + $0x7a8] sm:$0xff] }
 0x11a   :  { %3108 = vmatpush1.bf16.msra.mxu1 %v3107_v53  ;;  %2710 = vmatprep.subr.bf16.mxu0 %v2709_v54  ;;  %v391_v53 = vld [vmem:[#allocation5 + $0x660] sm:$0xff]  ;;  %v389_v54 = vld [vmem:[#allocation5 + $0x650] sm:$0xff]  ;;  %v2749_v47 = vpack.c.bf16 %v432_v42, %v428_v41  ;;  %v470_v41 = vld [vmem:[#allocation5 + $0x8d8] sm:$0xff] }
 0x11b   :  { %3110 = vmatprep.subr.bf16.mxu1 %v3109_v58  ;;  %v400_v58 = vld [vmem:[#allocation5 + $0x6a8] sm:$0xff]  ;;  %v2731_v61 = vpack.c.bf16 %v391_v53, %v387_v52  ;;  %v3131_v62 = vpack.c.bf16 %v393_v56, %v389_v54  ;;  %v433_v52 = vld [vmem:[#allocation5 + $0x7b0] sm:$0xff]  ;;  %v442_v56 = vld [vmem:[#allocation5 + $0x7f8] sm:$0xff] }
 0x11c   :  { %v2733_v63 = vpack.c.bf16 %v400_v58, %v396_v57  ;;  %v436_v53 = vld [vmem:[#allocation5 + $0x7c8] sm:$0xff]  ;;  %v474_v42 = vld [vmem:[#allocation5 + $0x8f8] sm:$0xff] }
 0x11d   :  { %2712 = vmatpush1.bf16.msra.mxu0 %v2711_v0  ;;  %v395_v0 = vld [vmem:[#allocation5 + $0x680] sm:$0xff]  ;;  %v440_v54 = vld [vmem:[#allocation5 + $0x7e8] sm:$0xff] }
 0x11e   :  { %3112 = vmatpush1.bf16.msra.mxu1 %v3111_v1  ;;  %2714 = vmatprep.subr.bf16.mxu0 %v2713_v2  ;;  %v399_v1 = vld [vmem:[#allocation5 + $0x6a0] sm:$0xff]  ;;  %v397_v2 = vld [vmem:[#allocation5 + $0x690] sm:$0xff]  ;;  %v2753_v59 = vpack.c.bf16 %v440_v54, %v436_v53  ;;  %v478_v53 = vld [vmem:[#allocation5 + $0x918] sm:$0xff] }
 0x11f   :  { %3114 = vmatprep.subr.bf16.mxu1 %v3113_v6  ;;  %v408_v6 = vld [vmem:[#allocation5 + $0x6e8] sm:$0xff]  ;;  %v2735_v9 = vpack.c.bf16 %v399_v1, %v395_v0  ;;  %v3135_v10 = vpack.c.bf16 %v401_v4, %v397_v2  ;;  %v441_v0 = vld [vmem:[#allocation5 + $0x7f0] sm:$0xff]  ;;  %v450_v4 = vld [vmem:[#allocation5 + $0x838] sm:$0xff] }
 0x120   :  { %v2737_v11 = vpack.c.bf16 %v408_v6, %v404_v5  ;;  %v444_v1 = vld [vmem:[#allocation5 + $0x808] sm:$0xff]  ;;  %v482_v54 = vld [vmem:[#allocation5 + $0x938] sm:$0xff] }
 0x121   :  { %2716 = vmatpush1.bf16.msra.mxu0 %v2715_v12  ;;  %v403_v12 = vld [vmem:[#allocation5 + $0x6c0] sm:$0xff]  ;;  %v448_v2 = vld [vmem:[#allocation5 + $0x828] sm:$0xff] }
 0x122   :  { %3116 = vmatpush1.bf16.msra.mxu1 %v3115_v14  ;;  %2718 = vmatprep.subr.bf16.mxu0 %v2717_v15  ;;  %v405_v14 = vld [vmem:[#allocation5 + $0x6d0] sm:$0xff]  ;;  %v3137_v15 = vpack.c.bf16 %v410_v8, %v406_v7  ;;  %v2739_v21 = vpack.c.bf16 %v407_v13, %v403_v12  ;;  %v2757_v7 = vpack.c.bf16 %v448_v2, %v444_v1  ;;  %v443_v8 = vld [vmem:[#allocation5 + $0x800] sm:$0xff]  ;;  %v452_v13 = vld [vmem:[#allocation5 + $0x848] sm:$0xff] }
 0x123   :  { %3118 = vmatprep.subr.bf16.mxu1 %v3117_v19  ;;  %v414_v19 = vld [vmem:[#allocation5 + $0x718] sm:$0xff]  ;;  %v3139_v22 = vpack.c.bf16 %v409_v16, %v405_v14  ;;  %v449_v12 = vld [vmem:[#allocation5 + $0x830] sm:$0xff]  ;;  %v456_v14 = vld [vmem:[#allocation5 + $0x868] sm:$0xff] }
 0x124   :  { %v458_v16 = vld [vmem:[#allocation5 + $0x878] sm:$0xff] }
 0x125   :  { %2720 = vmatpush1.bf16.msra.mxu0 %v2719_v25  ;;  %v415_v25 = vld [vmem:[#allocation5 + $0x720] sm:$0xff]  ;;  %v486_v1 = vld [vmem:[#allocation5 + $0x958] sm:$0xff] }
 0x126   :  { %3120 = vmatpush1.bf16.msra.mxu1 %v3119_v26  ;;  %2722 = vmatprep.subr.bf16.mxu0 %v2721_v27  ;;  %v413_v26 = vld [vmem:[#allocation5 + $0x710] sm:$0xff]  ;;  %v3141_v27 = vpack.c.bf16 %v418_v20, %v414_v19  ;;  %v2743_v33 = vpack.c.bf16 %v415_v25, %v411_v24  ;;  %v2761_v20 = vpack.c.bf16 %v456_v14, %v452_v13  ;;  %v490_v2 = vld [vmem:[#allocation5 + $0x978] sm:$0xff] }
 0x127   :  { %3122 = vmatprep.subr.bf16.mxu1 %v3121_v31  ;;  %v422_v31 = vld [vmem:[#allocation5 + $0x758] sm:$0xff]  ;;  %v3143_v34 = vpack.c.bf16 %v417_v28, %v413_v26  ;;  %v457_v25 = vld [vmem:[#allocation5 + $0x870] sm:$0xff]  ;;  %v460_v26 = vld [vmem:[#allocation5 + $0x888] sm:$0xff] }
 0x128   :  { %v462_v28 = vld [vmem:[#allocation5 + $0x898] sm:$0xff] }
 0x129   :  { %2724 = vmatpush1.bf16.msra.mxu0 %v2723_v37  ;;  %v423_v37 = vld [vmem:[#allocation5 + $0x760] sm:$0xff]  ;;  %v494_v13 = vld [vmem:[#allocation5 + $0x998] sm:$0xff] }
 0x12a   :  { %3124 = vmatpush1.bf16.msra.mxu1 %v3123_v38  ;;  %2726 = vmatprep.subr.bf16.mxu0 %v2725_v39  ;;  %v421_v38 = vld [vmem:[#allocation5 + $0x750] sm:$0xff]  ;;  %v3145_v39 = vpack.c.bf16 %v426_v32, %v422_v31  ;;  %v2747_v45 = vpack.c.bf16 %v423_v37, %v419_v36  ;;  %v3165_v37 = vpack.c.bf16 %v466_v29, %v462_v28  ;;  %v498_v14 = vld [vmem:[#allocation5 + $0x9b8] sm:$0xff] }
 0x12b   :  { %3126 = vmatprep.subr.bf16.mxu1 %v3125_v43  ;;  %v430_v43 = vld [vmem:[#allocation5 + $0x798] sm:$0xff]  ;;  %v3147_v46 = vpack.c.bf16 %v425_v40, %v421_v38  ;;  %v461_v36 = vld [vmem:[#allocation5 + $0x890] sm:$0xff]  ;;  %v472_v40 = vld [vmem:[#allocation5 + $0x8e8] sm:$0xff] }
 0x12c   :  { %v465_v38 = vld [vmem:[#allocation5 + $0x8b0] sm:$0xff] }
 0x12d   :  { %2728 = vmatpush1.bf16.msra.mxu0 %v2727_v49  ;;  %v431_v49 = vld [vmem:[#allocation5 + $0x7a0] sm:$0xff] }
 0x12e   :  { %3128 = vmatpush1.bf16.msra.mxu1 %v3127_v50  ;;  %2730 = vmatprep.subr.bf16.mxu0 %v2729_v51  ;;  %v429_v50 = vld [vmem:[#allocation5 + $0x790] sm:$0xff]  ;;  %v3149_v51 = vpack.c.bf16 %v434_v44, %v430_v43  ;;  %v2751_v57 = vpack.c.bf16 %v431_v49, %v427_v48  ;;  %v3167_v44 = vpack.c.bf16 %v465_v38, %v461_v36  ;;  %v512_v36 = vld [vmem:[#allocation5 + $0xa28] sm:$0xff]  ;;  %v514_v38 = vld [vmem:[#allocation5 + $0xa38] sm:$0xff] }
 0x12f   :  { %3130 = vmatprep.subr.bf16.mxu1 %v3129_v55  ;;  %v438_v55 = vld [vmem:[#allocation5 + $0x7d8] sm:$0xff]  ;;  %v3151_v58 = vpack.c.bf16 %v433_v52, %v429_v50  ;;  %v469_v48 = vld [vmem:[#allocation5 + $0x8d0] sm:$0xff]  ;;  %v3169_v49 = vpack.c.bf16 %v474_v42, %v470_v41  ;;  %v480_v52 = vld [vmem:[#allocation5 + $0x928] sm:$0xff] }
 0x130   :  { %v473_v50 = vld [vmem:[#allocation5 + $0x8f0] sm:$0xff]  ;;  %v507_v42 = vld [vmem:[#allocation5 + $0xa00] sm:$0xff] }
 0x131   :  { %2732 = vmatpush1.bf16.msra.mxu0 %v2731_v61  ;;  %v439_v61 = vld [vmem:[#allocation5 + $0x7e0] sm:$0xff] }
 0x132   :  { %3132 = vmatpush1.bf16.msra.mxu1 %v3131_v62  ;;  %2734 = vmatprep.subr.bf16.mxu0 %v2733_v63  ;;  %v437_v62 = vld [vmem:[#allocation5 + $0x7d0] sm:$0xff]  ;;  %v3153_v63 = vpack.c.bf16 %v442_v56, %v438_v55  ;;  %v2755_v5 = vpack.c.bf16 %v439_v61, %v435_v60  ;;  %v3171_v56 = vpack.c.bf16 %v473_v50, %v469_v48  ;;  %v520_v48 = vld [vmem:[#allocation5 + $0xa68] sm:$0xff]  ;;  %v522_v50 = vld [vmem:[#allocation5 + $0xa78] sm:$0xff] }
 0x133   :  { %3134 = vmatprep.subr.bf16.mxu1 %v3133_v3  ;;  %v446_v3 = vld [vmem:[#allocation5 + $0x818] sm:$0xff]  ;;  %v3155_v6 = vpack.c.bf16 %v441_v0, %v437_v62  ;;  %v477_v60 = vld [vmem:[#allocation5 + $0x910] sm:$0xff]  ;;  %v3173_v61 = vpack.c.bf16 %v482_v54, %v478_v53  ;;  %v488_v0 = vld [vmem:[#allocation5 + $0x968] sm:$0xff] }
 0x134   :  { %v481_v62 = vld [vmem:[#allocation5 + $0x930] sm:$0xff]  ;;  %v515_v54 = vld [vmem:[#allocation5 + $0xa40] sm:$0xff] }
 0x135   :  { %2736 = vmatpush1.bf16.msra.mxu0 %v2735_v9  ;;  %v447_v9 = vld [vmem:[#allocation5 + $0x820] sm:$0xff] }
 0x136   :  { %3136 = vmatpush1.bf16.msra.mxu1 %v3135_v10  ;;  %2738 = vmatprep.subr.bf16.mxu0 %v2737_v11  ;;  %v445_v10 = vld [vmem:[#allocation5 + $0x810] sm:$0xff]  ;;  %v3157_v11 = vpack.c.bf16 %v450_v4, %v446_v3  ;;  %v2759_v18 = vpack.c.bf16 %v447_v9, %v443_v8  ;;  %v3175_v4 = vpack.c.bf16 %v481_v62, %v477_v60  ;;  %v528_v60 = vld [vmem:[#allocation5 + $0xaa8] sm:$0xff]  ;;  %v530_v62 = vld [vmem:[#allocation5 + $0xab8] sm:$0xff] }
 0x137   :  { %3138 = vmatprep.subr.bf16.mxu1 %v3137_v15  ;;  %v454_v15 = vld [vmem:[#allocation5 + $0x858] sm:$0xff]  ;;  %v3159_v19 = vpack.c.bf16 %v449_v12, %v445_v10  ;;  %v485_v8 = vld [vmem:[#allocation5 + $0x950] sm:$0xff]  ;;  %v3177_v9 = vpack.c.bf16 %v490_v2, %v486_v1  ;;  %v496_v12 = vld [vmem:[#allocation5 + $0x9a8] sm:$0xff] }
 0x138   :  { %v3161_v24 = vpack.c.bf16 %v458_v16, %v454_v15  ;;  %v489_v10 = vld [vmem:[#allocation5 + $0x970] sm:$0xff]  ;;  %v523_v2 = vld [vmem:[#allocation5 + $0xa80] sm:$0xff] }
 0x139   :  { %2740 = vmatpush1.bf16.msra.mxu0 %v2739_v21  ;;  %v451_v21 = vld [vmem:[#allocation5 + $0x840] sm:$0xff]  ;;  %v3179_v16 = vpack.c.bf16 %v489_v10, %v485_v8  ;;  %v536_v8 = vld [vmem:[#allocation5 + $0xae8] sm:$0xff]  ;;  %v538_v10 = vld [vmem:[#allocation5 + $0xaf8] sm:$0xff] }
 0x13a   :  { %3140 = vmatpush1.bf16.msra.mxu1 %v3139_v22  ;;  %2742 = vmatprep.subr.bf16.mxu0 %v2741_v23  ;;  %v455_v22 = vld [vmem:[#allocation5 + $0x860] sm:$0xff]  ;;  %v453_v23 = vld [vmem:[#allocation5 + $0x850] sm:$0xff] }
 0x13b   :  { %3142 = vmatprep.subr.bf16.mxu1 %v3141_v27  ;;  %v464_v27 = vld [vmem:[#allocation5 + $0x8a8] sm:$0xff]  ;;  %v2763_v31 = vpack.c.bf16 %v455_v22, %v451_v21  ;;  %v3163_v32 = vpack.c.bf16 %v457_v25, %v453_v23  ;;  %v3181_v21 = vpack.c.bf16 %v498_v14, %v494_v13  ;;  %v497_v22 = vld [vmem:[#allocation5 + $0x9b0] sm:$0xff]  ;;  %v502_v25 = vld [vmem:[#allocation5 + $0x9d8] sm:$0xff] }
 0x13c   :  { %v500_v23 = vld [vmem:[#allocation5 + $0x9c8] sm:$0xff]  ;;  %v531_v14 = vld [vmem:[#allocation5 + $0xac0] sm:$0xff] }
 0x13d   :  { %2744 = vmatpush1.bf16.msra.mxu0 %v2743_v33  ;;  %v2765_v33 = vpack.c.bf16 %v464_v27, %v460_v26  ;;  %v506_v26 = vld [vmem:[#allocation5 + $0x9f8] sm:$0xff] }
 0x13e   :  { %3144 = vmatpush1.bf16.msra.mxu1 %v3143_v34  ;;  %2746 = vmatprep.subr.bf16.mxu0 %v2745_v35  ;;  %v459_v34 = vld [vmem:[#allocation5 + $0x880] sm:$0xff] }
 0x13f   :  { %3146 = vmatprep.subr.bf16.mxu1 %v3145_v39  ;;  %v463_v35 = vld [vmem:[#allocation5 + $0x8a0] sm:$0xff]  ;;  %v468_v39 = vld [vmem:[#allocation5 + $0x8c8] sm:$0xff] }
 0x140   :  { %v2767_v43 = vpack.c.bf16 %v463_v35, %v459_v34  ;;  %v505_v34 = vld [vmem:[#allocation5 + $0x9f0] sm:$0xff]  ;;  %v508_v35 = vld [vmem:[#allocation5 + $0xa08] sm:$0xff] }
 0x141   :  { %2748 = vmatpush1.bf16.msra.mxu0 %v2747_v45  ;;  %v2769_v45 = vpack.c.bf16 %v472_v40, %v468_v39  ;;  %v2789_v41 = vpack.c.bf16 %v512_v36, %v508_v35 }
 0x142   :  { %3148 = vmatpush1.bf16.msra.mxu1 %v3147_v46  ;;  %2750 = vmatprep.subr.bf16.mxu0 %v2749_v47  ;;  %v467_v46 = vld [vmem:[#allocation5 + $0x8c0] sm:$0xff] }
 0x143   :  { %3150 = vmatprep.subr.bf16.mxu1 %v3149_v51  ;;  %v471_v47 = vld [vmem:[#allocation5 + $0x8e0] sm:$0xff]  ;;  %v476_v51 = vld [vmem:[#allocation5 + $0x908] sm:$0xff] }
 0x144   :  { %v2771_v55 = vpack.c.bf16 %v471_v47, %v467_v46  ;;  %v513_v46 = vld [vmem:[#allocation5 + $0xa30] sm:$0xff]  ;;  %v516_v47 = vld [vmem:[#allocation5 + $0xa48] sm:$0xff] }
 0x145   :  { %2752 = vmatpush1.bf16.msra.mxu0 %v2751_v57  ;;  %v2773_v57 = vpack.c.bf16 %v480_v52, %v476_v51  ;;  %v2793_v53 = vpack.c.bf16 %v520_v48, %v516_v47 }
 0x146   :  { %3152 = vmatpush1.bf16.msra.mxu1 %v3151_v58  ;;  %2754 = vmatprep.subr.bf16.mxu0 %v2753_v59  ;;  %v475_v58 = vld [vmem:[#allocation5 + $0x900] sm:$0xff] }
 0x147   :  { %3154 = vmatprep.subr.bf16.mxu1 %v3153_v63  ;;  %v479_v59 = vld [vmem:[#allocation5 + $0x920] sm:$0xff]  ;;  %v484_v63 = vld [vmem:[#allocation5 + $0x948] sm:$0xff] }
 0x148   :  { %v2775_v3 = vpack.c.bf16 %v479_v59, %v475_v58  ;;  %v521_v58 = vld [vmem:[#allocation5 + $0xa70] sm:$0xff]  ;;  %v524_v59 = vld [vmem:[#allocation5 + $0xa88] sm:$0xff] }
 0x149   :  { %2756 = vmatpush1.bf16.msra.mxu0 %v2755_v5  ;;  %v2777_v5 = vpack.c.bf16 %v488_v0, %v484_v63  ;;  %v2797_v1 = vpack.c.bf16 %v528_v60, %v524_v59 }
 0x14a   :  { %3156 = vmatpush1.bf16.msra.mxu1 %v3155_v6  ;;  %2758 = vmatprep.subr.bf16.mxu0 %v2757_v7  ;;  %v483_v6 = vld [vmem:[#allocation5 + $0x940] sm:$0xff] }
 0x14b   :  { %3158 = vmatprep.subr.bf16.mxu1 %v3157_v11  ;;  %v487_v7 = vld [vmem:[#allocation5 + $0x960] sm:$0xff]  ;;  %v492_v11 = vld [vmem:[#allocation5 + $0x988] sm:$0xff] }
 0x14c   :  { %1149 = vmatmul.mubr.f32.vlgmr.msra.gmra.mrb[0].mxu0 %v176_v17  ;;  %v2779_v15 = vpack.c.bf16 %v487_v7, %v483_v6  ;;  %v529_v6 = vld [vmem:[#allocation5 + $0xab0] sm:$0xff]  ;;  %v532_v7 = vld [vmem:[#allocation5 + $0xac8] sm:$0xff] }
 0x14d   :  { %2760 = vmatpush1.bf16.msra.mxu0 %v2759_v18  ;;  %1646 = vmatmul.mubr.f32.vlgmr.msra.gmra.mrb[0].mxu1 %v176_v17  ;;  %v2781_v17 = vpack.c.bf16 %v496_v12, %v492_v11  ;;  %v491_v18 = vld [vmem:[#allocation5 + $0x980] sm:$0xff]  ;;  %v2801_v13 = vpack.c.bf16 %v536_v8, %v532_v7 }
 0x14e   :  { %3160 = vmatpush1.bf16.msra.mxu1 %v3159_v19  ;;  %2762 = vmatprep.subr.bf16.mxu0 %v2761_v20  ;;  %v495_v19 = vld [vmem:[#allocation5 + $0x9a0] sm:$0xff]  ;;  %v493_v20 = vld [vmem:[#allocation5 + $0x990] sm:$0xff] }
 0x14f   :  { %3162 = vmatprep.subr.bf16.mxu1 %v3161_v24  ;;  %1219 = vmatprep.mubr.f32.mxu0 %v179_v30  ;;  %v504_v24 = vld [vmem:[#allocation5 + $0x9e8] sm:$0xff]  ;;  %v2783_v27 = vpack.c.bf16 %v495_v19, %v491_v18  ;;  %v3183_v28 = vpack.c.bf16 %v497_v22, %v493_v20  ;;  %v537_v18 = vld [vmem:[#allocation5 + $0xaf0] sm:$0xff]  ;;  %v546_v22 = vld [vmem:[#allocation5 + $0xb38] sm:$0xff] }
 0x150   :  { %1716 = vmatprep.mubr.f32.mxu1 %v179_v30  ;;  %v2785_v29 = vpack.c.bf16 %v504_v24, %v500_v23  ;;  %v499_v30 = vld [vmem:[#allocation5 + $0x9c0] sm:$0xff]  ;;  %v540_v19 = vld [vmem:[#allocation5 + $0xb08] sm:$0xff] }
 0x151   :  { %2764 = vmatpush1.bf16.msra.mxu0 %v2763_v31  ;;  %v503_v31 = vld [vmem:[#allocation5 + $0x9e0] sm:$0xff]  ;;  %v544_v20 = vld [vmem:[#allocation5 + $0xb28] sm:$0xff] }
 0x152   :  { %3164 = vmatpush1.bf16.msra.mxu1 %v3163_v32  ;;  %2766 = vmatprep.subr.bf16.mxu0 %v2765_v33  ;;  %v501_v32 = vld [vmem:[#allocation5 + $0x9d0] sm:$0xff]  ;;  %v3185_v33 = vpack.c.bf16 %v506_v26, %v502_v25  ;;  %v2787_v39 = vpack.c.bf16 %v503_v31, %v499_v30  ;;  %v2805_v25 = vpack.c.bf16 %v544_v20, %v540_v19  ;;  %v539_v26 = vld [vmem:[#allocation5 + $0xb00] sm:$0xff]  ;;  %v548_v31 = vld [vmem:[#allocation5 + $0xb48] sm:$0xff] }
 0x153   :  { %3166 = vmatprep.subr.bf16.mxu1 %v3165_v37  ;;  %v510_v37 = vld [vmem:[#allocation5 + $0xa18] sm:$0xff]  ;;  %v3187_v40 = vpack.c.bf16 %v505_v34, %v501_v32  ;;  %v545_v30 = vld [vmem:[#allocation5 + $0xb30] sm:$0xff]  ;;  %v552_v32 = vld [vmem:[#allocation5 + $0xb68] sm:$0xff] }
 0x154   :  { %v554_v34 = vld [vmem:[#allocation5 + $0xb78] sm:$0xff] }
 0x155   :  { %2768 = vmatpush1.bf16.msra.mxu0 %v2767_v43  ;;  %v511_v43 = vld [vmem:[#allocation5 + $0xa20] sm:$0xff]  ;;  %v178_v19 = vld [vmem:[#allocation2 + $0x20] sm:$0xff] }
 0x156   :  { %3168 = vmatpush1.bf16.msra.mxu1 %v3167_v44  ;;  %2770 = vmatprep.subr.bf16.mxu0 %v2769_v45  ;;  %v509_v44 = vld [vmem:[#allocation5 + $0xa10] sm:$0xff]  ;;  %v3189_v45 = vpack.c.bf16 %v514_v38, %v510_v37  ;;  %v2791_v51 = vpack.c.bf16 %v511_v43, %v507_v42  ;;  %v2809_v37 = vpack.c.bf16 %v552_v32, %v548_v31  ;;  %v547_v38 = vld [vmem:[#allocation5 + $0xb40] sm:$0xff]  ;;  %v556_v43 = vld [vmem:[#allocation5 + $0xb88] sm:$0xff] }
 0x157   :  { %3170 = vmatprep.subr.bf16.mxu1 %v3169_v49  ;;  %v518_v49 = vld [vmem:[#allocation5 + $0xa58] sm:$0xff]  ;;  %v3191_v52 = vpack.c.bf16 %v513_v46, %v509_v44  ;;  %v553_v42 = vld [vmem:[#allocation5 + $0xb70] sm:$0xff]  ;;  %v560_v44 = vld [vmem:[#allocation5 + $0xba8] sm:$0xff] }
 0x158   :  { %v562_v46 = vld [vmem:[#allocation5 + $0xbb8] sm:$0xff]  ;;  %v181_v32 = vld [vmem:[#allocation2 + $0x38] sm:$0xff] }
 0x159   :  { %2772 = vmatpush1.bf16.msra.mxu0 %v2771_v55  ;;  %v519_v55 = vld [vmem:[#allocation5 + $0xa60] sm:$0xff]  ;;  %v594_v31 = vld [vmem:[#allocation5 + $0xcb8] sm:$0xff] }
 0x15a   :  { %3172 = vmatpush1.bf16.msra.mxu1 %v3171_v56  ;;  %2774 = vmatprep.subr.bf16.mxu0 %v2773_v57  ;;  %v517_v56 = vld [vmem:[#allocation5 + $0xa50] sm:$0xff]  ;;  %v3193_v57 = vpack.c.bf16 %v522_v50, %v518_v49  ;;  %v2795_v63 = vpack.c.bf16 %v519_v55, %v515_v54  ;;  %v2813_v49 = vpack.c.bf16 %v560_v44, %v556_v43  ;;  %v555_v50 = vld [vmem:[#allocation5 + $0xb80] sm:$0xff]  ;;  %v564_v55 = vld [vmem:[#allocation5 + $0xbc8] sm:$0xff] }
 0x15b   :  { %3174 = vmatprep.subr.bf16.mxu1 %v3173_v61  ;;  %v526_v61 = vld [vmem:[#allocation5 + $0xa98] sm:$0xff]  ;;  %v3195_v0 = vpack.c.bf16 %v521_v58, %v517_v56  ;;  %v561_v54 = vld [vmem:[#allocation5 + $0xbb0] sm:$0xff]  ;;  %v568_v56 = vld [vmem:[#allocation5 + $0xbe8] sm:$0xff] }
 0x15c   :  { %v570_v58 = vld [vmem:[#allocation5 + $0xbf8] sm:$0xff] }
 0x15d   :  { %2776 = vmatpush1.bf16.msra.mxu0 %v2775_v3  ;;  %v527_v3 = vld [vmem:[#allocation5 + $0xaa0] sm:$0xff]  ;;  %v598_v43 = vld [vmem:[#allocation5 + $0xcd8] sm:$0xff] }
 0x15e   :  { %3176 = vmatpush1.bf16.msra.mxu1 %v3175_v4  ;;  %2778 = vmatprep.subr.bf16.mxu0 %v2777_v5  ;;  %v525_v4 = vld [vmem:[#allocation5 + $0xa90] sm:$0xff]  ;;  %v3197_v5 = vpack.c.bf16 %v530_v62, %v526_v61  ;;  %v2799_v11 = vpack.c.bf16 %v527_v3, %v523_v2  ;;  %v2817_v61 = vpack.c.bf16 %v568_v56, %v564_v55  ;;  %v563_v62 = vld [vmem:[#allocation5 + $0xbc0] sm:$0xff]  ;;  %v572_v3 = vld [vmem:[#allocation5 + $0xc08] sm:$0xff] }
 0x15f   :  { %3178 = vmatprep.subr.bf16.mxu1 %v3177_v9  ;;  %v534_v9 = vld [vmem:[#allocation5 + $0xad8] sm:$0xff]  ;;  %v3199_v12 = vpack.c.bf16 %v529_v6, %v525_v4  ;;  %v569_v2 = vld [vmem:[#allocation5 + $0xbf0] sm:$0xff]  ;;  %v576_v4 = vld [vmem:[#allocation5 + $0xc28] sm:$0xff] }
 0x160   :  { %v578_v6 = vld [vmem:[#allocation5 + $0xc38] sm:$0xff] }
 0x161   :  { %2780 = vmatpush1.bf16.msra.mxu0 %v2779_v15  ;;  %v535_v15 = vld [vmem:[#allocation5 + $0xae0] sm:$0xff]  ;;  %v602_v44 = vld [vmem:[#allocation5 + $0xcf8] sm:$0xff] }
 0x162   :  { %3180 = vmatpush1.bf16.msra.mxu1 %v3179_v16  ;;  %2782 = vmatprep.subr.bf16.mxu0 %v2781_v17  ;;  %v533_v16 = vld [vmem:[#allocation5 + $0xad0] sm:$0xff]  ;;  %v3201_v17 = vpack.c.bf16 %v538_v10, %v534_v9  ;;  %v2803_v23 = vpack.c.bf16 %v535_v15, %v531_v14  ;;  %v2821_v9 = vpack.c.bf16 %v576_v4, %v572_v3  ;;  %v571_v10 = vld [vmem:[#allocation5 + $0xc00] sm:$0xff]  ;;  %v580_v15 = vld [vmem:[#allocation5 + $0xc48] sm:$0xff] }
 0x163   :  { %3182 = vmatprep.subr.bf16.mxu1 %v3181_v21  ;;  %v542_v21 = vld [vmem:[#allocation5 + $0xb18] sm:$0xff]  ;;  %v3203_v24 = vpack.c.bf16 %v537_v18, %v533_v16  ;;  %v577_v14 = vld [vmem:[#allocation5 + $0xc30] sm:$0xff]  ;;  %v584_v16 = vld [vmem:[#allocation5 + $0xc68] sm:$0xff] }
 0x164   :  { %v586_v18 = vld [vmem:[#allocation5 + $0xc78] sm:$0xff] }
 0x165   :  { %2784 = vmatpush1.bf16.msra.mxu0 %v2783_v27  ;;  %v543_v27 = vld [vmem:[#allocation5 + $0xb20] sm:$0xff]  ;;  %v606_v55 = vld [vmem:[#allocation5 + $0xd18] sm:$0xff] }
 0x166   :  { %3184 = vmatpush1.bf16.msra.mxu1 %v3183_v28  ;;  %2786 = vmatprep.subr.bf16.mxu0 %v2785_v29  ;;  %v541_v28 = vld [vmem:[#allocation5 + $0xb10] sm:$0xff]  ;;  %v3205_v29 = vpack.c.bf16 %v546_v22, %v542_v21  ;;  %v2807_v35 = vpack.c.bf16 %v543_v27, %v539_v26  ;;  %v2825_v22 = vpack.c.bf16 %v584_v16, %v580_v15  ;;  %v610_v56 = vld [vmem:[#allocation5 + $0xd38] sm:$0xff] }
 0x167   :  { %3186 = vmatprep.subr.bf16.mxu1 %v3185_v33  ;;  %v550_v33 = vld [vmem:[#allocation5 + $0xb58] sm:$0xff]  ;;  %v3207_v36 = vpack.c.bf16 %v545_v30, %v541_v28  ;;  %v585_v27 = vld [vmem:[#allocation5 + $0xc70] sm:$0xff]  ;;  %v588_v28 = vld [vmem:[#allocation5 + $0xc88] sm:$0xff] }
 0x168   :  { %v590_v30 = vld [vmem:[#allocation5 + $0xc98] sm:$0xff] }
 0x169   :  { %2788 = vmatpush1.bf16.msra.mxu0 %v2787_v39  ;;  %v551_v39 = vld [vmem:[#allocation5 + $0xb60] sm:$0xff]  ;;  %v614_v3 = vld [vmem:[#allocation5 + $0xd58] sm:$0xff] }
 0x16a   :  { %3188 = vmatpush1.bf16.msra.mxu1 %v3187_v40  ;;  %2790 = vmatprep.subr.bf16.mxu0 %v2789_v41  ;;  %v549_v40 = vld [vmem:[#allocation5 + $0xb50] sm:$0xff]  ;;  %v3209_v41 = vpack.c.bf16 %v554_v34, %v550_v33  ;;  %v2811_v47 = vpack.c.bf16 %v551_v39, %v547_v38  ;;  %v3229_v39 = vpack.c.bf16 %v594_v31, %v590_v30  ;;  %v618_v4 = vld [vmem:[#allocation5 + $0xd78] sm:$0xff] }
 0x16b   :  { %3190 = vmatprep.subr.bf16.mxu1 %v3189_v45  ;;  %v558_v45 = vld [vmem:[#allocation5 + $0xb98] sm:$0xff]  ;;  %v3211_v48 = vpack.c.bf16 %v553_v42, %v549_v40  ;;  %v589_v38 = vld [vmem:[#allocation5 + $0xc90] sm:$0xff]  ;;  %v600_v42 = vld [vmem:[#allocation5 + $0xce8] sm:$0xff] }
 0x16c   :  { %v593_v40 = vld [vmem:[#allocation5 + $0xcb0] sm:$0xff]  ;;  %v622_v15 = vld [vmem:[#allocation5 + $0xd98] sm:$0xff] }
 0x16d   :  { %2792 = vmatpush1.bf16.msra.mxu0 %v2791_v51  ;;  %v559_v51 = vld [vmem:[#allocation5 + $0xba0] sm:$0xff]  ;;  %v626_v16 = vld [vmem:[#allocation5 + $0xdb8] sm:$0xff] }
 0x16e   :  { %3192 = vmatpush1.bf16.msra.mxu1 %v3191_v52  ;;  %2794 = vmatprep.subr.bf16.mxu0 %v2793_v53  ;;  %v557_v52 = vld [vmem:[#allocation5 + $0xb90] sm:$0xff]  ;;  %v3213_v53 = vpack.c.bf16 %v562_v46, %v558_v45  ;;  %v2815_v59 = vpack.c.bf16 %v559_v51, %v555_v50  ;;  %v3231_v46 = vpack.c.bf16 %v593_v40, %v589_v38  ;;  %v640_v38 = vld [vmem:[#allocation5 + $0xe28] sm:$0xff]  ;;  %v642_v40 = vld [vmem:[#allocation5 + $0xe38] sm:$0xff] }
 0x16f   :  { %3194 = vmatprep.subr.bf16.mxu1 %v3193_v57  ;;  %v566_v57 = vld [vmem:[#allocation5 + $0xbd8] sm:$0xff]  ;;  %v3215_v60 = vpack.c.bf16 %v561_v54, %v557_v52  ;;  %v597_v50 = vld [vmem:[#allocation5 + $0xcd0] sm:$0xff]  ;;  %v3233_v51 = vpack.c.bf16 %v602_v44, %v598_v43  ;;  %v608_v54 = vld [vmem:[#allocation5 + $0xd28] sm:$0xff] }
 0x170   :  { %v601_v52 = vld [vmem:[#allocation5 + $0xcf0] sm:$0xff]  ;;  %v635_v44 = vld [vmem:[#allocation5 + $0xe00] sm:$0xff] }
 0x171   :  { %2796 = vmatpush1.bf16.msra.mxu0 %v2795_v63  ;;  %v567_v63 = vld [vmem:[#allocation5 + $0xbe0] sm:$0xff] }
 0x172   :  { %3196 = vmatpush1.bf16.msra.mxu1 %v3195_v0  ;;  %2798 = vmatprep.subr.bf16.mxu0 %v2797_v1  ;;  %v565_v0 = vld [vmem:[#allocation5 + $0xbd0] sm:$0xff]  ;;  %v3217_v1 = vpack.c.bf16 %v570_v58, %v566_v57  ;;  %v2819_v7 = vpack.c.bf16 %v567_v63, %v563_v62  ;;  %v3235_v58 = vpack.c.bf16 %v601_v52, %v597_v50  ;;  %v648_v50 = vld [vmem:[#allocation5 + $0xe68] sm:$0xff]  ;;  %v650_v52 = vld [vmem:[#allocation5 + $0xe78] sm:$0xff] }
 0x173   :  { %3198 = vmatprep.subr.bf16.mxu1 %v3197_v5  ;;  %v574_v5 = vld [vmem:[#allocation5 + $0xc18] sm:$0xff]  ;;  %v3219_v8 = vpack.c.bf16 %v569_v2, %v565_v0  ;;  %v605_v62 = vld [vmem:[#allocation5 + $0xd10] sm:$0xff]  ;;  %v3237_v63 = vpack.c.bf16 %v610_v56, %v606_v55  ;;  %v616_v2 = vld [vmem:[#allocation5 + $0xd68] sm:$0xff] }
 0x174   :  { %v609_v0 = vld [vmem:[#allocation5 + $0xd30] sm:$0xff]  ;;  %v643_v56 = vld [vmem:[#allocation5 + $0xe40] sm:$0xff] }
 0x175   :  { %2800 = vmatpush1.bf16.msra.mxu0 %v2799_v11  ;;  %v575_v11 = vld [vmem:[#allocation5 + $0xc20] sm:$0xff] }
 0x176   :  { %3200 = vmatpush1.bf16.msra.mxu1 %v3199_v12  ;;  %2802 = vmatprep.subr.bf16.mxu0 %v2801_v13  ;;  %v573_v12 = vld [vmem:[#allocation5 + $0xc10] sm:$0xff]  ;;  %v3221_v13 = vpack.c.bf16 %v578_v6, %v574_v5  ;;  %v2823_v20 = vpack.c.bf16 %v575_v11, %v571_v10  ;;  %v3239_v6 = vpack.c.bf16 %v609_v0, %v605_v62  ;;  %v656_v62 = vld [vmem:[#allocation5 + $0xea8] sm:$0xff]  ;;  %v658_v0 = vld [vmem:[#allocation5 + $0xeb8] sm:$0xff] }
 0x177   :  { %3202 = vmatprep.subr.bf16.mxu1 %v3201_v17  ;;  %v582_v17 = vld [vmem:[#allocation5 + $0xc58] sm:$0xff]  ;;  %v3223_v21 = vpack.c.bf16 %v577_v14, %v573_v12  ;;  %v613_v10 = vld [vmem:[#allocation5 + $0xd50] sm:$0xff]  ;;  %v3241_v11 = vpack.c.bf16 %v618_v4, %v614_v3  ;;  %v624_v14 = vld [vmem:[#allocation5 + $0xda8] sm:$0xff] }
 0x178   :  { %v3225_v26 = vpack.c.bf16 %v586_v18, %v582_v17  ;;  %v617_v12 = vld [vmem:[#allocation5 + $0xd70] sm:$0xff]  ;;  %v651_v4 = vld [vmem:[#allocation5 + $0xe80] sm:$0xff] }
 0x179   :  { %2804 = vmatpush1.bf16.msra.mxu0 %v2803_v23  ;;  %v579_v23 = vld [vmem:[#allocation5 + $0xc40] sm:$0xff]  ;;  %v3243_v18 = vpack.c.bf16 %v617_v12, %v613_v10  ;;  %v664_v10 = vld [vmem:[#allocation5 + $0xee8] sm:$0xff]  ;;  %v666_v12 = vld [vmem:[#allocation5 + $0xef8] sm:$0xff] }
 0x17a   :  { %3204 = vmatpush1.bf16.msra.mxu1 %v3203_v24  ;;  %2806 = vmatprep.subr.bf16.mxu0 %v2805_v25  ;;  %v583_v24 = vld [vmem:[#allocation5 + $0xc60] sm:$0xff]  ;;  %v581_v25 = vld [vmem:[#allocation5 + $0xc50] sm:$0xff] }
 0x17b   :  { %3206 = vmatprep.subr.bf16.mxu1 %v3205_v29  ;;  %v592_v29 = vld [vmem:[#allocation5 + $0xca8] sm:$0xff]  ;;  %v2827_v33 = vpack.c.bf16 %v583_v24, %v579_v23  ;;  %v3227_v34 = vpack.c.bf16 %v585_v27, %v581_v25  ;;  %v3245_v23 = vpack.c.bf16 %v626_v16, %v622_v15  ;;  %v625_v24 = vld [vmem:[#allocation5 + $0xdb0] sm:$0xff]  ;;  %v630_v27 = vld [vmem:[#allocation5 + $0xdd8] sm:$0xff] }
 0x17c   :  { %v628_v25 = vld [vmem:[#allocation5 + $0xdc8] sm:$0xff]  ;;  %v659_v16 = vld [vmem:[#allocation5 + $0xec0] sm:$0xff] }
 0x17d   :  { %2808 = vmatpush1.bf16.msra.mxu0 %v2807_v35  ;;  %v2829_v35 = vpack.c.bf16 %v592_v29, %v588_v28  ;;  %v634_v28 = vld [vmem:[#allocation5 + $0xdf8] sm:$0xff] }
 0x17e   :  { %3208 = vmatpush1.bf16.msra.mxu1 %v3207_v36  ;;  %2810 = vmatprep.subr.bf16.mxu0 %v2809_v37  ;;  %v587_v36 = vld [vmem:[#allocation5 + $0xc80] sm:$0xff] }
 0x17f   :  { %3210 = vmatprep.subr.bf16.mxu1 %v3209_v41  ;;  %v591_v37 = vld [vmem:[#allocation5 + $0xca0] sm:$0xff]  ;;  %v596_v41 = vld [vmem:[#allocation5 + $0xcc8] sm:$0xff] }
 0x180   :  { %v2831_v45 = vpack.c.bf16 %v591_v37, %v587_v36  ;;  %v633_v36 = vld [vmem:[#allocation5 + $0xdf0] sm:$0xff]  ;;  %v636_v37 = vld [vmem:[#allocation5 + $0xe08] sm:$0xff] }
 0x181   :  { %2812 = vmatpush1.bf16.msra.mxu0 %v2811_v47  ;;  %v2833_v47 = vpack.c.bf16 %v600_v42, %v596_v41  ;;  %v2853_v43 = vpack.c.bf16 %v640_v38, %v636_v37 }
 0x182   :  { %3212 = vmatpush1.bf16.msra.mxu1 %v3211_v48  ;;  %2814 = vmatprep.subr.bf16.mxu0 %v2813_v49  ;;  %v595_v48 = vld [vmem:[#allocation5 + $0xcc0] sm:$0xff] }
 0x183   :  { %3214 = vmatprep.subr.bf16.mxu1 %v3213_v53  ;;  %v599_v49 = vld [vmem:[#allocation5 + $0xce0] sm:$0xff]  ;;  %v604_v53 = vld [vmem:[#allocation5 + $0xd08] sm:$0xff] }
 0x184   :  { %v2835_v57 = vpack.c.bf16 %v599_v49, %v595_v48  ;;  %v641_v48 = vld [vmem:[#allocation5 + $0xe30] sm:$0xff]  ;;  %v644_v49 = vld [vmem:[#allocation5 + $0xe48] sm:$0xff] }
 0x185   :  { %2816 = vmatpush1.bf16.msra.mxu0 %v2815_v59  ;;  %v2837_v59 = vpack.c.bf16 %v608_v54, %v604_v53  ;;  %v2857_v55 = vpack.c.bf16 %v648_v50, %v644_v49 }
 0x186   :  { %3216 = vmatpush1.bf16.msra.mxu1 %v3215_v60  ;;  %2818 = vmatprep.subr.bf16.mxu0 %v2817_v61  ;;  %v603_v60 = vld [vmem:[#allocation5 + $0xd00] sm:$0xff] }
 0x187   :  { %3218 = vmatprep.subr.bf16.mxu1 %v3217_v1  ;;  %v607_v61 = vld [vmem:[#allocation5 + $0xd20] sm:$0xff]  ;;  %v612_v1 = vld [vmem:[#allocation5 + $0xd48] sm:$0xff] }
 0x188   :  { %v2839_v5 = vpack.c.bf16 %v607_v61, %v603_v60  ;;  %v649_v60 = vld [vmem:[#allocation5 + $0xe70] sm:$0xff]  ;;  %v652_v61 = vld [vmem:[#allocation5 + $0xe88] sm:$0xff] }
 0x189   :  { %2820 = vmatpush1.bf16.msra.mxu0 %v2819_v7  ;;  %v2841_v7 = vpack.c.bf16 %v616_v2, %v612_v1  ;;  %v2861_v3 = vpack.c.bf16 %v656_v62, %v652_v61 }
 0x18a   :  { %3220 = vmatpush1.bf16.msra.mxu1 %v3219_v8  ;;  %2822 = vmatprep.subr.bf16.mxu0 %v2821_v9  ;;  %v611_v8 = vld [vmem:[#allocation5 + $0xd40] sm:$0xff] }
 0x18b   :  { %3222 = vmatprep.subr.bf16.mxu1 %v3221_v13  ;;  %v615_v9 = vld [vmem:[#allocation5 + $0xd60] sm:$0xff]  ;;  %v620_v13 = vld [vmem:[#allocation5 + $0xd88] sm:$0xff] }
 0x18c   :  { %1220 = vmatmul.mubr.f32.vlgmr.msra.gmra.mrb[0].mxu0 %v178_v19  ;;  %v2843_v17 = vpack.c.bf16 %v615_v9, %v611_v8  ;;  %v657_v8 = vld [vmem:[#allocation5 + $0xeb0] sm:$0xff]  ;;  %v660_v9 = vld [vmem:[#allocation5 + $0xec8] sm:$0xff] }
 0x18d   :  { %2824 = vmatpush1.bf16.msra.mxu0 %v2823_v20  ;;  %1717 = vmatmul.mubr.f32.vlgmr.msra.gmra.mrb[0].mxu1 %v178_v19  ;;  %v2845_v19 = vpack.c.bf16 %v624_v14, %v620_v13  ;;  %v619_v20 = vld [vmem:[#allocation5 + $0xd80] sm:$0xff]  ;;  %v2865_v15 = vpack.c.bf16 %v664_v10, %v660_v9 }
 0x18e   :  { %3224 = vmatpush1.bf16.msra.mxu1 %v3223_v21  ;;  %2826 = vmatprep.subr.bf16.mxu0 %v2825_v22  ;;  %v623_v21 = vld [vmem:[#allocation5 + $0xda0] sm:$0xff]  ;;  %v621_v22 = vld [vmem:[#allocation5 + $0xd90] sm:$0xff] }
 0x18f   :  { %3226 = vmatprep.subr.bf16.mxu1 %v3225_v26  ;;  %1290 = vmatprep.mubr.f32.mxu0 %v181_v32  ;;  %v632_v26 = vld [vmem:[#allocation5 + $0xde8] sm:$0xff]  ;;  %v2847_v29 = vpack.c.bf16 %v623_v21, %v619_v20  ;;  %v3247_v30 = vpack.c.bf16 %v625_v24, %v621_v22  ;;  %v665_v20 = vld [vmem:[#allocation5 + $0xef0] sm:$0xff]  ;;  %v674_v24 = vld [vmem:[#allocation5 + $0xf38] sm:$0xff] }
 0x190   :  { %1787 = vmatprep.mubr.f32.mxu1 %v181_v32  ;;  %v2849_v31 = vpack.c.bf16 %v632_v26, %v628_v25  ;;  %v627_v32 = vld [vmem:[#allocation5 + $0xdc0] sm:$0xff]  ;;  %v668_v21 = vld [vmem:[#allocation5 + $0xf08] sm:$0xff] }
 0x191   :  { %2828 = vmatpush1.bf16.msra.mxu0 %v2827_v33  ;;  %v631_v33 = vld [vmem:[#allocation5 + $0xde0] sm:$0xff]  ;;  %v672_v22 = vld [vmem:[#allocation5 + $0xf28] sm:$0xff] }
 0x192   :  { %3228 = vmatpush1.bf16.msra.mxu1 %v3227_v34  ;;  %2830 = vmatprep.subr.bf16.mxu0 %v2829_v35  ;;  %v629_v34 = vld [vmem:[#allocation5 + $0xdd0] sm:$0xff]  ;;  %v3249_v35 = vpack.c.bf16 %v634_v28, %v630_v27  ;;  %v2851_v41 = vpack.c.bf16 %v631_v33, %v627_v32  ;;  %v2869_v27 = vpack.c.bf16 %v672_v22, %v668_v21  ;;  %v667_v28 = vld [vmem:[#allocation5 + $0xf00] sm:$0xff]  ;;  %v676_v33 = vld [vmem:[#allocation5 + $0xf48] sm:$0xff] }
 0x193   :  { %3230 = vmatprep.subr.bf16.mxu1 %v3229_v39  ;;  %v638_v39 = vld [vmem:[#allocation5 + $0xe18] sm:$0xff]  ;;  %v3251_v42 = vpack.c.bf16 %v633_v36, %v629_v34  ;;  %v673_v32 = vld [vmem:[#allocation5 + $0xf30] sm:$0xff]  ;;  %v680_v34 = vld [vmem:[#allocation5 + $0xf68] sm:$0xff] }
 0x194   :  { %v682_v36 = vld [vmem:[#allocation5 + $0xf78] sm:$0xff]  ;;  %v180_v21 = vld [vmem:[#allocation2 + $0x30] sm:$0xff] }
 0x195   :  { %2832 = vmatpush1.bf16.msra.mxu0 %v2831_v45  ;;  %v639_v45 = vld [vmem:[#allocation5 + $0xe20] sm:$0xff] }
 0x196   :  { %3232 = vmatpush1.bf16.msra.mxu1 %v3231_v46  ;;  %2834 = vmatprep.subr.bf16.mxu0 %v2833_v47  ;;  %v637_v46 = vld [vmem:[#allocation5 + $0xe10] sm:$0xff]  ;;  %v3253_v47 = vpack.c.bf16 %v642_v40, %v638_v39  ;;  %v2855_v53 = vpack.c.bf16 %v639_v45, %v635_v44  ;;  %v2873_v39 = vpack.c.bf16 %v680_v34, %v676_v33  ;;  %v675_v40 = vld [vmem:[#allocation5 + $0xf40] sm:$0xff]  ;;  %v684_v45 = vld [vmem:[#allocation5 + $0xf88] sm:$0xff] }
 0x197   :  { %3234 = vmatprep.subr.bf16.mxu1 %v3233_v51  ;;  %v646_v51 = vld [vmem:[#allocation5 + $0xe58] sm:$0xff]  ;;  %v3255_v54 = vpack.c.bf16 %v641_v48, %v637_v46  ;;  %v681_v44 = vld [vmem:[#allocation5 + $0xf70] sm:$0xff]  ;;  %v688_v46 = vld [vmem:[#allocation5 + $0xfa8] sm:$0xff] }
 0x198   :  { %v690_v48 = vld [vmem:[#allocation5 + $0xfb8] sm:$0xff]  ;;  %v183_v34 = vld [vmem:[#allocation2 + $0x48] sm:$0xff] }
 0x199   :  { %2836 = vmatpush1.bf16.msra.mxu0 %v2835_v57  ;;  %v647_v57 = vld [vmem:[#allocation5 + $0xe60] sm:$0xff]  ;;  %v722_v33 = vld [vmem:[#allocation5 + $0x10b8] sm:$0xff] }
 0x19a   :  { %3236 = vmatpush1.bf16.msra.mxu1 %v3235_v58  ;;  %2838 = vmatprep.subr.bf16.mxu0 %v2837_v59  ;;  %v645_v58 = vld [vmem:[#allocation5 + $0xe50] sm:$0xff]  ;;  %v3257_v59 = vpack.c.bf16 %v650_v52, %v646_v51  ;;  %v2859_v1 = vpack.c.bf16 %v647_v57, %v643_v56  ;;  %v2877_v51 = vpack.c.bf16 %v688_v46, %v684_v45  ;;  %v683_v52 = vld [vmem:[#allocation5 + $0xf80] sm:$0xff]  ;;  %v692_v57 = vld [vmem:[#allocation5 + $0xfc8] sm:$0xff] }
 0x19b   :  { %3238 = vmatprep.subr.bf16.mxu1 %v3237_v63  ;;  %v654_v63 = vld [vmem:[#allocation5 + $0xe98] sm:$0xff]  ;;  %v3259_v2 = vpack.c.bf16 %v649_v60, %v645_v58  ;;  %v689_v56 = vld [vmem:[#allocation5 + $0xfb0] sm:$0xff]  ;;  %v696_v58 = vld [vmem:[#allocation5 + $0xfe8] sm:$0xff] }
 0x19c   :  { %v698_v60 = vld [vmem:[#allocation5 + $0xff8] sm:$0xff] }
 0x19d   :  { %2840 = vmatpush1.bf16.msra.mxu0 %v2839_v5  ;;  %v655_v5 = vld [vmem:[#allocation5 + $0xea0] sm:$0xff]  ;;  %v726_v45 = vld [vmem:[#allocation5 + $0x10d8] sm:$0xff] }
 0x19e   :  { %3240 = vmatpush1.bf16.msra.mxu1 %v3239_v6  ;;  %2842 = vmatprep.subr.bf16.mxu0 %v2841_v7  ;;  %v653_v6 = vld [vmem:[#allocation5 + $0xe90] sm:$0xff]  ;;  %v3261_v7 = vpack.c.bf16 %v658_v0, %v654_v63  ;;  %v2863_v13 = vpack.c.bf16 %v655_v5, %v651_v4  ;;  %v2881_v63 = vpack.c.bf16 %v696_v58, %v692_v57  ;;  %v691_v0 = vld [vmem:[#allocation5 + $0xfc0] sm:$0xff]  ;;  %v700_v5 = vld [vmem:[#allocation5 + $0x1008] sm:$0xff] }
 0x19f   :  { %3242 = vmatprep.subr.bf16.mxu1 %v3241_v11  ;;  %v662_v11 = vld [vmem:[#allocation5 + $0xed8] sm:$0xff]  ;;  %v3263_v14 = vpack.c.bf16 %v657_v8, %v653_v6  ;;  %v697_v4 = vld [vmem:[#allocation5 + $0xff0] sm:$0xff]  ;;  %v704_v6 = vld [vmem:[#allocation5 + $0x1028] sm:$0xff] }
 0x1a0   :  { %v706_v8 = vld [vmem:[#allocation5 + $0x1038] sm:$0xff] }
 0x1a1   :  { %2844 = vmatpush1.bf16.msra.mxu0 %v2843_v17  ;;  %v663_v17 = vld [vmem:[#allocation5 + $0xee0] sm:$0xff]  ;;  %v730_v46 = vld [vmem:[#allocation5 + $0x10f8] sm:$0xff] }
 0x1a2   :  { %3244 = vmatpush1.bf16.msra.mxu1 %v3243_v18  ;;  %2846 = vmatprep.subr.bf16.mxu0 %v2845_v19  ;;  %v661_v18 = vld [vmem:[#allocation5 + $0xed0] sm:$0xff]  ;;  %v3265_v19 = vpack.c.bf16 %v666_v12, %v662_v11  ;;  %v2867_v25 = vpack.c.bf16 %v663_v17, %v659_v16  ;;  %v2885_v11 = vpack.c.bf16 %v704_v6, %v700_v5  ;;  %v699_v12 = vld [vmem:[#allocation5 + $0x1000] sm:$0xff]  ;;  %v708_v17 = vld [vmem:[#allocation5 + $0x1048] sm:$0xff] }
 0x1a3   :  { %3246 = vmatprep.subr.bf16.mxu1 %v3245_v23  ;;  %v670_v23 = vld [vmem:[#allocation5 + $0xf18] sm:$0xff]  ;;  %v3267_v26 = vpack.c.bf16 %v665_v20, %v661_v18  ;;  %v705_v16 = vld [vmem:[#allocation5 + $0x1030] sm:$0xff]  ;;  %v712_v18 = vld [vmem:[#allocation5 + $0x1068] sm:$0xff] }
 0x1a4   :  { %v714_v20 = vld [vmem:[#allocation5 + $0x1078] sm:$0xff] }
 0x1a5   :  { %2848 = vmatpush1.bf16.msra.mxu0 %v2847_v29  ;;  %v671_v29 = vld [vmem:[#allocation5 + $0xf20] sm:$0xff]  ;;  %v734_v57 = vld [vmem:[#allocation5 + $0x1118] sm:$0xff] }
 0x1a6   :  { %3248 = vmatpush1.bf16.msra.mxu1 %v3247_v30  ;;  %2850 = vmatprep.subr.bf16.mxu0 %v2849_v31  ;;  %v669_v30 = vld [vmem:[#allocation5 + $0xf10] sm:$0xff]  ;;  %v3269_v31 = vpack.c.bf16 %v674_v24, %v670_v23  ;;  %v2871_v37 = vpack.c.bf16 %v671_v29, %v667_v28  ;;  %v2889_v24 = vpack.c.bf16 %v712_v18, %v708_v17  ;;  %v738_v58 = vld [vmem:[#allocation5 + $0x1138] sm:$0xff] }
 0x1a7   :  { %3250 = vmatprep.subr.bf16.mxu1 %v3249_v35  ;;  %v678_v35 = vld [vmem:[#allocation5 + $0xf58] sm:$0xff]  ;;  %v3271_v38 = vpack.c.bf16 %v673_v32, %v669_v30  ;;  %v713_v29 = vld [vmem:[#allocation5 + $0x1070] sm:$0xff]  ;;  %v716_v30 = vld [vmem:[#allocation5 + $0x1088] sm:$0xff] }
 0x1a8   :  { %v718_v32 = vld [vmem:[#allocation5 + $0x1098] sm:$0xff] }
 0x1a9   :  { %2852 = vmatpush1.bf16.msra.mxu0 %v2851_v41  ;;  %v679_v41 = vld [vmem:[#allocation5 + $0xf60] sm:$0xff]  ;;  %v742_v5 = vld [vmem:[#allocation5 + $0x1158] sm:$0xff] }
 0x1aa   :  { %3252 = vmatpush1.bf16.msra.mxu1 %v3251_v42  ;;  %2854 = vmatprep.subr.bf16.mxu0 %v2853_v43  ;;  %v677_v42 = vld [vmem:[#allocation5 + $0xf50] sm:$0xff]  ;;  %v3273_v43 = vpack.c.bf16 %v682_v36, %v678_v35  ;;  %v2875_v49 = vpack.c.bf16 %v679_v41, %v675_v40  ;;  %v3293_v41 = vpack.c.bf16 %v722_v33, %v718_v32  ;;  %v746_v6 = vld [vmem:[#allocation5 + $0x1178] sm:$0xff] }
 0x1ab   :  { %3254 = vmatprep.subr.bf16.mxu1 %v3253_v47  ;;  %v686_v47 = vld [vmem:[#allocation5 + $0xf98] sm:$0xff]  ;;  %v3275_v50 = vpack.c.bf16 %v681_v44, %v677_v42  ;;  %v717_v40 = vld [vmem:[#allocation5 + $0x1090] sm:$0xff]  ;;  %v728_v44 = vld [vmem:[#allocation5 + $0x10e8] sm:$0xff] }
 0x1ac   :  { %v721_v42 = vld [vmem:[#allocation5 + $0x10b0] sm:$0xff]  ;;  %v750_v17 = vld [vmem:[#allocation5 + $0x1198] sm:$0xff] }
 0x1ad   :  { %2856 = vmatpush1.bf16.msra.mxu0 %v2855_v53  ;;  %v687_v53 = vld [vmem:[#allocation5 + $0xfa0] sm:$0xff]  ;;  %v754_v18 = vld [vmem:[#allocation5 + $0x11b8] sm:$0xff] }
 0x1ae   :  { %3256 = vmatpush1.bf16.msra.mxu1 %v3255_v54  ;;  %2858 = vmatprep.subr.bf16.mxu0 %v2857_v55  ;;  %v685_v54 = vld [vmem:[#allocation5 + $0xf90] sm:$0xff]  ;;  %v3277_v55 = vpack.c.bf16 %v690_v48, %v686_v47  ;;  %v2879_v61 = vpack.c.bf16 %v687_v53, %v683_v52  ;;  %v3295_v48 = vpack.c.bf16 %v721_v42, %v717_v40  ;;  %v768_v40 = vld [vmem:[#allocation5 + $0x1228] sm:$0xff]  ;;  %v770_v42 = vld [vmem:[#allocation5 + $0x1238] sm:$0xff] }
 0x1af   :  { %3258 = vmatprep.subr.bf16.mxu1 %v3257_v59  ;;  %v694_v59 = vld [vmem:[#allocation5 + $0xfd8] sm:$0xff]  ;;  %v3279_v62 = vpack.c.bf16 %v689_v56, %v685_v54  ;;  %v725_v52 = vld [vmem:[#allocation5 + $0x10d0] sm:$0xff]  ;;  %v3297_v53 = vpack.c.bf16 %v730_v46, %v726_v45  ;;  %v736_v56 = vld [vmem:[#allocation5 + $0x1128] sm:$0xff] }
 0x1b0   :  { %v729_v54 = vld [vmem:[#allocation5 + $0x10f0] sm:$0xff]  ;;  %v763_v46 = vld [vmem:[#allocation5 + $0x1200] sm:$0xff] }
 0x1b1   :  { %2860 = vmatpush1.bf16.msra.mxu0 %v2859_v1  ;;  %v695_v1 = vld [vmem:[#allocation5 + $0xfe0] sm:$0xff] }
 0x1b2   :  { %3260 = vmatpush1.bf16.msra.mxu1 %v3259_v2  ;;  %2862 = vmatprep.subr.bf16.mxu0 %v2861_v3  ;;  %v693_v2 = vld [vmem:[#allocation5 + $0xfd0] sm:$0xff]  ;;  %v3281_v3 = vpack.c.bf16 %v698_v60, %v694_v59  ;;  %v2883_v9 = vpack.c.bf16 %v695_v1, %v691_v0  ;;  %v3299_v60 = vpack.c.bf16 %v729_v54, %v725_v52  ;;  %v776_v52 = vld [vmem:[#allocation5 + $0x1268] sm:$0xff]  ;;  %v778_v54 = vld [vmem:[#allocation5 + $0x1278] sm:$0xff] }
 0x1b3   :  { %3262 = vmatprep.subr.bf16.mxu1 %v3261_v7  ;;  %v702_v7 = vld [vmem:[#allocation5 + $0x1018] sm:$0xff]  ;;  %v3283_v10 = vpack.c.bf16 %v697_v4, %v693_v2  ;;  %v733_v0 = vld [vmem:[#allocation5 + $0x1110] sm:$0xff]  ;;  %v3301_v1 = vpack.c.bf16 %v738_v58, %v734_v57  ;;  %v744_v4 = vld [vmem:[#allocation5 + $0x1168] sm:$0xff] }
 0x1b4   :  { %v737_v2 = vld [vmem:[#allocation5 + $0x1130] sm:$0xff]  ;;  %v771_v58 = vld [vmem:[#allocation5 + $0x1240] sm:$0xff] }
 0x1b5   :  { %2864 = vmatpush1.bf16.msra.mxu0 %v2863_v13  ;;  %v703_v13 = vld [vmem:[#allocation5 + $0x1020] sm:$0xff] }
 0x1b6   :  { %3264 = vmatpush1.bf16.msra.mxu1 %v3263_v14  ;;  %2866 = vmatprep.subr.bf16.mxu0 %v2865_v15  ;;  %v701_v14 = vld [vmem:[#allocation5 + $0x1010] sm:$0xff]  ;;  %v3285_v15 = vpack.c.bf16 %v706_v8, %v702_v7  ;;  %v2887_v22 = vpack.c.bf16 %v703_v13, %v699_v12  ;;  %v3303_v8 = vpack.c.bf16 %v737_v2, %v733_v0  ;;  %v784_v0 = vld [vmem:[#allocation5 + $0x12a8] sm:$0xff]  ;;  %v786_v2 = vld [vmem:[#allocation5 + $0x12b8] sm:$0xff] }
 0x1b7   :  { %3266 = vmatprep.subr.bf16.mxu1 %v3265_v19  ;;  %v710_v19 = vld [vmem:[#allocation5 + $0x1058] sm:$0xff]  ;;  %v3287_v23 = vpack.c.bf16 %v705_v16, %v701_v14  ;;  %v741_v12 = vld [vmem:[#allocation5 + $0x1150] sm:$0xff]  ;;  %v3305_v13 = vpack.c.bf16 %v746_v6, %v742_v5  ;;  %v752_v16 = vld [vmem:[#allocation5 + $0x11a8] sm:$0xff] }
 0x1b8   :  { %v3289_v28 = vpack.c.bf16 %v714_v20, %v710_v19  ;;  %v745_v14 = vld [vmem:[#allocation5 + $0x1170] sm:$0xff]  ;;  %v779_v6 = vld [vmem:[#allocation5 + $0x1280] sm:$0xff] }
 0x1b9   :  { %2868 = vmatpush1.bf16.msra.mxu0 %v2867_v25  ;;  %v707_v25 = vld [vmem:[#allocation5 + $0x1040] sm:$0xff]  ;;  %v3307_v20 = vpack.c.bf16 %v745_v14, %v741_v12  ;;  %v792_v12 = vld [vmem:[#allocation5 + $0x12e8] sm:$0xff]  ;;  %v794_v14 = vld [vmem:[#allocation5 + $0x12f8] sm:$0xff] }
 0x1ba   :  { %3268 = vmatpush1.bf16.msra.mxu1 %v3267_v26  ;;  %2870 = vmatprep.subr.bf16.mxu0 %v2869_v27  ;;  %v711_v26 = vld [vmem:[#allocation5 + $0x1060] sm:$0xff]  ;;  %v709_v27 = vld [vmem:[#allocation5 + $0x1050] sm:$0xff] }
 0x1bb   :  { %3270 = vmatprep.subr.bf16.mxu1 %v3269_v31  ;;  %v720_v31 = vld [vmem:[#allocation5 + $0x10a8] sm:$0xff]  ;;  %v2891_v35 = vpack.c.bf16 %v711_v26, %v707_v25  ;;  %v3291_v36 = vpack.c.bf16 %v713_v29, %v709_v27  ;;  %v3309_v25 = vpack.c.bf16 %v754_v18, %v750_v17  ;;  %v753_v26 = vld [vmem:[#allocation5 + $0x11b0] sm:$0xff]  ;;  %v758_v29 = vld [vmem:[#allocation5 + $0x11d8] sm:$0xff] }
 0x1bc   :  { %v756_v27 = vld [vmem:[#allocation5 + $0x11c8] sm:$0xff]  ;;  %v787_v18 = vld [vmem:[#allocation5 + $0x12c0] sm:$0xff] }
 0x1bd   :  { %2872 = vmatpush1.bf16.msra.mxu0 %v2871_v37  ;;  %v2893_v37 = vpack.c.bf16 %v720_v31, %v716_v30  ;;  %v762_v30 = vld [vmem:[#allocation5 + $0x11f8] sm:$0xff] }
 0x1be   :  { %3272 = vmatpush1.bf16.msra.mxu1 %v3271_v38  ;;  %2874 = vmatprep.subr.bf16.mxu0 %v2873_v39  ;;  %v715_v38 = vld [vmem:[#allocation5 + $0x1080] sm:$0xff] }
 0x1bf   :  { %3274 = vmatprep.subr.bf16.mxu1 %v3273_v43  ;;  %v719_v39 = vld [vmem:[#allocation5 + $0x10a0] sm:$0xff]  ;;  %v724_v43 = vld [vmem:[#allocation5 + $0x10c8] sm:$0xff] }
 0x1c0   :  { %v2895_v47 = vpack.c.bf16 %v719_v39, %v715_v38  ;;  %v761_v38 = vld [vmem:[#allocation5 + $0x11f0] sm:$0xff]  ;;  %v764_v39 = vld [vmem:[#allocation5 + $0x1208] sm:$0xff] }
 0x1c1   :  { %2876 = vmatpush1.bf16.msra.mxu0 %v2875_v49  ;;  %v2897_v49 = vpack.c.bf16 %v728_v44, %v724_v43  ;;  %v2917_v45 = vpack.c.bf16 %v768_v40, %v764_v39 }
 0x1c2   :  { %3276 = vmatpush1.bf16.msra.mxu1 %v3275_v50  ;;  %2878 = vmatprep.subr.bf16.mxu0 %v2877_v51  ;;  %v723_v50 = vld [vmem:[#allocation5 + $0x10c0] sm:$0xff] }
 0x1c3   :  { %3278 = vmatprep.subr.bf16.mxu1 %v3277_v55  ;;  %v727_v51 = vld [vmem:[#allocation5 + $0x10e0] sm:$0xff]  ;;  %v732_v55 = vld [vmem:[#allocation5 + $0x1108] sm:$0xff] }
 0x1c4   :  { %v2899_v59 = vpack.c.bf16 %v727_v51, %v723_v50  ;;  %v769_v50 = vld [vmem:[#allocation5 + $0x1230] sm:$0xff]  ;;  %v772_v51 = vld [vmem:[#allocation5 + $0x1248] sm:$0xff] }
 0x1c5   :  { %2880 = vmatpush1.bf16.msra.mxu0 %v2879_v61  ;;  %v2901_v61 = vpack.c.bf16 %v736_v56, %v732_v55  ;;  %v2921_v57 = vpack.c.bf16 %v776_v52, %v772_v51 }
 0x1c6   :  { %3280 = vmatpush1.bf16.msra.mxu1 %v3279_v62  ;;  %2882 = vmatprep.subr.bf16.mxu0 %v2881_v63  ;;  %v731_v62 = vld [vmem:[#allocation5 + $0x1100] sm:$0xff] }
 0x1c7   :  { %3282 = vmatprep.subr.bf16.mxu1 %v3281_v3  ;;  %v735_v63 = vld [vmem:[#allocation5 + $0x1120] sm:$0xff]  ;;  %v740_v3 = vld [vmem:[#allocation5 + $0x1148] sm:$0xff] }
 0x1c8   :  { %v2903_v7 = vpack.c.bf16 %v735_v63, %v731_v62  ;;  %v777_v62 = vld [vmem:[#allocation5 + $0x1270] sm:$0xff]  ;;  %v780_v63 = vld [vmem:[#allocation5 + $0x1288] sm:$0xff] }
 0x1c9   :  { %2884 = vmatpush1.bf16.msra.mxu0 %v2883_v9  ;;  %v2905_v9 = vpack.c.bf16 %v744_v4, %v740_v3  ;;  %v2925_v5 = vpack.c.bf16 %v784_v0, %v780_v63 }
 0x1ca   :  { %3284 = vmatpush1.bf16.msra.mxu1 %v3283_v10  ;;  %2886 = vmatprep.subr.bf16.mxu0 %v2885_v11  ;;  %v739_v10 = vld [vmem:[#allocation5 + $0x1140] sm:$0xff] }
 0x1cb   :  { %3286 = vmatprep.subr.bf16.mxu1 %v3285_v15  ;;  %v743_v11 = vld [vmem:[#allocation5 + $0x1160] sm:$0xff]  ;;  %v748_v15 = vld [vmem:[#allocation5 + $0x1188] sm:$0xff] }
 0x1cc   :  { %1291 = vmatmul.mubr.f32.vlgmr.msra.gmra.mrb[0].mxu0 %v180_v21  ;;  %v2907_v19 = vpack.c.bf16 %v743_v11, %v739_v10  ;;  %v785_v10 = vld [vmem:[#allocation5 + $0x12b0] sm:$0xff]  ;;  %v788_v11 = vld [vmem:[#allocation5 + $0x12c8] sm:$0xff] }
 0x1cd   :  { %2888 = vmatpush1.bf16.msra.mxu0 %v2887_v22  ;;  %1788 = vmatmul.mubr.f32.vlgmr.msra.gmra.mrb[0].mxu1 %v180_v21  ;;  %v2909_v21 = vpack.c.bf16 %v752_v16, %v748_v15  ;;  %v747_v22 = vld [vmem:[#allocation5 + $0x1180] sm:$0xff]  ;;  %v2929_v17 = vpack.c.bf16 %v792_v12, %v788_v11 }
 0x1ce   :  { %3288 = vmatpush1.bf16.msra.mxu1 %v3287_v23  ;;  %2890 = vmatprep.subr.bf16.mxu0 %v2889_v24  ;;  %v751_v23 = vld [vmem:[#allocation5 + $0x11a0] sm:$0xff]  ;;  %v749_v24 = vld [vmem:[#allocation5 + $0x1190] sm:$0xff] }
 0x1cf   :  { %3290 = vmatprep.subr.bf16.mxu1 %v3289_v28  ;;  %1361 = vmatprep.mubr.f32.mxu0 %v183_v34  ;;  %v760_v28 = vld [vmem:[#allocation5 + $0x11e8] sm:$0xff]  ;;  %v2911_v31 = vpack.c.bf16 %v751_v23, %v747_v22  ;;  %v3311_v32 = vpack.c.bf16 %v753_v26, %v749_v24  ;;  %v793_v22 = vld [vmem:[#allocation5 + $0x12f0] sm:$0xff]  ;;  %v802_v26 = vld [vmem:[#allocation5 + $0x1338] sm:$0xff] }
 0x1d0   :  { %1858 = vmatprep.mubr.f32.mxu1 %v183_v34  ;;  %v2913_v33 = vpack.c.bf16 %v760_v28, %v756_v27  ;;  %v755_v34 = vld [vmem:[#allocation5 + $0x11c0] sm:$0xff]  ;;  %v796_v23 = vld [vmem:[#allocation5 + $0x1308] sm:$0xff] }
 0x1d1   :  { %2892 = vmatpush1.bf16.msra.mxu0 %v2891_v35  ;;  %v759_v35 = vld [vmem:[#allocation5 + $0x11e0] sm:$0xff]  ;;  %v800_v24 = vld [vmem:[#allocation5 + $0x1328] sm:$0xff] }
 0x1d2   :  { %3292 = vmatpush1.bf16.msra.mxu1 %v3291_v36  ;;  %2894 = vmatprep.subr.bf16.mxu0 %v2893_v37  ;;  %v757_v36 = vld [vmem:[#allocation5 + $0x11d0] sm:$0xff]  ;;  %v3313_v37 = vpack.c.bf16 %v762_v30, %v758_v29  ;;  %v2915_v43 = vpack.c.bf16 %v759_v35, %v755_v34  ;;  %v2933_v29 = vpack.c.bf16 %v800_v24, %v796_v23  ;;  %v795_v30 = vld [vmem:[#allocation5 + $0x1300] sm:$0xff]  ;;  %v804_v35 = vld [vmem:[#allocation5 + $0x1348] sm:$0xff] }
 0x1d3   :  { %3294 = vmatprep.subr.bf16.mxu1 %v3293_v41  ;;  %v766_v41 = vld [vmem:[#allocation5 + $0x1218] sm:$0xff]  ;;  %v3315_v44 = vpack.c.bf16 %v761_v38, %v757_v36  ;;  %v801_v34 = vld [vmem:[#allocation5 + $0x1330] sm:$0xff]  ;;  %v808_v36 = vld [vmem:[#allocation5 + $0x1368] sm:$0xff] }
 0x1d4   :  { %v810_v38 = vld [vmem:[#allocation5 + $0x1378] sm:$0xff] }
 0x1d5   :  { %2896 = vmatpush1.bf16.msra.mxu0 %v2895_v47  ;;  %v767_v47 = vld [vmem:[#allocation5 + $0x1220] sm:$0xff]  ;;  %v182_v23 = vld [vmem:[#allocation2 + $0x40] sm:$0xff] }
 0x1d6   :  { %3296 = vmatpush1.bf16.msra.mxu1 %v3295_v48  ;;  %2898 = vmatprep.subr.bf16.mxu0 %v2897_v49  ;;  %v765_v48 = vld [vmem:[#allocation5 + $0x1210] sm:$0xff]  ;;  %v3317_v49 = vpack.c.bf16 %v770_v42, %v766_v41  ;;  %v2919_v55 = vpack.c.bf16 %v767_v47, %v763_v46  ;;  %v2937_v41 = vpack.c.bf16 %v808_v36, %v804_v35  ;;  %v803_v42 = vld [vmem:[#allocation5 + $0x1340] sm:$0xff]  ;;  %v812_v47 = vld [vmem:[#allocation5 + $0x1388] sm:$0xff] }
 0x1d7   :  { %3298 = vmatprep.subr.bf16.mxu1 %v3297_v53  ;;  %v774_v53 = vld [vmem:[#allocation5 + $0x1258] sm:$0xff]  ;;  %v3319_v56 = vpack.c.bf16 %v769_v50, %v765_v48  ;;  %v809_v46 = vld [vmem:[#allocation5 + $0x1370] sm:$0xff]  ;;  %v816_v48 = vld [vmem:[#allocation5 + $0x13a8] sm:$0xff] }
 0x1d8   :  { %v818_v50 = vld [vmem:[#allocation5 + $0x13b8] sm:$0xff]  ;;  %v185_v36 = vld [vmem:[#allocation2 + $0x58] sm:$0xff] }
 0x1d9   :  { %2900 = vmatpush1.bf16.msra.mxu0 %v2899_v59  ;;  %v775_v59 = vld [vmem:[#allocation5 + $0x1260] sm:$0xff]  ;;  %v850_v35 = vld [vmem:[#allocation5 + $0x14b8] sm:$0xff] }
 0x1da   :  { %3300 = vmatpush1.bf16.msra.mxu1 %v3299_v60  ;;  %2902 = vmatprep.subr.bf16.mxu0 %v2901_v61  ;;  %v773_v60 = vld [vmem:[#allocation5 + $0x1250] sm:$0xff]  ;;  %v3321_v61 = vpack.c.bf16 %v778_v54, %v774_v53  ;;  %v2923_v3 = vpack.c.bf16 %v775_v59, %v771_v58  ;;  %v2941_v53 = vpack.c.bf16 %v816_v48, %v812_v47  ;;  %v811_v54 = vld [vmem:[#allocation5 + $0x1380] sm:$0xff]  ;;  %v820_v59 = vld [vmem:[#allocation5 + $0x13c8] sm:$0xff] }
 0x1db   :  { %3302 = vmatprep.subr.bf16.mxu1 %v3301_v1  ;;  %v782_v1 = vld [vmem:[#allocation5 + $0x1298] sm:$0xff]  ;;  %v3323_v4 = vpack.c.bf16 %v777_v62, %v773_v60  ;;  %v817_v58 = vld [vmem:[#allocation5 + $0x13b0] sm:$0xff]  ;;  %v824_v60 = vld [vmem:[#allocation5 + $0x13e8] sm:$0xff] }
 0x1dc   :  { %v826_v62 = vld [vmem:[#allocation5 + $0x13f8] sm:$0xff] }
 0x1dd   :  { %2904 = vmatpush1.bf16.msra.mxu0 %v2903_v7  ;;  %v783_v7 = vld [vmem:[#allocation5 + $0x12a0] sm:$0xff]  ;;  %v854_v47 = vld [vmem:[#allocation5 + $0x14d8] sm:$0xff] }
 0x1de   :  { %3304 = vmatpush1.bf16.msra.mxu1 %v3303_v8  ;;  %2906 = vmatprep.subr.bf16.mxu0 %v2905_v9  ;;  %v781_v8 = vld [vmem:[#allocation5 + $0x1290] sm:$0xff]  ;;  %v3325_v9 = vpack.c.bf16 %v786_v2, %v782_v1  ;;  %v2927_v15 = vpack.c.bf16 %v783_v7, %v779_v6  ;;  %v2945_v1 = vpack.c.bf16 %v824_v60, %v820_v59  ;;  %v819_v2 = vld [vmem:[#allocation5 + $0x13c0] sm:$0xff]  ;;  %v828_v7 = vld [vmem:[#allocation5 + $0x1408] sm:$0xff] }
 0x1df   :  { %3306 = vmatprep.subr.bf16.mxu1 %v3305_v13  ;;  %v790_v13 = vld [vmem:[#allocation5 + $0x12d8] sm:$0xff]  ;;  %v3327_v16 = vpack.c.bf16 %v785_v10, %v781_v8  ;;  %v825_v6 = vld [vmem:[#allocation5 + $0x13f0] sm:$0xff]  ;;  %v832_v8 = vld [vmem:[#allocation5 + $0x1428] sm:$0xff] }
 0x1e0   :  { %v834_v10 = vld [vmem:[#allocation5 + $0x1438] sm:$0xff] }
 0x1e1   :  { %2908 = vmatpush1.bf16.msra.mxu0 %v2907_v19  ;;  %v791_v19 = vld [vmem:[#allocation5 + $0x12e0] sm:$0xff]  ;;  %v858_v48 = vld [vmem:[#allocation5 + $0x14f8] sm:$0xff] }
 0x1e2   :  { %3308 = vmatpush1.bf16.msra.mxu1 %v3307_v20  ;;  %2910 = vmatprep.subr.bf16.mxu0 %v2909_v21  ;;  %v789_v20 = vld [vmem:[#allocation5 + $0x12d0] sm:$0xff]  ;;  %v3329_v21 = vpack.c.bf16 %v794_v14, %v790_v13  ;;  %v2931_v27 = vpack.c.bf16 %v791_v19, %v787_v18  ;;  %v2949_v13 = vpack.c.bf16 %v832_v8, %v828_v7  ;;  %v827_v14 = vld [vmem:[#allocation5 + $0x1400] sm:$0xff]  ;;  %v836_v19 = vld [vmem:[#allocation5 + $0x1448] sm:$0xff] }
 0x1e3   :  { %3310 = vmatprep.subr.bf16.mxu1 %v3309_v25  ;;  %v798_v25 = vld [vmem:[#allocation5 + $0x1318] sm:$0xff]  ;;  %v3331_v28 = vpack.c.bf16 %v793_v22, %v789_v20  ;;  %v833_v18 = vld [vmem:[#allocation5 + $0x1430] sm:$0xff]  ;;  %v840_v20 = vld [vmem:[#allocation5 + $0x1468] sm:$0xff] }
 0x1e4   :  { %v842_v22 = vld [vmem:[#allocation5 + $0x1478] sm:$0xff] }
 0x1e5   :  { %2912 = vmatpush1.bf16.msra.mxu0 %v2911_v31  ;;  %v799_v31 = vld [vmem:[#allocation5 + $0x1320] sm:$0xff]  ;;  %v862_v59 = vld [vmem:[#allocation5 + $0x1518] sm:$0xff] }
 0x1e6   :  { %3312 = vmatpush1.bf16.msra.mxu1 %v3311_v32  ;;  %2914 = vmatprep.subr.bf16.mxu0 %v2913_v33  ;;  %v797_v32 = vld [vmem:[#allocation5 + $0x1310] sm:$0xff]  ;;  %v3333_v33 = vpack.c.bf16 %v802_v26, %v798_v25  ;;  %v2935_v39 = vpack.c.bf16 %v799_v31, %v795_v30  ;;  %v2953_v26 = vpack.c.bf16 %v840_v20, %v836_v19  ;;  %v866_v60 = vld [vmem:[#allocation5 + $0x1538] sm:$0xff] }
 0x1e7   :  { %3314 = vmatprep.subr.bf16.mxu1 %v3313_v37  ;;  %v806_v37 = vld [vmem:[#allocation5 + $0x1358] sm:$0xff]  ;;  %v3335_v40 = vpack.c.bf16 %v801_v34, %v797_v32  ;;  %v841_v31 = vld [vmem:[#allocation5 + $0x1470] sm:$0xff]  ;;  %v844_v32 = vld [vmem:[#allocation5 + $0x1488] sm:$0xff] }
 0x1e8   :  { %v846_v34 = vld [vmem:[#allocation5 + $0x1498] sm:$0xff] }
 0x1e9   :  { %2916 = vmatpush1.bf16.msra.mxu0 %v2915_v43  ;;  %v807_v43 = vld [vmem:[#allocation5 + $0x1360] sm:$0xff]  ;;  %v870_v7 = vld [vmem:[#allocation5 + $0x1558] sm:$0xff] }
 0x1ea   :  { %3316 = vmatpush1.bf16.msra.mxu1 %v3315_v44  ;;  %2918 = vmatprep.subr.bf16.mxu0 %v2917_v45  ;;  %v805_v44 = vld [vmem:[#allocation5 + $0x1350] sm:$0xff]  ;;  %v3337_v45 = vpack.c.bf16 %v810_v38, %v806_v37  ;;  %v2939_v51 = vpack.c.bf16 %v807_v43, %v803_v42  ;;  %v3357_v43 = vpack.c.bf16 %v850_v35, %v846_v34  ;;  %v874_v8 = vld [vmem:[#allocation5 + $0x1578] sm:$0xff] }
 0x1eb   :  { %3318 = vmatprep.subr.bf16.mxu1 %v3317_v49  ;;  %v814_v49 = vld [vmem:[#allocation5 + $0x1398] sm:$0xff]  ;;  %v3339_v52 = vpack.c.bf16 %v809_v46, %v805_v44  ;;  %v845_v42 = vld [vmem:[#allocation5 + $0x1490] sm:$0xff]  ;;  %v856_v46 = vld [vmem:[#allocation5 + $0x14e8] sm:$0xff] }
 0x1ec   :  { %v849_v44 = vld [vmem:[#allocation5 + $0x14b0] sm:$0xff]  ;;  %v878_v19 = vld [vmem:[#allocation5 + $0x1598] sm:$0xff] }
 0x1ed   :  { %2920 = vmatpush1.bf16.msra.mxu0 %v2919_v55  ;;  %v815_v55 = vld [vmem:[#allocation5 + $0x13a0] sm:$0xff]  ;;  %v882_v20 = vld [vmem:[#allocation5 + $0x15b8] sm:$0xff] }
 0x1ee   :  { %3320 = vmatpush1.bf16.msra.mxu1 %v3319_v56  ;;  %2922 = vmatprep.subr.bf16.mxu0 %v2921_v57  ;;  %v813_v56 = vld [vmem:[#allocation5 + $0x1390] sm:$0xff]  ;;  %v3341_v57 = vpack.c.bf16 %v818_v50, %v814_v49  ;;  %v2943_v63 = vpack.c.bf16 %v815_v55, %v811_v54  ;;  %v3359_v50 = vpack.c.bf16 %v849_v44, %v845_v42  ;;  %v896_v42 = vld [vmem:[#allocation5 + $0x1628] sm:$0xff]  ;;  %v898_v44 = vld [vmem:[#allocation5 + $0x1638] sm:$0xff] }
 0x1ef   :  { %3322 = vmatprep.subr.bf16.mxu1 %v3321_v61  ;;  %v822_v61 = vld [vmem:[#allocation5 + $0x13d8] sm:$0xff]  ;;  %v3343_v0 = vpack.c.bf16 %v817_v58, %v813_v56  ;;  %v853_v54 = vld [vmem:[#allocation5 + $0x14d0] sm:$0xff]  ;;  %v3361_v55 = vpack.c.bf16 %v858_v48, %v854_v47  ;;  %v864_v58 = vld [vmem:[#allocation5 + $0x1528] sm:$0xff] }
 0x1f0   :  { %v857_v56 = vld [vmem:[#allocation5 + $0x14f0] sm:$0xff]  ;;  %v891_v48 = vld [vmem:[#allocation5 + $0x1600] sm:$0xff] }
 0x1f1   :  { %2924 = vmatpush1.bf16.msra.mxu0 %v2923_v3  ;;  %v823_v3 = vld [vmem:[#allocation5 + $0x13e0] sm:$0xff] }
 0x1f2   :  { %3324 = vmatpush1.bf16.msra.mxu1 %v3323_v4  ;;  %2926 = vmatprep.subr.bf16.mxu0 %v2925_v5  ;;  %v821_v4 = vld [vmem:[#allocation5 + $0x13d0] sm:$0xff]  ;;  %v3345_v5 = vpack.c.bf16 %v826_v62, %v822_v61  ;;  %v2947_v11 = vpack.c.bf16 %v823_v3, %v819_v2  ;;  %v3363_v62 = vpack.c.bf16 %v857_v56, %v853_v54  ;;  %v904_v54 = vld [vmem:[#allocation5 + $0x1668] sm:$0xff]  ;;  %v906_v56 = vld [vmem:[#allocation5 + $0x1678] sm:$0xff] }
 0x1f3   :  { %3326 = vmatprep.subr.bf16.mxu1 %v3325_v9  ;;  %v830_v9 = vld [vmem:[#allocation5 + $0x1418] sm:$0xff]  ;;  %v3347_v12 = vpack.c.bf16 %v825_v6, %v821_v4  ;;  %v861_v2 = vld [vmem:[#allocation5 + $0x1510] sm:$0xff]  ;;  %v3365_v3 = vpack.c.bf16 %v866_v60, %v862_v59  ;;  %v872_v6 = vld [vmem:[#allocation5 + $0x1568] sm:$0xff] }
 0x1f4   :  { %v865_v4 = vld [vmem:[#allocation5 + $0x1530] sm:$0xff]  ;;  %v899_v60 = vld [vmem:[#allocation5 + $0x1640] sm:$0xff] }
 0x1f5   :  { %2928 = vmatpush1.bf16.msra.mxu0 %v2927_v15  ;;  %v831_v15 = vld [vmem:[#allocation5 + $0x1420] sm:$0xff] }
 0x1f6   :  { %3328 = vmatpush1.bf16.msra.mxu1 %v3327_v16  ;;  %2930 = vmatprep.subr.bf16.mxu0 %v2929_v17  ;;  %v829_v16 = vld [vmem:[#allocation5 + $0x1410] sm:$0xff]  ;;  %v3349_v17 = vpack.c.bf16 %v834_v10, %v830_v9  ;;  %v2951_v24 = vpack.c.bf16 %v831_v15, %v827_v14  ;;  %v3367_v10 = vpack.c.bf16 %v865_v4, %v861_v2  ;;  %v912_v2 = vld [vmem:[#allocation5 + $0x16a8] sm:$0xff]  ;;  %v914_v4 = vld [vmem:[#allocation5 + $0x16b8] sm:$0xff] }
 0x1f7   :  { %3330 = vmatprep.subr.bf16.mxu1 %v3329_v21  ;;  %v838_v21 = vld [vmem:[#allocation5 + $0x1458] sm:$0xff]  ;;  %v3351_v25 = vpack.c.bf16 %v833_v18, %v829_v16  ;;  %v869_v14 = vld [vmem:[#allocation5 + $0x1550] sm:$0xff]  ;;  %v3369_v15 = vpack.c.bf16 %v874_v8, %v870_v7  ;;  %v880_v18 = vld [vmem:[#allocation5 + $0x15a8] sm:$0xff] }
 0x1f8   :  { %v3353_v30 = vpack.c.bf16 %v842_v22, %v838_v21  ;;  %v873_v16 = vld [vmem:[#allocation5 + $0x1570] sm:$0xff]  ;;  %v907_v8 = vld [vmem:[#allocation5 + $0x1680] sm:$0xff] }
 0x1f9   :  { %2932 = vmatpush1.bf16.msra.mxu0 %v2931_v27  ;;  %v835_v27 = vld [vmem:[#allocation5 + $0x1440] sm:$0xff]  ;;  %v3371_v22 = vpack.c.bf16 %v873_v16, %v869_v14  ;;  %v920_v14 = vld [vmem:[#allocation5 + $0x16e8] sm:$0xff]  ;;  %v922_v16 = vld [vmem:[#allocation5 + $0x16f8] sm:$0xff] }
 0x1fa   :  { %3332 = vmatpush1.bf16.msra.mxu1 %v3331_v28  ;;  %2934 = vmatprep.subr.bf16.mxu0 %v2933_v29  ;;  %v839_v28 = vld [vmem:[#allocation5 + $0x1460] sm:$0xff]  ;;  %v837_v29 = vld [vmem:[#allocation5 + $0x1450] sm:$0xff] }
 0x1fb   :  { %3334 = vmatprep.subr.bf16.mxu1 %v3333_v33  ;;  %v848_v33 = vld [vmem:[#allocation5 + $0x14a8] sm:$0xff]  ;;  %v2955_v37 = vpack.c.bf16 %v839_v28, %v835_v27  ;;  %v3355_v38 = vpack.c.bf16 %v841_v31, %v837_v29  ;;  %v3373_v27 = vpack.c.bf16 %v882_v20, %v878_v19  ;;  %v881_v28 = vld [vmem:[#allocation5 + $0x15b0] sm:$0xff]  ;;  %v886_v31 = vld [vmem:[#allocation5 + $0x15d8] sm:$0xff] }
 0x1fc   :  { %v884_v29 = vld [vmem:[#allocation5 + $0x15c8] sm:$0xff]  ;;  %v915_v20 = vld [vmem:[#allocation5 + $0x16c0] sm:$0xff] }
 0x1fd   :  { %2936 = vmatpush1.bf16.msra.mxu0 %v2935_v39  ;;  %v2957_v39 = vpack.c.bf16 %v848_v33, %v844_v32  ;;  %v890_v32 = vld [vmem:[#allocation5 + $0x15f8] sm:$0xff] }
 0x1fe   :  { %3336 = vmatpush1.bf16.msra.mxu1 %v3335_v40  ;;  %2938 = vmatprep.subr.bf16.mxu0 %v2937_v41  ;;  %v843_v40 = vld [vmem:[#allocation5 + $0x1480] sm:$0xff] }
 0x1ff   :  { %3338 = vmatprep.subr.bf16.mxu1 %v3337_v45  ;;  %v847_v41 = vld [vmem:[#allocation5 + $0x14a0] sm:$0xff]  ;;  %v852_v45 = vld [vmem:[#allocation5 + $0x14c8] sm:$0xff] }
 0x200   :  { %v2959_v49 = vpack.c.bf16 %v847_v41, %v843_v40  ;;  %v889_v40 = vld [vmem:[#allocation5 + $0x15f0] sm:$0xff]  ;;  %v892_v41 = vld [vmem:[#allocation5 + $0x1608] sm:$0xff] }
 0x201   :  { %2940 = vmatpush1.bf16.msra.mxu0 %v2939_v51  ;;  %v2961_v51 = vpack.c.bf16 %v856_v46, %v852_v45  ;;  %v2981_v47 = vpack.c.bf16 %v896_v42, %v892_v41 }
 0x202   :  { %3340 = vmatpush1.bf16.msra.mxu1 %v3339_v52  ;;  %2942 = vmatprep.subr.bf16.mxu0 %v2941_v53  ;;  %v851_v52 = vld [vmem:[#allocation5 + $0x14c0] sm:$0xff] }
 0x203   :  { %3342 = vmatprep.subr.bf16.mxu1 %v3341_v57  ;;  %v855_v53 = vld [vmem:[#allocation5 + $0x14e0] sm:$0xff]  ;;  %v860_v57 = vld [vmem:[#allocation5 + $0x1508] sm:$0xff] }
 0x204   :  { %v2963_v61 = vpack.c.bf16 %v855_v53, %v851_v52  ;;  %v897_v52 = vld [vmem:[#allocation5 + $0x1630] sm:$0xff]  ;;  %v900_v53 = vld [vmem:[#allocation5 + $0x1648] sm:$0xff] }
 0x205   :  { %2944 = vmatpush1.bf16.msra.mxu0 %v2943_v63  ;;  %v2965_v63 = vpack.c.bf16 %v864_v58, %v860_v57  ;;  %v2985_v59 = vpack.c.bf16 %v904_v54, %v900_v53 }
 0x206   :  { %3344 = vmatpush1.bf16.msra.mxu1 %v3343_v0  ;;  %2946 = vmatprep.subr.bf16.mxu0 %v2945_v1  ;;  %v859_v0 = vld [vmem:[#allocation5 + $0x1500] sm:$0xff] }
 0x207   :  { %3346 = vmatprep.subr.bf16.mxu1 %v3345_v5  ;;  %v863_v1 = vld [vmem:[#allocation5 + $0x1520] sm:$0xff]  ;;  %v868_v5 = vld [vmem:[#allocation5 + $0x1548] sm:$0xff] }
 0x208   :  { %v2967_v9 = vpack.c.bf16 %v863_v1, %v859_v0  ;;  %v905_v0 = vld [vmem:[#allocation5 + $0x1670] sm:$0xff]  ;;  %v908_v1 = vld [vmem:[#allocation5 + $0x1688] sm:$0xff] }
 0x209   :  { %2948 = vmatpush1.bf16.msra.mxu0 %v2947_v11  ;;  %v2969_v11 = vpack.c.bf16 %v872_v6, %v868_v5  ;;  %v2989_v7 = vpack.c.bf16 %v912_v2, %v908_v1 }
 0x20a   :  { %3348 = vmatpush1.bf16.msra.mxu1 %v3347_v12  ;;  %2950 = vmatprep.subr.bf16.mxu0 %v2949_v13  ;;  %v867_v12 = vld [vmem:[#allocation5 + $0x1540] sm:$0xff] }
 0x20b   :  { %3350 = vmatprep.subr.bf16.mxu1 %v3349_v17  ;;  %v871_v13 = vld [vmem:[#allocation5 + $0x1560] sm:$0xff]  ;;  %v876_v17 = vld [vmem:[#allocation5 + $0x1588] sm:$0xff] }
 0x20c   :  { %1362 = vmatmul.mubr.f32.vlgmr.msra.gmra.mrb[0].mxu0 %v182_v23  ;;  %v2971_v21 = vpack.c.bf16 %v871_v13, %v867_v12  ;;  %v913_v12 = vld [vmem:[#allocation5 + $0x16b0] sm:$0xff]  ;;  %v916_v13 = vld [vmem:[#allocation5 + $0x16c8] sm:$0xff] }
 0x20d   :  { %2952 = vmatpush1.bf16.msra.mxu0 %v2951_v24  ;;  %1859 = vmatmul.mubr.f32.vlgmr.msra.gmra.mrb[0].mxu1 %v182_v23  ;;  %v2973_v23 = vpack.c.bf16 %v880_v18, %v876_v17  ;;  %v875_v24 = vld [vmem:[#allocation5 + $0x1580] sm:$0xff]  ;;  %v2993_v19 = vpack.c.bf16 %v920_v14, %v916_v13 }
 0x20e   :  { %3352 = vmatpush1.bf16.msra.mxu1 %v3351_v25  ;;  %2954 = vmatprep.subr.bf16.mxu0 %v2953_v26  ;;  %v879_v25 = vld [vmem:[#allocation5 + $0x15a0] sm:$0xff]  ;;  %v877_v26 = vld [vmem:[#allocation5 + $0x1590] sm:$0xff] }
 0x20f   :  { %3354 = vmatprep.subr.bf16.mxu1 %v3353_v30  ;;  %1432 = vmatprep.mubr.f32.mxu0 %v185_v36  ;;  %v888_v30 = vld [vmem:[#allocation5 + $0x15e8] sm:$0xff]  ;;  %v2975_v33 = vpack.c.bf16 %v879_v25, %v875_v24  ;;  %v3375_v34 = vpack.c.bf16 %v881_v28, %v877_v26  ;;  %v921_v24 = vld [vmem:[#allocation5 + $0x16f0] sm:$0xff]  ;;  %v930_v28 = vld [vmem:[#allocation5 + $0x1738] sm:$0xff] }
 0x210   :  { %1929 = vmatprep.mubr.f32.mxu1 %v185_v36  ;;  %v2977_v35 = vpack.c.bf16 %v888_v30, %v884_v29  ;;  %v883_v36 = vld [vmem:[#allocation5 + $0x15c0] sm:$0xff]  ;;  %v924_v25 = vld [vmem:[#allocation5 + $0x1708] sm:$0xff] }
 0x211   :  { %2956 = vmatpush1.bf16.msra.mxu0 %v2955_v37  ;;  %v887_v37 = vld [vmem:[#allocation5 + $0x15e0] sm:$0xff]  ;;  %v928_v26 = vld [vmem:[#allocation5 + $0x1728] sm:$0xff] }
 0x212   :  { %3356 = vmatpush1.bf16.msra.mxu1 %v3355_v38  ;;  %2958 = vmatprep.subr.bf16.mxu0 %v2957_v39  ;;  %v885_v38 = vld [vmem:[#allocation5 + $0x15d0] sm:$0xff]  ;;  %v3377_v39 = vpack.c.bf16 %v890_v32, %v886_v31  ;;  %v2979_v45 = vpack.c.bf16 %v887_v37, %v883_v36  ;;  %v2997_v31 = vpack.c.bf16 %v928_v26, %v924_v25  ;;  %v923_v32 = vld [vmem:[#allocation5 + $0x1700] sm:$0xff]  ;;  %v932_v37 = vld [vmem:[#allocation5 + $0x1748] sm:$0xff] }
 0x213   :  { %3358 = vmatprep.subr.bf16.mxu1 %v3357_v43  ;;  %v894_v43 = vld [vmem:[#allocation5 + $0x1618] sm:$0xff]  ;;  %v3379_v46 = vpack.c.bf16 %v889_v40, %v885_v38  ;;  %v929_v36 = vld [vmem:[#allocation5 + $0x1730] sm:$0xff]  ;;  %v936_v38 = vld [vmem:[#allocation5 + $0x1768] sm:$0xff] }
 0x214   :  { %v938_v40 = vld [vmem:[#allocation5 + $0x1778] sm:$0xff]  ;;  %v184_v25 = vld [vmem:[#allocation2 + $0x50] sm:$0xff] }
 0x215   :  { %2960 = vmatpush1.bf16.msra.mxu0 %v2959_v49  ;;  %v895_v49 = vld [vmem:[#allocation5 + $0x1620] sm:$0xff] }
 0x216   :  { %3360 = vmatpush1.bf16.msra.mxu1 %v3359_v50  ;;  %2962 = vmatprep.subr.bf16.mxu0 %v2961_v51  ;;  %v893_v50 = vld [vmem:[#allocation5 + $0x1610] sm:$0xff]  ;;  %v3381_v51 = vpack.c.bf16 %v898_v44, %v894_v43  ;;  %v2983_v57 = vpack.c.bf16 %v895_v49, %v891_v48  ;;  %v3001_v43 = vpack.c.bf16 %v936_v38, %v932_v37  ;;  %v931_v44 = vld [vmem:[#allocation5 + $0x1740] sm:$0xff]  ;;  %v940_v49 = vld [vmem:[#allocation5 + $0x1788] sm:$0xff] }
 0x217   :  { %3362 = vmatprep.subr.bf16.mxu1 %v3361_v55  ;;  %v902_v55 = vld [vmem:[#allocation5 + $0x1658] sm:$0xff]  ;;  %v3383_v58 = vpack.c.bf16 %v897_v52, %v893_v50  ;;  %v937_v48 = vld [vmem:[#allocation5 + $0x1770] sm:$0xff]  ;;  %v944_v50 = vld [vmem:[#allocation5 + $0x17a8] sm:$0xff] }
 0x218   :  { %v946_v52 = vld [vmem:[#allocation5 + $0x17b8] sm:$0xff] }
 0x219   :  { %2964 = vmatpush1.bf16.msra.mxu0 %v2963_v61  ;;  %v903_v61 = vld [vmem:[#allocation5 + $0x1660] sm:$0xff]  ;;  %v978_v37 = vld [vmem:[#allocation5 + $0x18b8] sm:$0xff] }
 0x21a   :  { %3364 = vmatpush1.bf16.msra.mxu1 %v3363_v62  ;;  %2966 = vmatprep.subr.bf16.mxu0 %v2965_v63  ;;  %v901_v62 = vld [vmem:[#allocation5 + $0x1650] sm:$0xff]  ;;  %v3385_v63 = vpack.c.bf16 %v906_v56, %v902_v55  ;;  %v2987_v5 = vpack.c.bf16 %v903_v61, %v899_v60  ;;  %v3005_v55 = vpack.c.bf16 %v944_v50, %v940_v49  ;;  %v939_v56 = vld [vmem:[#allocation5 + $0x1780] sm:$0xff]  ;;  %v948_v61 = vld [vmem:[#allocation5 + $0x17c8] sm:$0xff] }
 0x21b   :  { %3366 = vmatprep.subr.bf16.mxu1 %v3365_v3  ;;  %v910_v3 = vld [vmem:[#allocation5 + $0x1698] sm:$0xff]  ;;  %v3387_v6 = vpack.c.bf16 %v905_v0, %v901_v62  ;;  %v945_v60 = vld [vmem:[#allocation5 + $0x17b0] sm:$0xff]  ;;  %v952_v62 = vld [vmem:[#allocation5 + $0x17e8] sm:$0xff] }
 0x21c   :  { %v954_v0 = vld [vmem:[#allocation5 + $0x17f8] sm:$0xff] }
 0x21d   :  { %2968 = vmatpush1.bf16.msra.mxu0 %v2967_v9  ;;  %v911_v9 = vld [vmem:[#allocation5 + $0x16a0] sm:$0xff]  ;;  %v982_v49 = vld [vmem:[#allocation5 + $0x18d8] sm:$0xff] }
 0x21e   :  { %3368 = vmatpush1.bf16.msra.mxu1 %v3367_v10  ;;  %2970 = vmatprep.subr.bf16.mxu0 %v2969_v11  ;;  %v909_v10 = vld [vmem:[#allocation5 + $0x1690] sm:$0xff]  ;;  %v3389_v11 = vpack.c.bf16 %v914_v4, %v910_v3  ;;  %v2991_v17 = vpack.c.bf16 %v911_v9, %v907_v8  ;;  %v3009_v3 = vpack.c.bf16 %v952_v62, %v948_v61  ;;  %v947_v4 = vld [vmem:[#allocation5 + $0x17c0] sm:$0xff]  ;;  %v956_v9 = vld [vmem:[#allocation5 + $0x1808] sm:$0xff] }
 0x21f   :  { %3370 = vmatprep.subr.bf16.mxu1 %v3369_v15  ;;  %v918_v15 = vld [vmem:[#allocation5 + $0x16d8] sm:$0xff]  ;;  %v3391_v18 = vpack.c.bf16 %v913_v12, %v909_v10  ;;  %v953_v8 = vld [vmem:[#allocation5 + $0x17f0] sm:$0xff]  ;;  %v960_v10 = vld [vmem:[#allocation5 + $0x1828] sm:$0xff] }
 0x220   :  { %v962_v12 = vld [vmem:[#allocation5 + $0x1838] sm:$0xff]  ;;  %v2059_v61 = vld [vmem:[#allocation8 + $0x180] sm:$0xff]  ;;  %v2060_v62 = vld [vmem:[#allocation8 + $0x188] sm:$0xff] }
 0x221   :  { %2972 = vmatpush1.bf16.msra.mxu0 %v2971_v21  ;;  %v919_v21 = vld [vmem:[#allocation5 + $0x16e0] sm:$0xff]  ;;  %v986_v50 = vld [vmem:[#allocation5 + $0x18f8] sm:$0xff] }
 0x222   :  { %3372 = vmatpush1.bf16.msra.mxu1 %v3371_v22  ;;  %2974 = vmatprep.subr.bf16.mxu0 %v2973_v23  ;;  %v917_v22 = vld [vmem:[#allocation5 + $0x16d0] sm:$0xff]  ;;  %v3393_v23 = vpack.c.bf16 %v922_v16, %v918_v15  ;;  %v2995_v29 = vpack.c.bf16 %v919_v21, %v915_v20  ;;  %v3013_v15 = vpack.c.bf16 %v960_v10, %v956_v9  ;;  %v955_v16 = vld [vmem:[#allocation5 + $0x1800] sm:$0xff]  ;;  %v964_v21 = vld [vmem:[#allocation5 + $0x1848] sm:$0xff] }
 0x223   :  { %3374 = vmatprep.subr.bf16.mxu1 %v3373_v27  ;;  %v926_v27 = vld [vmem:[#allocation5 + $0x1718] sm:$0xff]  ;;  %v3395_v30 = vpack.c.bf16 %v921_v24, %v917_v22  ;;  %v961_v20 = vld [vmem:[#allocation5 + $0x1830] sm:$0xff]  ;;  %v968_v22 = vld [vmem:[#allocation5 + $0x1868] sm:$0xff] }
 0x224   :  { %v970_v24 = vld [vmem:[#allocation5 + $0x1878] sm:$0xff] }
 0x225   :  { %2976 = vmatpush1.bf16.msra.mxu0 %v2975_v33  ;;  %v927_v33 = vld [vmem:[#allocation5 + $0x1720] sm:$0xff]  ;;  %v2061_v9 = vld [vmem:[#allocation8 + $0x190] sm:$0xff] }
 0x226   :  { %3376 = vmatpush1.bf16.msra.mxu1 %v3375_v34  ;;  %2978 = vmatprep.subr.bf16.mxu0 %v2977_v35  ;;  %v925_v34 = vld [vmem:[#allocation5 + $0x1710] sm:$0xff]  ;;  %v3397_v35 = vpack.c.bf16 %v930_v28, %v926_v27  ;;  %v2999_v41 = vpack.c.bf16 %v927_v33, %v923_v32  ;;  %v3017_v28 = vpack.c.bf16 %v968_v22, %v964_v21  ;;  %v2062_v10 = vld [vmem:[#allocation8 + $0x198] sm:$0xff]  ;;  %v2063_v22 = vld [vmem:[#allocation8 + $0x1a0] sm:$0xff] }
 0x227   :  { %3378 = vmatprep.subr.bf16.mxu1 %v3377_v39  ;;  %v934_v39 = vld [vmem:[#allocation5 + $0x1758] sm:$0xff]  ;;  %v3399_v42 = vpack.c.bf16 %v929_v36, %v925_v34  ;;  %v969_v33 = vld [vmem:[#allocation5 + $0x1870] sm:$0xff]  ;;  %v972_v34 = vld [vmem:[#allocation5 + $0x1888] sm:$0xff] }
 0x228   :  { %v974_v36 = vld [vmem:[#allocation5 + $0x1898] sm:$0xff]  ;;  %v2032_v21 = vld [vmem:[#allocation8 + $0xa8] sm:$0xff] }
 0x229   :  { %2980 = vmatpush1.bf16.msra.mxu0 %v2979_v45  ;;  %v935_v45 = vld [vmem:[#allocation5 + $0x1760] sm:$0xff] }
 0x22a   :  { %3380 = vmatpush1.bf16.msra.mxu1 %v3379_v46  ;;  %2982 = vmatprep.subr.bf16.mxu0 %v2981_v47  ;;  %v933_v46 = vld [vmem:[#allocation5 + $0x1750] sm:$0xff]  ;;  %v3401_v47 = vpack.c.bf16 %v938_v40, %v934_v39  ;;  %v3003_v53 = vpack.c.bf16 %v935_v45, %v931_v44  ;;  %v3421_v44 = vpack.c.bf16 %v978_v37, %v974_v36 }
 0x22b   :  { %3382 = vmatprep.subr.bf16.mxu1 %v3381_v51  ;;  %v942_v51 = vld [vmem:[#allocation5 + $0x1798] sm:$0xff]  ;;  %v3403_v54 = vpack.c.bf16 %v937_v48, %v933_v46  ;;  %v977_v45 = vld [vmem:[#allocation5 + $0x18b0] sm:$0xff]  ;;  %v980_v46 = vld [vmem:[#allocation5 + $0x18c8] sm:$0xff]  ;;  %v3883_v48 = vmov 0.0  }
 0x22d   :  { %2984 = vmatpush1.bf16.msra.mxu0 %v2983_v57  ;;  %v943_v57 = vld [vmem:[#allocation5 + $0x17a0] sm:$0xff] }
 0x22e   :  { %3384 = vmatpush1.bf16.msra.mxu1 %v3383_v58  ;;  %2986 = vmatprep.subr.bf16.mxu0 %v2985_v59  ;;  %v941_v58 = vld [vmem:[#allocation5 + $0x1790] sm:$0xff]  ;;  %v3405_v59 = vpack.c.bf16 %v946_v52, %v942_v51  ;;  %v3007_v1 = vpack.c.bf16 %v943_v57, %v939_v56  ;;  %v3425_v57 = vpack.c.bf16 %v986_v50, %v982_v49 }
 0x22f   :  { %3386 = vmatprep.subr.bf16.mxu1 %v3385_v63  ;;  %v950_v63 = vld [vmem:[#allocation5 + $0x17d8] sm:$0xff]  ;;  %v3407_v2 = vpack.c.bf16 %v945_v60, %v941_v58  ;;  %v981_v56 = vld [vmem:[#allocation5 + $0x18d0] sm:$0xff] }
 0x230   :  { %v985_v58 = vld [vmem:[#allocation5 + $0x18f0] sm:$0xff] }
 0x231   :  { %2988 = vmatpush1.bf16.msra.mxu0 %v2987_v5  ;;  %v951_v5 = vld [vmem:[#allocation5 + $0x17e0] sm:$0xff]  ;;  %v2028_v60 = vld [vmem:[#allocation8 + $0x88] sm:$0xff] }
 0x232   :  { %3388 = vmatpush1.bf16.msra.mxu1 %v3387_v6  ;;  %2990 = vmatprep.subr.bf16.mxu0 %v2989_v7  ;;  %v949_v6 = vld [vmem:[#allocation5 + $0x17d0] sm:$0xff]  ;;  %v3409_v7 = vpack.c.bf16 %v954_v0, %v950_v63  ;;  %v3011_v13 = vpack.c.bf16 %v951_v5, %v947_v4  ;;  %v3427_v0 = vpack.c.bf16 %v985_v58, %v981_v56  ;;  %v2043_v4 = vld [vmem:[#allocation8 + $0x100] sm:$0xff]  ;;  %v2038_v58 = vld [vmem:[#allocation8 + $0xd8] sm:$0xff] }
 0x233   :  { %3390 = vmatprep.subr.bf16.mxu1 %v3389_v11  ;;  %v958_v11 = vld [vmem:[#allocation5 + $0x1818] sm:$0xff]  ;;  %v3411_v14 = vpack.c.bf16 %v953_v8, %v949_v6  ;;  %v3461_v5 = vpack.c.bf16 %v2060_v62, %v2059_v61  ;;  %v2044_v6 = vld [vmem:[#allocation8 + $0x108] sm:$0xff] }
 0x234   :  { %v2030_v8 = vld [vmem:[#allocation8 + $0x98] sm:$0xff]  ;;  %v2052_v56 = vld [vmem:[#allocation8 + $0x148] sm:$0xff] }
 0x235   :  { %2992 = vmatpush1.bf16.msra.mxu0 %v2991_v17  ;;  %v959_v17 = vld [vmem:[#allocation5 + $0x1820] sm:$0xff] }
 0x236   :  { %3392 = vmatpush1.bf16.msra.mxu1 %v3391_v18  ;;  %2994 = vmatprep.subr.bf16.mxu0 %v2993_v19  ;;  %v957_v18 = vld [vmem:[#allocation5 + $0x1810] sm:$0xff]  ;;  %v3413_v19 = vpack.c.bf16 %v962_v12, %v958_v11  ;;  %v3015_v26 = vpack.c.bf16 %v959_v17, %v955_v16  ;;  %v186_v11 = vld [vmem:[#allocation2 + $0x60] sm:$0xff] }
 0x237   :  { %3394 = vmatprep.subr.bf16.mxu1 %v3393_v23  ;;  %v966_v23 = vld [vmem:[#allocation5 + $0x1858] sm:$0xff]  ;;  %v3415_v27 = vpack.c.bf16 %v961_v20, %v957_v18  ;;  %v3465_v18 = vpack.c.bf16 %v2062_v10, %v2061_v9  ;;  %v2031_v20 = vld [vmem:[#allocation8 + $0xa0] sm:$0xff] }
 0x238   :  { %v3417_v32 = vpack.c.bf16 %v970_v24, %v966_v23  ;;  %v2014_v16 = vld [vmem:[#allocation8 + $0x18] sm:$0xff]  ;;  %v2045_v17 = vld [vmem:[#allocation8 + $0x110] sm:$0xff]  ;;  %v2064_v23 = vld [vmem:[#allocation8 + $0x1a8] sm:$0xff] }
 0x239   :  { %2996 = vmatpush1.bf16.msra.mxu0 %v2995_v29  ;;  %v963_v29 = vld [vmem:[#allocation5 + $0x1840] sm:$0xff] }
 0x23a   :  { %3396 = vmatpush1.bf16.msra.mxu1 %v3395_v30  ;;  %2998 = vmatprep.subr.bf16.mxu0 %v2997_v31  ;;  %v967_v30 = vld [vmem:[#allocation5 + $0x1860] sm:$0xff]  ;;  %v965_v31 = vld [vmem:[#allocation5 + $0x1850] sm:$0xff] }
 0x23b   :  { %3398 = vmatprep.subr.bf16.mxu1 %v3397_v35  ;;  %v976_v35 = vld [vmem:[#allocation5 + $0x18a8] sm:$0xff]  ;;  %v3019_v38 = vpack.c.bf16 %v967_v30, %v963_v29  ;;  %v3419_v39 = vpack.c.bf16 %v969_v33, %v965_v31  ;;  %v3469_v30 = vpack.c.bf16 %v2064_v23, %v2063_v22  ;;  %v2034_v33 = vld [vmem:[#allocation8 + $0xb8] sm:$0xff] }
 0x23c   :  { %v3021_v40 = vpack.c.bf16 %v976_v35, %v972_v34  ;;  %v2047_v29 = vld [vmem:[#allocation8 + $0x120] sm:$0xff]  ;;  %v2048_v31 = vld [vmem:[#allocation8 + $0x128] sm:$0xff]  ;;  %v2065_v34 = vld [vmem:[#allocation8 + $0x1b0] sm:$0xff] }
 0x23d   :  { %3000 = vmatpush1.bf16.msra.mxu0 %v2999_v41  ;;  %v971_v41 = vld [vmem:[#allocation5 + $0x1880] sm:$0xff]  ;;  %v3471_v37 = vpack.c.bf16 %v2048_v31, %v2047_v29  ;;  %v3884_v31 = vmov 0.0|0.0  }
 0x23e   :  { %3400 = vmatpush1.bf16.msra.mxu1 %v3399_v42  ;;  %3002 = vmatprep.subr.bf16.mxu0 %v3001_v43  ;;  %v975_v42 = vld [vmem:[#allocation5 + $0x18a0] sm:$0xff]  ;;  %v973_v43 = vld [vmem:[#allocation5 + $0x1890] sm:$0xff] }
 0x23f   :  { %3402 = vmatprep.subr.bf16.mxu1 %v3401_v47  ;;  %v984_v47 = vld [vmem:[#allocation5 + $0x18e8] sm:$0xff]  ;;  %v3023_v51 = vpack.c.bf16 %v975_v42, %v971_v41  ;;  %v3423_v52 = vpack.c.bf16 %v977_v45, %v973_v43  ;;  %v2066_v35 = vld [vmem:[#allocation8 + $0x1b8] sm:$0xff]  ;;  %v2049_v41 = vld [vmem:[#allocation8 + $0x130] sm:$0xff] }
 0x240   :  { %v3473_v42 = vpack.c.bf16 %v2066_v35, %v2065_v34  ;;  %v2050_v43 = vld [vmem:[#allocation8 + $0x138] sm:$0xff]  ;;  %v2036_v45 = vld [vmem:[#allocation8 + $0xc8] sm:$0xff] }
 0x241   :  { %3004 = vmatpush1.bf16.msra.mxu0 %v3003_v53  ;;  %v3025_v53 = vpack.c.bf16 %v984_v47, %v980_v46  ;;  %v2067_v46 = vld [vmem:[#allocation8 + $0x1c0] sm:$0xff]  ;;  %v2068_v47 = vld [vmem:[#allocation8 + $0x1c8] sm:$0xff]  ;;  %v3475_v50 = vpack.c.bf16 %v2050_v43, %v2049_v41  ;;  %v2074_v23 = vld [vmem:[#allocation8 + $0x1f8] sm:$0xff] }
 0x242   :  { %3404 = vmatpush1.bf16.msra.mxu1 %v3403_v54  ;;  %3006 = vmatprep.subr.bf16.mxu0 %v3005_v55  ;;  %v979_v54 = vld [vmem:[#allocation5 + $0x18c0] sm:$0xff] }
 0x243   :  { %3406 = vmatprep.subr.bf16.mxu1 %v3405_v59  ;;  %v983_v55 = vld [vmem:[#allocation5 + $0x18e0] sm:$0xff] }
 0x244   :  { %v2027_v59 = vld [vmem:[#allocation8 + $0x80] sm:$0xff]  ;;  %v3027_v63 = vpack.c.bf16 %v983_v55, %v979_v54  ;;  %v3477_v55 = vpack.c.bf16 %v2068_v47, %v2067_v46  ;;  %v2058_v29 = vld [vmem:[#allocation8 + $0x178] sm:$0xff] }
 0x245   :  { %3008 = vmatpush1.bf16.msra.mxu0 %v3007_v1  ;;  %v3429_v1 = vpack.c.bf16 %v2028_v60, %v2027_v59  ;;  %v2051_v54 = vld [vmem:[#allocation8 + $0x140] sm:$0xff]  ;;  %v2069_v59 = vld [vmem:[#allocation8 + $0x1d0] sm:$0xff]  ;;  %v2070_v60 = vld [vmem:[#allocation8 + $0x1d8] sm:$0xff] }
 0x246   :  { %3408 = vmatpush1.bf16.msra.mxu1 %v3407_v2  ;;  %3010 = vmatprep.subr.bf16.mxu0 %v3009_v3  ;;  %v2011_v2 = vld [vmem:[#allocation8] sm:$0xff]  ;;  %v2012_v3 = vld [vmem:[#allocation8 + $0x8] sm:$0xff]  ;;  %v3479_v62 = vpack.c.bf16 %v2052_v56, %v2051_v54  ;;  %v987_v35 = vld [vmem:[#allocation7] sm:$0xf] }
 0x247   :  { %3410 = vmatprep.subr.bf16.mxu1 %v3409_v7  ;;  %v2029_v7 = vld [vmem:[#allocation8 + $0x90] sm:$0xff]  ;;  %v3431_v12 = vpack.c.bf16 %v2012_v3, %v2011_v2  ;;  %v3481_v3 = vpack.c.bf16 %v2070_v60, %v2069_v59  ;;  %v2223_v47 = vld [vmem:[#allocation11] sm:$0xff]  ;;  %v2226_v59 = vld [vmem:[#allocation11 + $0x18] sm:$0xff] }
 0x248   :  { %v2053_v2 = vld [vmem:[#allocation8 + $0x150] sm:$0xff] }
 0x249   :  { %3012 = vmatpush1.bf16.msra.mxu0 %v3011_v13  ;;  %v3463_v13 = vpack.c.bf16 %v2044_v6, %v2043_v4  ;;  %v2054_v4 = vld [vmem:[#allocation8 + $0x158] sm:$0xff]  ;;  %v2040_v6 = vld [vmem:[#allocation8 + $0xe8] sm:$0xff] }
 0x24a   :  { %3412 = vmatpush1.bf16.msra.mxu1 %v3411_v14  ;;  %3014 = vmatprep.subr.bf16.mxu0 %v3013_v15  ;;  %v3433_v14 = vpack.c.bf16 %v2030_v8, %v2029_v7  ;;  %v2013_v15 = vld [vmem:[#allocation8 + $0x10] sm:$0xff]  ;;  %v2071_v7 = vld [vmem:[#allocation8 + $0x1e0] sm:$0xff]  ;;  %v2072_v8 = vld [vmem:[#allocation8 + $0x1e8] sm:$0xff]  ;;  %v3483_v10 = vpack.c.bf16 %v2054_v4, %v2053_v2 }
 0x24b   :  { %3414 = vmatprep.subr.bf16.mxu1 %v3413_v19  ;;  %v2046_v19 = vld [vmem:[#allocation8 + $0x118] sm:$0xff]  ;;  %v3435_v24 = vpack.c.bf16 %v2014_v16, %v2013_v15  ;;  %v2055_v15 = vld [vmem:[#allocation8 + $0x160] sm:$0xff] }
 0x24c   :  { %1433 = vmatmul.mubr.f32.vlgmr.msra.gmra.mrb[0].mxu0 %v184_v25  ;;  %v2230_v2 = vld [vmem:[#allocation11 + $0x38] sm:$0xff]  ;;  %v2231_v4 = vld [vmem:[#allocation11 + $0x40] sm:$0xff] }
 0x24d   :  { %3016 = vmatpush1.bf16.msra.mxu0 %v3015_v26  ;;  %1930 = vmatmul.mubr.f32.vlgmr.msra.gmra.mrb[0].mxu1 %v184_v25  ;;  %v3467_v25 = vpack.c.bf16 %v2046_v19, %v2045_v17  ;;  %v3437_v26 = vpack.c.bf16 %v2032_v21, %v2031_v20  ;;  %v2056_v17 = vld [vmem:[#allocation8 + $0x168] sm:$0xff]  ;;  %v2041_v19 = vld [vmem:[#allocation8 + $0xf0] sm:$0xff]  ;;  %v2042_v20 = vld [vmem:[#allocation8 + $0xf8] sm:$0xff] }
 0x24e   :  { %3416 = vmatpush1.bf16.msra.mxu1 %v3415_v27  ;;  %3018 = vmatprep.subr.bf16.mxu0 %v3017_v28  ;;  %v2015_v27 = vld [vmem:[#allocation8 + $0x20] sm:$0xff]  ;;  %v2016_v28 = vld [vmem:[#allocation8 + $0x28] sm:$0xff]  ;;  %v2073_v21 = vld [vmem:[#allocation8 + $0x1f0] sm:$0xff]  ;;  %v3457_v22 = vpack.c.bf16 %v2042_v20, %v2041_v19 }
 0x24f   :  { %3418 = vmatprep.subr.bf16.mxu1 %v3417_v32  ;;  %1503 = vmatprep.mubr.f32.mxu0 %v3883_v48  ;;  %v2033_v32 = vld [vmem:[#allocation8 + $0xb0] sm:$0xff]  ;;  %v3439_v36 = vpack.c.bf16 %v2016_v28, %v2015_v27  ;;  %v2320_v20 = vld [vmem:[#allocation14 + $0x18] sm:$0xff] }
 0x250   :  { %2000 = vmatprep.mubr.f32.mxu1 %v3883_v48  ;;  %v2057_v28 = vld [vmem:[#allocation8 + $0x170] sm:$0xff] }
 0x251   :  { %3020 = vmatpush1.bf16.msra.mxu0 %v3019_v38  ;;  %v3441_v38 = vpack.c.bf16 %v2034_v33, %v2033_v32  ;;  %v989_v32 = vlaneseq }
 0x252   :  { %3420 = vmatpush1.bf16.msra.mxu1 %v3419_v39  ;;  %3022 = vmatprep.subr.bf16.mxu0 %v3021_v40  ;;  %v2017_v39 = vld [vmem:[#allocation8 + $0x30] sm:$0xff]  ;;  %v2018_v40 = vld [vmem:[#allocation8 + $0x38] sm:$0xff] }
 0x253   :  { %3422 = vmatprep.subr.bf16.mxu1 %v3421_v44  ;;  %v2035_v44 = vld [vmem:[#allocation8 + $0xc0] sm:$0xff]  ;;  %v3443_v49 = vpack.c.bf16 %v2018_v40, %v2017_v39  ;;  %v990_v33 = vshrl.u32 %v989_v32, 7 }
 0x254   :  { %v2328_v32 = vld [vmem:[#allocation14 + $0x58] sm:$0xff] }
 0x255   :  { %3024 = vmatpush1.bf16.msra.mxu0 %v3023_v51  ;;  %v3445_v51 = vpack.c.bf16 %v2036_v45, %v2035_v44  ;;  %v991_v34 = vsub.s32 0, %v990_v33 }
 0x256   :  { %3424 = vmatpush1.bf16.msra.mxu1 %v3423_v52  ;;  %3026 = vmatprep.subr.bf16.mxu0 %v3025_v53  ;;  %v2019_v52 = vld [vmem:[#allocation8 + $0x40] sm:$0xff]  ;;  %v2020_v53 = vld [vmem:[#allocation8 + $0x48] sm:$0xff] }
 0x257   :  { %3426 = vmatprep.subr.bf16.mxu1 %v3425_v57  ;;  %v2037_v57 = vld [vmem:[#allocation8 + $0xd0] sm:$0xff]  ;;  %v3447_v61 = vpack.c.bf16 %v2020_v53, %v2019_v52  ;;  %v992_v39 = vrot.slane %v987_v35, %v991_v34  ;;  %v2329_v34 = vld [vmem:[#allocation14 + $0x60] sm:$0xff] }
 0x259   :  { %3028 = vmatpush1.bf16.msra.mxu0 %v3027_v63  ;;  %v3449_v63 = vpack.c.bf16 %v2038_v58, %v2037_v57  ;;  %v2225_v58 = vld [vmem:[#allocation11 + $0x10] sm:$0xff] }
 0x25a   :  { %3428 = vmatpush1.bf16.msra.mxu1 %v3427_v0  ;;  %3430 = vmatprep.subr.bf16.mxu0 %v3429_v1  ;;  %v2021_v0 = vld [vmem:[#allocation8 + $0x50] sm:$0xff]  ;;  %v2022_v1 = vld [vmem:[#allocation8 + $0x58] sm:$0xff] }
 0x25b   :  { %3462 = vmatprep.subr.bf16.mxu1 %v3461_v5  ;;  %v2039_v5 = vld [vmem:[#allocation8 + $0xe0] sm:$0xff]  ;;  %v3451_v9 = vpack.c.bf16 %v2022_v1, %v2021_v0  ;;  %v2229_v1 = vld [vmem:[#allocation11 + $0x30] sm:$0xff] }
 0x25c   :  { %2448 = vmatmul.mubr.msk.f32.vlgmr.msra.gmra.mrb[0].mxu0 %vm1009_vm0, %v186_v11 }
 0x25d   :  { %2449 = vmatmul.mubr.msk.f32.vlgmr.msra.gmra.mrb[0].mxu1 %vm1009_vm0, %v186_v11  ;;  %3432 = vmatpush3.bf16.msra.mxu0 %v3431_v12  ;;  %v3453_v11 = vpack.c.bf16 %v2040_v6, %v2039_v5  ;;  %v3485_v12 = vpack.c.bf16 %v2072_v8, %v2071_v7  ;;  %v2232_v5 = vld [vmem:[#allocation11 + $0x48] sm:$0xff]  ;;  %v2233_v7 = vld [vmem:[#allocation11 + $0x50] sm:$0xff]  ;;  %v2234_v8 = vld [vmem:[#allocation11 + $0x58] sm:$0xff] }
 0x25e   :  { %3464 = vmatpush3.bf16.msra.mxu1 %v3463_v13  ;;  %3434 = vmatprep.subr.bf16.mxu0 %v3433_v14  ;;  %v2023_v13 = vld [vmem:[#allocation8 + $0x60] sm:$0xff]  ;;  %v2024_v14 = vld [vmem:[#allocation8 + $0x68] sm:$0xff]  ;;  %v3506_v6 = vpack.c.bf16 %v2232_v5, %v2231_v4 }
 0x25f   :  { %3466 = vmatprep.subr.bf16.mxu1 %v3465_v18  ;;  %v3455_v16 = vpack.c.bf16 %v2024_v14, %v2023_v13  ;;  %v3487_v18 = vpack.c.bf16 %v2056_v17, %v2055_v15  ;;  %v2237_v13 = vld [vmem:[#allocation11 + $0x70] sm:$0xff]  ;;  %v2238_v14 = vld [vmem:[#allocation11 + $0x78] sm:$0xff] }
 0x260   :  { %v3515_v15 = vpack.c.bf16 %v2238_v14, %v2237_v13  ;;  %v2318_v17 = vld [vmem:[#allocation14 + $0x8] sm:$0xff] }
 0x261   :  { %3436 = vmatpush3.bf16.msra.mxu0 %v3435_v24  ;;  %v2025_v24 = vld [vmem:[#allocation8 + $0x70] sm:$0xff] }
 0x262   :  { %3468 = vmatpush3.bf16.msra.mxu1 %v3467_v25  ;;  %3438 = vmatprep.subr.bf16.mxu0 %v3437_v26  ;;  %v2026_v25 = vld [vmem:[#allocation8 + $0x78] sm:$0xff]  ;;  %v3489_v26 = vpack.c.bf16 %v2074_v23, %v2073_v21  ;;  %v2322_v23 = vld [vmem:[#allocation14 + $0x28] sm:$0xff] }
 0x263   :  { %3470 = vmatprep.subr.bf16.mxu1 %v3469_v30  ;;  %v3459_v27 = vpack.c.bf16 %v2026_v25, %v2025_v24  ;;  %v3491_v30 = vpack.c.bf16 %v2058_v29, %v2057_v28  ;;  %v2323_v25 = vld [vmem:[#allocation14 + $0x30] sm:$0xff]  ;;  %v2326_v28 = vld [vmem:[#allocation14 + $0x48] sm:$0xff] }
 0x265   :  { %3440 = vmatpush3.bf16.msra.mxu0 %v3439_v36  ;;  %v999_v36 = vsub.s32 2, %v990_v33 }
 0x266   :  { %3472 = vmatpush3.bf16.msra.mxu1 %v3471_v37  ;;  %3442 = vmatprep.subr.bf16.mxu0 %v3441_v38  ;;  %v995_v37 = vsub.s32 1, %v990_v33  ;;  %v1003_v38 = vsub.s32 3, %v990_v33 }
 0x267   :  { %3474 = vmatprep.subr.bf16.mxu1 %v3473_v42  ;;  %v1000_v40 = vrot.slane %v987_v35, %v999_v36 }
 0x268   :  { %v996_v41 = vrot.slane %v987_v35, %v995_v37  ;;  %v1004_v42 = vrot.slane %v987_v35, %v1003_v38  ;;  %v2330_v35 = vld [vmem:[#allocation14 + $0x68] sm:$0xff] }
 0x269   :  { %3444 = vmatpush3.bf16.msra.mxu0 %v3443_v49  ;;  %v2224_v49 = vld [vmem:[#allocation11 + $0x8] sm:$0xff]  ;;  %v3536_v36 = vpack.c.bf16 %v2330_v35, %v2329_v34 }
 0x26a   :  { %3476 = vmatpush3.bf16.msra.mxu1 %v3475_v50  ;;  %3446 = vmatprep.subr.bf16.mxu0 %v3445_v51 }
 0x26b   :  { %3478 = vmatprep.subr.bf16.mxu1 %v3477_v55  ;;  %v3494_v55 = vpack.c.bf16 %v2224_v49, %v2223_v47  ;;  %v2331_v47 = vld [vmem:[#allocation14 + $0x70] sm:$0xff]  ;;  %v2332_v49 = vld [vmem:[#allocation14 + $0x78] sm:$0xff] }
 0x26d   :  { %3448 = vmatpush3.bf16.msra.mxu0 %v3447_v61  ;;  %v3497_v61 = vpack.c.bf16 %v2226_v59, %v2225_v58  ;;  %v2453_v59 = vld [vmem:[#allocation17] ss:$0 sm:$0xff] }
 0x26e   :  { %3480 = vmatpush3.bf16.msra.mxu1 %v3479_v62  ;;  %3450 = vmatprep.subr.bf16.mxu0 %v3449_v63  ;;  %v2227_v62 = vld [vmem:[#allocation11 + $0x20] sm:$0xff]  ;;  %v2228_v63 = vld [vmem:[#allocation11 + $0x28] sm:$0xff] }
 0x26f   :  { %3482 = vmatprep.subr.bf16.mxu1 %v3481_v3  ;;  %v3500_v0 = vpack.c.bf16 %v2228_v63, %v2227_v62  ;;  %v3503_v3 = vpack.c.bf16 %v2230_v2, %v2229_v1 }
 0x271   :  { %3452 = vmatpush3.bf16.msra.mxu0 %v3451_v9  ;;  %v3509_v9 = vpack.c.bf16 %v2234_v8, %v2233_v7 }
 0x272   :  { %3484 = vmatpush3.bf16.msra.mxu1 %v3483_v10  ;;  %3454 = vmatprep.subr.bf16.mxu0 %v3453_v11  ;;  %v2235_v10 = vld [vmem:[#allocation11 + $0x60] sm:$0xff]  ;;  %v2236_v11 = vld [vmem:[#allocation11 + $0x68] sm:$0xff] }
 0x273   :  { %3486 = vmatprep.subr.bf16.mxu1 %v3485_v12  ;;  %v3512_v12 = vpack.c.bf16 %v2236_v11, %v2235_v10 }
 0x275   :  { %3456 = vmatpush3.bf16.msra.mxu0 %v3455_v16  ;;  %v2317_v16 = vld [vmem:[#allocation14] sm:$0xff] }
 0x276   :  { %3488 = vmatpush3.bf16.msra.mxu1 %v3487_v18  ;;  %3458 = vmatprep.subr.bf16.mxu0 %v3457_v22  ;;  %v2319_v18 = vld [vmem:[#allocation14 + $0x10] sm:$0xff]  ;;  %v3518_v19 = vpack.c.bf16 %v2318_v17, %v2317_v16  ;;  %v2321_v22 = vld [vmem:[#allocation14 + $0x20] sm:$0xff] }
 0x277   :  { %3490 = vmatprep.subr.bf16.mxu1 %v3489_v26  ;;  %v3521_v21 = vpack.c.bf16 %v2320_v20, %v2319_v18  ;;  %v3524_v24 = vpack.c.bf16 %v2322_v23, %v2321_v22  ;;  %v2324_v26 = vld [vmem:[#allocation14 + $0x38] sm:$0xff] }
 0x279   :  { %3460 = vmatpush3.bf16.msra.mxu0 %v3459_v27  ;;  %v3527_v27 = vpack.c.bf16 %v2324_v26, %v2323_v25 }
 0x27a   :  { %3492 = vmatpush3.bf16.msra.mxu1 %v3491_v30  ;;  %3493 = vmatprep.subr.bf16.mxu0 %v3884_v31  ;;  %v2327_v30 = vld [vmem:[#allocation14 + $0x50] sm:$0xff] }
 0x27b   :  { %3517 = vmatprep.subr.bf16.mxu1 %v3884_v31  ;;  %v3533_v33 = vpack.c.bf16 %v2328_v32, %v2327_v30 }
 0x32f   :  { %v1505_v43 = vpop.f32.mrb[0].mxu0 }
 0x330   :  { %v3541_v44 = vadd.f32 %v1505_v43, %v992_v39  ;;  %v2002_v45 = vpop.f32.mrb[0].mxu1  ;;  %v1507_v46 = vpop.f32.mrb[1].mxu0  ;;  %v2450_v39 = vld [vmem:[#allocation10] ss:$0 sm:$0xff] }
 0x331   :  { %v3543_v50 = vadd.f32 %v2002_v45, %v1000_v40  ;;  %v3542_v51 = vadd.f32 %v1507_v46, %v996_v41  ;;  %v2004_v52 = vpop.f32.mrb[1].mxu1 }
 0x332   :  { %v3544_v53 = vadd.f32 %v2004_v52, %v1004_v42  ;;  %v2007_v56 = vmax.f32 %v3541_v44, 0.0 }
 0x333   :  { %v2008_v54 = vmax.f32 %v3542_v51, 0.0  ;;  %v2009_v60 = vmax.f32 %v3543_v50, 0.0  ;;  %v3539_v50 = vpack.c.bf16 %v2332_v49, %v2331_v47  ;;  %v2451_v51 = vld [vmem:[#allocation13] ss:$0 sm:$0xff] }
 0x334   :  { %v2010_v57 = vmax.f32 %v3544_v53, 0.0 }
 0x335   :  { %2146 = vmatprep.mubr.f32.mxu0 %v2008_v54 }
 0x336   :  { %2216 = vmatprep.mubr.f32.mxu1 %v2010_v57  ;;  %2147 = vmatmul.mubr.f32.vlgmr.msra.gmra.mrb[2].mxu0 %v2007_v56 }
 0x337   :  { %2217 = vmatmul.mubr.f32.vlgmr.msra.gmra.mrb[2].mxu1 %v2009_v60  ;;  %3495 = vmatpush3.bf16.msra.mxu0 %v3494_v55  ;;  %v2452_v55 = vld [vmem:[#allocation16] ss:$0 sm:$0xff] }
 0x338   :  { %3496 = vmatprep.subr.bf16.mxu0 %v3884_v31  ;;  %2591 = vmatprep.mubr.msk.f32.mxu0 %vm3885_vm1, %v3883_v48 }
 0x339   :  { %2626 = vmatprep.mubr.msk.f32.mxu1 %vm3885_vm1, %v3883_v48  ;;  %3519 = vmatpush3.bf16.msra.mxu1 %v3518_v19  ;;  %v2325_v48 = vld [vmem:[#allocation14 + $0x40] sm:$0xff] }
 0x33a   :  { %3520 = vmatprep.subr.bf16.mxu1 %v3884_v31  ;;  %v3530_v29 = vpack.c.bf16 %v2326_v28, %v2325_v48 }
 0x33b   :  { %3498 = vmatpush3.bf16.msra.mxu0 %v3497_v61  ;;  %v2454_v61 = vld [vmem:[#allocation19] ss:$0 sm:$0xff] }
 0x33c   :  { %3499 = vmatprep.subr.bf16.mxu0 %v3884_v31 }
 0x33d   :  { %3522 = vmatpush3.bf16.msra.mxu1 %v3521_v21 }
 0x33e   :  { %3523 = vmatprep.subr.bf16.mxu1 %v3884_v31 }
 0x33f   :  { %3501 = vmatpush3.bf16.msra.mxu0 %v3500_v0 }
 0x340   :  { %3502 = vmatprep.subr.bf16.mxu0 %v3884_v31 }
 0x341   :  { %3525 = vmatpush3.bf16.msra.mxu1 %v3524_v24 }
 0x342   :  { %3526 = vmatprep.subr.bf16.mxu1 %v3884_v31 }
 0x343   :  { %3504 = vmatpush3.bf16.msra.mxu0 %v3503_v3 }
 0x344   :  { %3505 = vmatprep.subr.bf16.mxu0 %v3884_v31 }
 0x345   :  { %3528 = vmatpush3.bf16.msra.mxu1 %v3527_v27 }
 0x346   :  { %3529 = vmatprep.subr.bf16.mxu1 %v3884_v31 }
 0x347   :  { %3507 = vmatpush3.bf16.msra.mxu0 %v3506_v6 }
 0x348   :  { %3508 = vmatprep.subr.bf16.mxu0 %v3884_v31 }
 0x349   :  { %3531 = vmatpush3.bf16.msra.mxu1 %v3530_v29 }
 0x34a   :  { %3532 = vmatprep.subr.bf16.mxu1 %v3884_v31 }
 0x34b   :  { %3510 = vmatpush3.bf16.msra.mxu0 %v3509_v9 }
 0x34c   :  { %3511 = vmatprep.subr.bf16.mxu0 %v3884_v31 }
 0x34d   :  { %3534 = vmatpush3.bf16.msra.mxu1 %v3533_v33 }
 0x34e   :  { %3535 = vmatprep.subr.bf16.mxu1 %v3884_v31 }
 0x34f   :  { %3513 = vmatpush3.bf16.msra.mxu0 %v3512_v12 }
 0x350   :  { %3514 = vmatprep.subr.bf16.mxu0 %v3884_v31 }
 0x351   :  { %3537 = vmatpush3.bf16.msra.mxu1 %v3536_v36 }
 0x352   :  { %3538 = vmatprep.subr.bf16.mxu1 %v3884_v31 }
 0x353   :  { %3516 = vmatpush3.bf16.msra.mxu0 %v3515_v15 }
 0x355   :  { %3540 = vmatpush3.bf16.msra.mxu1 %v3539_v50 }
 0x409   :  { %v2487_v37 = vpop.f32.mrb[2].mxu0 }
 0x40a   :  { %v2522_v38 = vpop.f32.mrb[2].mxu1  ;;  %v2488_v40 = vpop.f32.mrb[3].mxu0 }
 0x40b   :  { %v2489_v41 = vadd.f32 %v2488_v40, %v2487_v37  ;;  %v2523_v42 = vpop.f32.mrb[3].mxu1 }
 0x40c   :  { %v2524_v43 = vadd.f32 %v2523_v42, %v2522_v38 }
 0x40d   :  { %v2149_v44 = vadd.f32 %v2489_v41, %v2450_v39 }
 0x40f   :  { %v2219_v45 = vadd.f32 %v2524_v43, %v2149_v44 }
 0x411   :  { %v2222_v46 = vmax.f32 %v2219_v45, 0.0 }
 0x413   :  { %2592 = vmatmul.mubr.f32.vlgmr.msra.gmra.mrb[4].mxu0 %v2222_v46 }
 0x4e6   :  { %v2312_v52 = vpop.f32.mrb[4].mxu0 }
 0x4e7   :  { %v2313_v53 = vadd.f32 %v2451_v51, %v2312_v52  ;;  %v2593_v54 = vpop.f32.mrb[5].mxu0 }
 0x4e9   :  { %v2316_v31 = vmax.f32 %v2313_v53, 0.0 }
 0x4eb   :  { %2627 = vmatmul.mubr.f32.vlgmr.msra.gmra.mrb[4].mxu1 %v2316_v31 }
 0x5be   :  { %v2406_v56 = vpop.f32.mrb[4].mxu1 }
 0x5bf   :  { %v2407_v57 = vadd.f32 %v2452_v55, %v2406_v56  ;;  %v2628_v58 = vpop.f32.mrb[5].mxu1 }
 0x5c1   :  { %3588 = vtanh.f32 %v2407_v57 }
 0x5cb   :  { %v3589_v60 = vpop.eup %3588 }
 0x5cc   :  { %v2418_v62 = vmul.f32 %v3589_v60, %v2453_v59 }
 0x5ce   :  { %v2426_v63 = vadd.f32 %v2454_v61, %v2418_v62 }
 0x5d0   :  { %2427 = vst [vmem:[#allocation20] sm:$0xff] %v2426_v63 }
 0x5d1   :  { %3843 = shalt.err (!%p3840_p8)
}
 0x5d2   :  { %s3844_s15 = scalar_lea.hbm %s4140_s11, 128 }
 0x5d3   :  { %p3845_p9 = scmp.ne.s32.totalorder %s4140_s11, %s3844_s15  ;;  %p3848_p10 = scmp.lt.u32.totalorder %s3844_s15, %s4140_s11 }
 0x5d5   :  { %p3850_p11 = pnand %p3848_p10, %p3845_p9 }
 0x5d7   :  { %3853 = shalt.err (!%p3850_p11)
}
 0x5d8   :  { %2437 = dma.vmem_to_hbm [thread:$0]  %s2435_s1, 128, %s4140_s11, [#allocation4]  }
 0x5d9   :  { %3866 = dma.done.wait [#allocation4], 128  }
 0x5da   :  { %3867 = vsyncadd [#allocation4], 4294967168 }
 0x5db   :  { %2441 = vsyncpa [#allocation3], 1 }
 0x5dc   :  { %2442 = vsyncpa [#allocation6], 1 }
 0x5dd   :  { %2443 = vsyncpa [#allocation9], 1 }
 0x5de   :  { %2444 = vsyncpa [#allocation12], 1 }
 0x5df   :  { %2445 = vsyncpa [#allocation15], 1 }
 0x5e0   :  { %2446 = vsyncpa [#allocation18], 1 }
 0x5e1   :  { %2447 = vsyncpa [#allocation4], 1 }

</bundles_post_ra>
